<compile_context>
chip_gen: v6e
topology: v6e:2x2x1
jax: 0.10.0
libtpu: 0.0.40
codegen_flags: <defaults>
</compile_context>

<pallas_src>
import functools

import jax
import jax.numpy as jnp
from jax.experimental import pallas as pl
from jax.experimental.pallas import tpu as pltpu

KITTI_MAX_DEPTH = 80.0
BN_EPS = 1e-5


def _round_up(x, m):
    return ((x + m - 1) // m) * m


# Per-chip tiling budgets (perf review): v7x has only 64 MiB VMEM per core.
try:
    _KIND = jax.devices()[0].device_kind.lower()
except Exception:  # backend not reachable at import time
    _KIND = ""
_IS_V7 = ("v7" in _KIND) or ("tpu7" in _KIND)
_A_TILE_BYTES = (8 if _IS_V7 else 14) * 1024 * 1024
_VMEM_LIMIT_BYTES = (48 if _IS_V7 else 64) * 1024 * 1024


# ----------------------------------------------------------------------------
# Pallas kernel: full-K matmul with fused per-channel shift + activation
# ----------------------------------------------------------------------------
def _matmul_bias_act_kernel(a_ref, b_ref, shift_ref, o_ref, *, act):
    y = jnp.dot(a_ref[...], b_ref[...], preferred_element_type=jnp.float32)
    y = y + shift_ref[...]
    if act == "relu":
        y = jnp.maximum(y, 0.0)
    o_ref[...] = y.astype(o_ref.dtype)


def _pick_tm(m8, kp):
    # Biggest bf16 A-tile that fits the per-chip budget ...
    tm = 256
    for cand in (8192, 4096, 2048, 1024, 512, 256):
        if cand * kp * 2 <= _A_TILE_BYTES:
            tm = cand
            break
    if m8 <= 256:
        return m8
    # ... capped so the M grid keeps >= ~4 steps: enables double-buffer
    # pipelining and lets v7x's two TensorCores share the "parallel" axis.
    tm = min(tm, max(256, _round_up(m8, 1024) // 4))
    return min(tm, m8)


def matmul_bias_act(a, b_p, shift_p, act="none"):
    """act(a @ b + shift).

    a:       (M, K)  bf16 im2col rows (unpadded).
    b_p:     (Kp, Np) bf16 weights, pre-padded (Kp multiple of 128).
    shift_p: (1, Np)  f32 folded BN shift / bias.
    Returns the PADDED (Mp, Np) bf16 result; callers slice the valid region.
    """
    M, K = a.shape
    Kp, Np = b_p.shape
    tm = _pick_tm(_round_up(M, 8), Kp)
    Mp = _round_up(M, tm)
    a_p = jnp.pad(a, ((0, Mp - M), (0, Kp - K)))

    return pl.pallas_call(
        functools.partial(_matmul_bias_act_kernel, act=act),
        out_shape=jax.ShapeDtypeStruct((Mp, Np), jnp.bfloat16),
        grid_spec=pltpu.PrefetchScalarGridSpec(
            num_scalar_prefetch=0,
            grid=(Mp // tm,),
            in_specs=[
                pl.BlockSpec((tm, Kp), lambda i: (i, 0)),   # A streamed over M
                pl.BlockSpec((Kp, Np), lambda i: (0, 0)),   # weights resident
                pl.BlockSpec((1, Np), lambda i: (0, 0)),    # folded BN shift
            ],
            out_specs=pl.BlockSpec((tm, Np), lambda i: (i, 0)),
        ),
        compiler_params=pltpu.CompilerParams(
            dimension_semantics=("parallel",),
            vmem_limit_bytes=_VMEM_LIMIT_BYTES,
        ),
    )(a_p, b_p, shift_p)


# ----------------------------------------------------------------------------
# Convolution lowering (NHWC im2col glue -> Pallas matmul), cached per shape
# ----------------------------------------------------------------------------
def _conv2d_impl(x, w_p, s_p, *, kh, kw, stride, pad, dilation, act, cout):
    n, h, w, c = x.shape
    xb = x.astype(jnp.bfloat16)            # no-op: activations are bf16
    if pad:
        xb = jnp.pad(xb, ((0, 0), (pad, pad), (pad, pad), (0, 0)))
    hp, wp = h + 2 * pad, w + 2 * pad
    oh = (hp - dilation * (kh - 1) - 1) // stride + 1
    ow = (wp - dilation * (kw - 1) - 1) // stride + 1
    cols = []
    for i in range(kh):
        for j in range(kw):
            hi, wi = i * dilation, j * dilation
            cols.append(xb[:, hi:hi + (oh - 1) * stride + 1:stride,
                              wi:wi + (ow - 1) * stride + 1:stride, :])
    col = cols[0] if len(cols) == 1 else jnp.concatenate(cols, axis=-1)
    col = col.reshape(n * oh * ow, kh * kw * c)
    y = matmul_bias_act(col, w_p, s_p, act)               # (Mp, Np) bf16
    y = y[:n * oh * ow, :cout]
    return y.reshape(n, oh, ow, cout)


@functools.partial(
    jax.jit,
    static_argnames=("kh", "kw", "stride", "pad", "dilation", "act", "cout"))
def _conv2d_nhwc(x, w_p, s_p, *, kh, kw, stride, pad, dilation, act, cout):
    return _conv2d_impl(x, w_p, s_p, kh=kh, kw=kw, stride=stride, pad=pad,
                        dilation=dilation, act=act, cout=cout)


@functools.partial(
    jax.jit, static_argnames=("k", "stride", "padding", "oh", "ow", "cout"))
def _conv_transpose_nhwc(x, w_p, s_p, *, k, stride, padding, oh, ow, cout):
    # ConvTranspose2d == conv(zero-dilated + padded input, flipped weight).
    n, h, wdt, cin = x.shape
    op_h = oh - ((h - 1) * stride - 2 * padding + k)
    op_w = ow - ((wdt - 1) * stride - 2 * padding + k)
    if stride > 1:
        xd = jnp.zeros((n, (h - 1) * stride + 1, (wdt - 1) * stride + 1, cin),
                       x.dtype)
        xd = xd.at[:, ::stride, ::stride, :].set(x)
    else:
        xd = x
    lo = k - 1 - padding
    xp = jnp.pad(xd, ((0, 0), (lo, lo + op_h), (lo, lo + op_w), (0, 0)))
    return _conv2d_impl(xp, w_p, s_p, kh=k, kw=k, stride=1, pad=0, dilation=1,
                        act="none", cout=cout)


def convbn(x, lay, stride, pad, dilation, act="none"):
    # replicates ConvBN(): padding = dilation if dilation > 1 else pad
    padding = dilation if dilation > 1 else pad
    return _conv2d_nhwc(x, lay["w"], lay["s"], kh=lay["kh"], kw=lay["kw"],
                        stride=stride, pad=padding, dilation=dilation,
                        act=act, cout=lay["cout"])


def conv1x1(x, lay, act="none"):
    return _conv2d_nhwc(x, lay["w"], lay["s"], kh=1, kw=1, stride=1, pad=0,
                        dilation=1, act=act, cout=lay["cout"])


def conv_transpose(x, lay, stride, padding, out_size):
    return _conv_transpose_nhwc(x, lay["w"], lay["s"], k=lay["kh"],
                                stride=stride, padding=padding,
                                oh=out_size[0], ow=out_size[1],
                                cout=lay["cout"])


# ----------------------------------------------------------------------------
# Pooling / interpolation glue (NHWC)
# ----------------------------------------------------------------------------
def max_pool(x, s):
    n, h, w, c = x.shape
    hc, wc = (h // s) * s, (w // s) * s
    return x[:, :hc, :wc, :].reshape(n, hc // s, s, wc // s, s, c).max(axis=(2, 4))


def avg_pool(x, s):
    n, h, w, c = x.shape
    hc, wc = (h // s) * s, (w // s) * s
    r = x[:, :hc, :wc, :].reshape(n, hc // s, s, wc // s, s, c)
    return r.astype(jnp.float32).mean(axis=(2, 4)).astype(x.dtype)


@functools.partial(jax.jit, static_argnames=("pool", "per"))
def _pyramid_levels(feat, w_p, s_p, *, pool, per):
    """Fused level{64,16,8} 1x1 ConvBN+ReLU pyramid as ONE matmul call."""
    n, h, w, c = feat.shape
    pfn = max_pool if pool == "max" else avg_pool
    parts = [pfn(feat, 64), pfn(feat, 16), pfn(feat, 8)]
    a = jnp.concatenate([p.reshape(-1, c) for p in parts], axis=0)
    y = matmul_bias_act(a, w_p, s_p, act="relu")
    outs, row = [], 0
    for idx, p in enumerate(parts):
        m = p.shape[0] * p.shape[1] * p.shape[2]
        blk = y[row:row + m, idx * per:(idx + 1) * per]
        outs.append(blk.reshape(p.shape[0], p.shape[1], p.shape[2], per))
        row += m
    return tuple(outs)           # (level64, level16, level8)


def interp_nearest(x, size):
    n, h, w, c = x.shape
    oh, ow = size
    if (oh, ow) == (h, w):
        return x
    hi = (jnp.arange(oh) * h) // oh
    wi = (jnp.arange(ow) * w) // ow
    return x[:, hi[:, None], wi[None, :], :]


def interp_bilinear_ac(x, size):
    # F.interpolate(mode='bilinear', align_corners=True), NHWC
    n, h, w, c = x.shape
    oh, ow = size

    def coords(o, i):
        if o == 1 or i == 1:
            z = jnp.zeros((o,), jnp.int32)
            return z, z, jnp.zeros((o,), jnp.float32)
        src = jnp.arange(o, dtype=jnp.float32) * ((i - 1) / (o - 1))
        i0 = jnp.clip(jnp.floor(src).astype(jnp.int32), 0, i - 1)
        i1 = jnp.clip(i0 + 1, 0, i - 1)
        return i0, i1, src - i0.astype(jnp.float32)

    h0, h1, fh = coords(oh, h)
    w0, w1, fw = coords(ow, w)
    r0 = x[:, h0, :, :].astype(jnp.float32)
    r1 = x[:, h1, :, :].astype(jnp.float32)
    rows = r0 * (1 - fh)[None, :, None, None] + r1 * fh[None, :, None, None]
    c0 = rows[:, :, w0, :]
    c1 = rows[:, :, w1, :]
    out = c0 * (1 - fw)[None, None, :, None] + c1 * fw[None, None, :, None]
    return out.astype(x.dtype)


# ----------------------------------------------------------------------------
# Deterministic parameter construction + one-time folding / padding
# ----------------------------------------------------------------------------
class ParamGen:
    def __init__(self, seed=0):
        self._key = jax.random.PRNGKey(seed)

    def normal(self, shape, scale=0.05):
        self._key, sub = jax.random.split(self._key)
        return jax.random.normal(sub, shape, jnp.float32) * scale

    def convbn(self, cin, cout, k, bias=True):
        b = self.normal((cout,)) if bias else jnp.zeros((cout,), jnp.float32)
        return {"w": self.normal((cout, cin, k, k)), "bias": b,
                "gamma": jnp.ones((cout,), jnp.float32),
                "beta": jnp.zeros((cout,), jnp.float32),
                "mean": jnp.zeros((cout,), jnp.float32),
                "var": jnp.ones((cout,), jnp.float32)}

    def conv(self, cin, cout, k):
        return {"w": self.normal((cout, cin, k, k)), "bias": self.normal((cout,))}

    def convT(self, cin, cout, k):
        return {"w": self.normal((cin, cout, k, k)), "bias": self.normal((cout,))}


def _weight_to_mat(w):
    # (O, C, KH, KW) -> (KH*KW*C, O), matching the im2col (ki, kj, c) order.
    o, c, kh, kw = w.shape
    return w.transpose(2, 3, 1, 0).reshape(kh * kw * c, o)


def _pad_n(n):
    return _round_up(n, 128) if n >= 64 else _round_up(n, 8)


def _pack(wmat, shift, kh, kw):
    k, n = wmat.shape
    kp, np_ = _round_up(k, 128), _pad_n(n)
    return {"w": jnp.pad(wmat, ((0, kp - k), (0, np_ - n))).astype(jnp.bfloat16),
            "s": jnp.pad(shift, (0, np_ - n)).astype(jnp.float32)[None, :],
            "kh": kh, "kw": kw, "cout": n}


def _fold_convbn(p):
    scale = p["gamma"] / jnp.sqrt(p["var"] + BN_EPS)
    wmat = _weight_to_mat(p["w"] * scale[:, None, None, None])
    shift = scale * (p["bias"] - p["mean"]) + p["beta"]
    return wmat, shift


def prep_convbn(p):
    o, c, kh, kw = p["w"].shape
    wmat, shift = _fold_convbn(p)
    return _pack(wmat, shift, kh, kw)


def prep_conv(p):
    o, c, kh, kw = p["w"].shape
    return _pack(_weight_to_mat(p["w"]), p["bias"], kh, kw)


def prep_convT(p):
    cin, cout, kh, kw = p["w"].shape
    w_conv = jnp.flip(p["w"], axis=(2, 3)).transpose(1, 0, 2, 3)   # (Cout,Cin,k,k)
    return _pack(_weight_to_mat(w_conv), p["bias"], kh, kw)


def prep_levels(ps):
    # Concatenate the level{64,16,8} 1x1 ConvBN weights along N -> one matmul.
    mats, shifts = [], []
    for p in ps:
        wmat, shift = _fold_convbn(p)
        mats.append(wmat)
        shifts.append(shift)
    lay = _pack(jnp.concatenate(mats, axis=1), jnp.concatenate(shifts, axis=0), 1, 1)
    lay["per_level"] = ps[0]["w"].shape[0]
    return lay


def make_rgb_params(pg):
    P = {"fe_conv1": prep_convbn(pg.convbn(3, 32, 3)),
         "fe_conv2": prep_convbn(pg.convbn(32, 32, 3))}
    inplanes = 32

    def make_layer(planes, blocks, stride, pad, dilation):
        nonlocal inplanes
        down = None
        if stride != 1 or inplanes != planes:
            # Conv2d(bias=False) + BatchNorm in the original downsample path.
            down = prep_convbn(pg.convbn(inplanes, planes, 1, bias=False))
        layers = [{"conv1": prep_convbn(pg.convbn(inplanes, planes, 3)),
                   "conv2": prep_convbn(pg.convbn(planes, planes, 3)),
                   "downsample": down,
                   "stride": stride, "pad": pad, "dilation": dilation}]
        inplanes = planes
        for _ in range(1, blocks):
            layers.append({"conv1": prep_convbn(pg.convbn(planes, planes, 3)),
                           "conv2": prep_convbn(pg.convbn(planes, planes, 3)),
                           "downsample": None,
                           "stride": 1, "pad": pad, "dilation": dilation})
        return layers

    P["fe_conv3_4"] = make_layer(32, 3, 1, 1, 1)
    P["fe_conv5_8"] = make_layer(64, 16, 2, 1, 1)
    P["fe_conv9_10"] = make_layer(128, 3, 1, 1, 1)
    P["fe_conv11_12"] = make_layer(128, 3, 1, 1, 2)
    # level32_conv exists in the original __init__ but its output is discarded
    # in forward() (op_l32 = relu(op_l64_conv)), so only levels 64/16/8 are
    # prepared and fused into one matmul.
    P["levels"] = prep_levels([pg.convbn(128, 32, 1) for _ in range(3)])
    return P


def make_depth_params(pg):
    return {"conv_block1": prep_convbn(pg.convbn(1, 16, 11)),
            "conv_block2": prep_convbn(pg.convbn(16, 32, 7)),
            "conv_block3": prep_convbn(pg.convbn(32, 64, 5)),
            "levels": prep_levels([pg.convbn(64, 32, 1) for _ in range(3)])}


def make_params(seed=0):
    pg = ParamGen(seed)
    P = {"rgb": make_rgb_params(pg), "depth": make_depth_params(pg)}
    P["joint_conv1"] = {"cbn": prep_convbn(pg.convbn(320, 192, 3)),
                        "c1": prep_conv(pg.conv(192, 192, 1))}
    P["joint_conv2"] = {"cbn": prep_convbn(pg.convbn(192, 192, 3)),
                        "c1": prep_conv(pg.conv(192, 192, 1))}
    P["joint_conv3"] = {"cbn": prep_convbn(pg.convbn(192, 128, 3)),
                        "c1": prep_conv(pg.conv(128, 128, 1))}
    P["deconv_l1"] = prep_convT(pg.convT(128, 128, 3))
    P["deconv_l2"] = {"cbn": prep_convbn(pg.convbn(128, 64, 3)),
                      "c1": prep_conv(pg.conv(64, 64, 1))}
    P["deconv_l3"] = prep_convT(pg.convT(64, 64, 3))
    P["deconv_l4"] = {"cbn": prep_convbn(pg.convbn(64, 32, 3)),
                      "c1": prep_conv(pg.conv(32, 32, 1))}
    P["deconv_l5"] = prep_convT(pg.convT(32, 32, 3))
    P["deconv_l6"] = {"cbn": prep_convbn(pg.convbn(32, 16, 3)),
                      "c1": prep_conv(pg.conv(16, 16, 1))}
    P["deconv_l7"] = prep_convT(pg.convT(16, 16, 3))
    P["deconv_l8"] = {"cbn": prep_convbn(pg.convbn(16, 1, 3)),
                      "c1": prep_conv(pg.conv(1, 1, 1))}
    P["final_conv"] = {"cbn": prep_convbn(pg.convbn(113, 113, 3)),
                       "c1": prep_conv(pg.conv(113, 1, 1))}
    # NOTE: d_s1/d_s2/d_s3_depth exist in __init__ but are unused in forward().
    return P


# ----------------------------------------------------------------------------
# Forward pass (NHWC bf16 internally, NCHW f32 at the interface)
# ----------------------------------------------------------------------------
def res_block(x, bp):
    out = convbn(x, bp["conv1"], bp["stride"], bp["pad"], bp["dilation"], act="relu")
    out = convbn(out, bp["conv2"], 1, bp["pad"], bp["dilation"], act="none")
    sc = x
    if bp["downsample"] is not None:
        sc = convbn(x, bp["downsample"], bp["stride"], 0, 1, act="none")
    return out + sc


def _run_blocks(h, blocks):
    for bp in blocks:
        h = res_block(h, bp)
    return h


def feature_extract_rgb(x, p):
    x1 = convbn(x, p["fe_conv1"], 2, 1, 1, act="relu")
    x2 = convbn(x1, p["fe_conv2"], 1, 1, 1, act="relu")
    c3_4 = _run_blocks(x2, p["fe_conv3_4"])
    c5_8 = _run_blocks(c3_4, p["fe_conv5_8"])
    c9_10 = _run_blocks(c5_8, p["fe_conv9_10"])
    c11_12 = _run_blocks(c9_10, p["fe_conv11_12"])
    size = (c11_12.shape[1], c11_12.shape[2])

    lay = p["levels"]
    l64, l16, l8 = _pyramid_levels(c11_12, lay["w"], lay["s"],
                                   pool="avg", per=lay["per_level"])
    l64u = interp_bilinear_ac(l64, size)
    # Original-module bug reproduced: op_l32 = relu(op_l64_conv), so the
    # level-32 branch equals the level-64 branch; level32_conv is never used.
    l32u = l64u
    l16u = interp_bilinear_ac(l16, size)
    l8u = interp_bilinear_ac(l8, size)
    return c5_8, c11_12, l8u, l16u, l32u, l64u


def feature_extract_depth(x, p):
    # (x > 0) mask is computed but unused in the original forward -> skipped.
    c1 = convbn(x, p["conv_block1"], 1, 5, 1, act="relu")
    c2 = convbn(c1, p["conv_block2"], 2, 3, 1, act="relu")
    c3 = convbn(c2, p["conv_block3"], 2, 2, 1, act="relu")
    size = (c3.shape[1], c3.shape[2])

    lay = p["levels"]
    l64, l16, l8 = _pyramid_levels(c3, lay["w"], lay["s"],
                                   pool="max", per=lay["per_level"])
    l64u = interp_nearest(l64, size)
    l32u = l64u                       # same original bug as the RGB branch
    l16u = interp_nearest(l16, size)
    l8u = interp_nearest(l8, size)
    return c3, l8u, l16u, l32u, l64u


def cbn_relu_1x1(x, p, final_relu):
    h = convbn(x, p["cbn"], 1, 1, 1, act="relu")
    return conv1x1(h, p["c1"], act="relu" if final_relu else "none")


def dfusenet_forward(params, x_in, max_depth=KITTI_MAX_DEPTH):
    # x_in: NCHW (N, 4, H, W); channel 0 = sparse depth, channels 1:4 = RGB.
    rgb = x_in[:, 1:, :, :].transpose(0, 2, 3, 1).astype(jnp.bfloat16)
    d = (x_in[:, 0, :, :] / max_depth)[..., None].astype(jnp.bfloat16)

    i_raw, i_skip, i_b4, i_b3, i_b2, i_b1 = feature_extract_rgb(rgb, params["rgb"])
    d_skip, d_b4, d_b3, d_b2, d_b1 = feature_extract_depth(d, params["depth"])

    cat = jnp.concatenate((i_raw, d_b4, i_b4, d_b3, i_b3, d_b2, i_b2, d_b1, i_b1),
                          axis=-1)
    jf1 = cbn_relu_1x1(cat, params["joint_conv1"], True)
    jf2 = cbn_relu_1x1(jf1, params["joint_conv2"], True)
    jf3 = cbn_relu_1x1(jf2, params["joint_conv3"], False)

    H, W = x_in.shape[2], x_in.shape[3]
    d1 = conv_transpose(jf3, params["deconv_l1"], 2, 1, (H // 2, W // 2))
    d2 = cbn_relu_1x1(d1, params["deconv_l2"], False)
    d3 = conv_transpose(d2, params["deconv_l3"], 1, 1, (H // 2, W // 2))
    d4 = cbn_relu_1x1(d3, params["deconv_l4"], False)
    d5 = conv_transpose(d4, params["deconv_l5"], 2, 1, (H, W))
    d6 = cbn_relu_1x1(d5, params["deconv_l6"], False)
    d7 = conv_transpose(d6, params["deconv_l7"], 1, 1, (H, W))
    d8 = cbn_relu_1x1(d7, params["deconv_l8"], False)

    tgt = (d8.shape[1], d8.shape[2])
    stack = jnp.concatenate((interp_nearest(d2, tgt), interp_nearest(d4, tgt),
                             interp_nearest(d6, tgt), interp_nearest(d8, tgt)),
                            axis=-1)
    final = cbn_relu_1x1(stack, params["final_conv"], False)
    out = jax.nn.sigmoid(final.astype(jnp.float32)) * max_depth
    return out.transpose(0, 3, 1, 2)                              # back to NCHW


if __name__ == "__main__":
    # Smallest input consistent with the module: the 64x64 pooling layers act
    # on 1/4-resolution features, so spatial extent must be >= 256.  Batch 1.
    params = make_params(0)
    x_in = jax.random.uniform(jax.random.PRNGKey(0), (1, 4, 256, 256), jnp.float32)
    out = dfusenet_forward(params, x_in)
    out = jax.block_until_ready(out)
    assert out.shape == (1, 1, 256, 256), out.shape
    assert bool(jnp.all(jnp.isfinite(out)))
    print("KERNEL_OK")
</pallas_src>

<mosaic_0001>
module attributes {stable_mosaic.version = 11 : i64} {
  func.func @_matmul_bias_act_kernel(%arg0: i32, %arg1: memref<4096x128xbf16, #tpu.memory_space<vmem>>, %arg2: memref<128x32xbf16, #tpu.memory_space<vmem>>, %arg3: memref<1x32xf32, #tpu.memory_space<vmem>>, %arg4: memref<4096x32xbf16, #tpu.memory_space<vmem>>) attributes {dimension_semantics = [#tpu.dimension_semantics<parallel>], iteration_bounds = array<i64: 4>, scalar_prefetch = 0 : i64, scratch_operands = 0 : i64, tpu.core_type = #tpu.core_type<tc>, window_params = [{transform_indices = @transform_0, window_bounds = array<i64: 4096, 128>}, {pipeline_mode = #tpu.pipeline_mode<synchronous>, transform_indices = @transform_1, window_bounds = array<i64: 128, 32>}, {pipeline_mode = #tpu.pipeline_mode<synchronous>, transform_indices = @transform_2, window_bounds = array<i64: 1, 32>}, {transform_indices = @transform_3, window_bounds = array<i64: 4096, 32>}]} {
    %c0 = arith.constant 0 : index
    %c0_0 = arith.constant 0 : index
    %0 = vector.load %arg1[%c0, %c0_0] : memref<4096x128xbf16, #tpu.memory_space<vmem>>, vector<4096x128xbf16>
    %c0_1 = arith.constant 0 : index
    %c0_2 = arith.constant 0 : index
    %1 = vector.load %arg2[%c0_1, %c0_2] : memref<128x32xbf16, #tpu.memory_space<vmem>>, vector<128x32xbf16>
    %cst = arith.constant dense<0.000000e+00> : vector<4096x32xf32>
    %2 = tpu.matmul %0, %1, %cst {dimension_numbers = #tpu.dot_dimension_numbers<[1], [0], [0], [1], [0, 0, 1, 1], [], []>} : vector<4096x128xbf16>, vector<128x32xbf16>, vector<4096x32xf32> -> vector<4096x32xf32>
    %c0_3 = arith.constant 0 : index
    %c0_4 = arith.constant 0 : index
    %3 = vector.load %arg3[%c0_3, %c0_4] : memref<1x32xf32, #tpu.memory_space<vmem>>, vector<1x32xf32>
    %4 = vector.broadcast %3 : vector<1x32xf32> to vector<4096x32xf32>
    %5 = arith.addf %2, %4 : vector<4096x32xf32>
    %cst_5 = arith.constant 0.000000e+00 : f32
    %6 = vector.broadcast %cst_5 : f32 to vector<4096x32xf32>
    %7 = arith.maximumf %5, %6 : vector<4096x32xf32>
    %8 = arith.truncf %7 : vector<4096x32xf32> to vector<4096x32xbf16>
    %c0_6 = arith.constant 0 : index
    %c0_7 = arith.constant 0 : index
    %9 = vector.load %arg4[%c0_6, %c0_7] : memref<4096x32xbf16, #tpu.memory_space<vmem>>, vector<4096x32xbf16>
    tpu.vector_store %arg4[%c0_6, %c0_7], %8 {strides = array<i32>} : memref<4096x32xbf16, #tpu.memory_space<vmem>>, vector<4096x32xbf16>,
    return
  }
  func.func @transform_0(%arg0: i32) -> (i32, i32) {
    %c0_i32 = arith.constant 0 : i32
    %c0_i32_0 = arith.constant 0 : i32
    return %arg0, %c0_i32 : i32, i32
  }
  func.func @transform_1(%arg0: i32) -> (i32, i32) {
    %c0_i32 = arith.constant 0 : i32
    %c0_i32_0 = arith.constant 0 : i32
    %c0_i32_1 = arith.constant 0 : i32
    return %c0_i32, %c0_i32_0 : i32, i32
  }
  func.func @transform_2(%arg0: i32) -> (i32, i32) {
    %c0_i32 = arith.constant 0 : i32
    %c0_i32_0 = arith.constant 0 : i32
    %c0_i32_1 = arith.constant 0 : i32
    return %c0_i32, %c0_i32_0 : i32, i32
  }
  func.func @transform_3(%arg0: i32) -> (i32, i32) {
    %c0_i32 = arith.constant 0 : i32
    %c0_i32_0 = arith.constant 0 : i32
    return %arg0, %c0_i32 : i32, i32
  }
}

</mosaic_0001>

<bundles_post_ra>
// kernel: _conv2d_nhwc.1
= control target key start
LH: loop header
LB: loop body
LE: loop exit
PB: predicated region body
PF: predicated region fallthrough
CT: control target
= control target key end

     0   :  { %s9917_s12 = smov 0   ;;  %s11791_s0 = inlined_call_operand.vmem [shape: bf16[16384,128], index: 0, kind: input, shape index: {}]   ;;  %s11792_s1 = inlined_call_operand.vmem [shape: bf16[128,32], index: 1, kind: input, shape index: {}]   ;;  %s11793_s2 = inlined_call_operand.vmem [shape: f32[1,32], index: 2, kind: input, shape index: {}]   ;;  %s11794_s3 = inlined_call_operand.vmem [shape: bf16[16384,32], index: 3, kind: output, shape index: {}]  }
   0x1 LB: > { %s7504_s13 = sadd.s32 4294967295, %s9895_s12   ;;  %p7508_p0 = scmp.ge.s32.totalorder %s9895_s12, 1  ;;  %s9895_s12 = sphi %s9917_s12, %s13_s12  }
   0x2   : > { %p138_p1 = scmp.lt.s32.totalorder %s9895_s12, 5 }
   0x4   : > { %p139_p2 = pnand %p7508_p0, %p138_p1 }
   0x5   : > { %s7509_s16 = sshll.u32 (!%p139_p2), %s7504_s13, 9 }
   0x6   : > { %142 = sbr.rel (%p139_p2) target bundleno = 755 (0x2f3), region = 32  ;;  %p163_p3 = scmp.lt.s32.totalorder (!%p139_p2), %s7509_s16, 2047 }
   0xb   : > { %v9620_v0 = vld [vmem:[%s11792_s1 + $0x38] sm:$0xff]   ;;  %v9621_v1 = vld [vmem:[%s11792_s1 + $0x30] sm:$0xff]   ;;  %s11796_s16 = smov (!%p163_p3, %s7509_s16), 2047  ;;  %v9622_v2 = vld [vmem:[%s11792_s1 + $0x28] sm:$0xff]   ;;  %vm6935_vm0 = vcmask 257024  }
   0xc   : > { %9068 = vmatprep.subr.bf16.mxu0 %v9620_v0  ;;  %9596 = vmatprep.subr.bf16.mxu1 %v9620_v0  ;;  %s7510_s21 = sshll.u32 %s11796_s16, 2  ;;  %v9623_v3 = vld [vmem:[%s11792_s1 + $0x20] sm:$0xff]   ;;  %v9624_v6 = vld [vmem:[%s11792_s1 + $0x18] sm:$0xff]   ;;  %v9625_v7 = vld [vmem:[%s11792_s1 + $0x10] sm:$0xff]  }
   0xd   : > { %9069 = vmatpush3.bf16.msra.mxu0 %v9620_v0  ;;  %9604 = vmatpush3.bf16.msra.mxu1 %v9620_v0  ;;  %s9942_s24 = scalar_lea.vmem %s11791_s0, %s7510_s21  ;;  %v9626_v8 = vld [vmem:[%s11792_s1 + $0x8] sm:$0xff]   ;;  %v9627_v9 = vld [vmem:[%s11792_s1] sm:$0xff]   ;;  %s10079_s13 = scalar_lea.vmem %s11794_s3, %s7510_s21 }
   0xe   : > { %9070 = vmatprep.subr.bf16.mxu0 %v9621_v1  ;;  %9597 = vmatprep.subr.bf16.mxu1 %v9621_v1  ;;  %v9628_v4 = vld [vmem:[%s9942_s24] sm:$0xff]   ;;  %v9630_v10 = vld [vmem:[%s9942_s24 + $0x8] sm:$0xff]   ;;  %v9632_v12 = vld [vmem:[%s9942_s24 + $0x10] sm:$0xff]  }
   0xf   : > { %v9629_v5 = vld [vmem:[%s9942_s24 + $0x400] sm:$0xff]   ;;  %9084 = vmatprep.mubr.bf16.mxu0 %v9628_v4  ;;  %v9631_v11 = vld [vmem:[%s9942_s24 + $0x408] sm:$0xff]   ;;  %v9633_v13 = vld [vmem:[%s9942_s24 + $0x410] sm:$0xff]  }
  0x10   : > { %9340 = vmatprep.mubr.bf16.mxu1 %v9629_v5  ;;  %v9634_v14 = vld [vmem:[%s9942_s24 + $0x18] sm:$0xff]   ;;  %v9636_v16 = vld [vmem:[%s9942_s24 + $0x20] sm:$0xff]   ;;  %v9638_v18 = vld [vmem:[%s9942_s24 + $0x28] sm:$0xff]  }
  0x11   : > { %9071 = vmatpush3.bf16.msra.mxu0 %v9621_v1  ;;  %9605 = vmatpush3.bf16.msra.mxu1 %v9621_v1  ;;  %v9635_v15 = vld [vmem:[%s9942_s24 + $0x418] sm:$0xff]   ;;  %v9637_v17 = vld [vmem:[%s9942_s24 + $0x420] sm:$0xff]   ;;  %v9639_v19 = vld [vmem:[%s9942_s24 + $0x428] sm:$0xff]  }
  0x12   : > { %9072 = vmatprep.subr.bf16.mxu0 %v9622_v2  ;;  %9598 = vmatprep.subr.bf16.mxu1 %v9622_v2  ;;  %v9640_v20 = vld [vmem:[%s9942_s24 + $0x30] sm:$0xff]   ;;  %v9642_v22 = vld [vmem:[%s9942_s24 + $0x38] sm:$0xff]   ;;  %v9644_v24 = vld [vmem:[%s9942_s24 + $0x40] sm:$0xff]  }
  0x13   : > { %v9641_v21 = vld [vmem:[%s9942_s24 + $0x430] sm:$0xff]   ;;  %v9643_v23 = vld [vmem:[%s9942_s24 + $0x438] sm:$0xff]   ;;  %v9645_v25 = vld [vmem:[%s9942_s24 + $0x440] sm:$0xff]  }
  0x14   : > { %v9646_v26 = vld [vmem:[%s9942_s24 + $0x48] sm:$0xff]   ;;  %v9648_v28 = vld [vmem:[%s9942_s24 + $0x50] sm:$0xff]   ;;  %v9650_v30 = vld [vmem:[%s9942_s24 + $0x58] sm:$0xff]  }
  0x15   : > { %9073 = vmatpush3.bf16.msra.mxu0 %v9622_v2  ;;  %9606 = vmatpush3.bf16.msra.mxu1 %v9622_v2  ;;  %v9647_v27 = vld [vmem:[%s9942_s24 + $0x448] sm:$0xff]   ;;  %v9649_v29 = vld [vmem:[%s9942_s24 + $0x450] sm:$0xff]   ;;  %v9651_v31 = vld [vmem:[%s9942_s24 + $0x458] sm:$0xff]  }
  0x16   : > { %9074 = vmatprep.subr.bf16.mxu0 %v9623_v3  ;;  %9599 = vmatprep.subr.bf16.mxu1 %v9623_v3  ;;  %v9652_v32 = vld [vmem:[%s9942_s24 + $0x60] sm:$0xff]   ;;  %v9654_v34 = vld [vmem:[%s9942_s24 + $0x68] sm:$0xff]   ;;  %v9656_v36 = vld [vmem:[%s9942_s24 + $0x70] sm:$0xff]  }
  0x17   : > { %v9653_v33 = vld [vmem:[%s9942_s24 + $0x460] sm:$0xff]   ;;  %v9655_v35 = vld [vmem:[%s9942_s24 + $0x468] sm:$0xff]   ;;  %v9657_v37 = vld [vmem:[%s9942_s24 + $0x470] sm:$0xff]  }
  0x18   : > { %v9658_v38 = vld [vmem:[%s9942_s24 + $0x78] sm:$0xff]   ;;  %v9660_v40 = vld [vmem:[%s9942_s24 + $0x80] sm:$0xff]   ;;  %v9662_v42 = vld [vmem:[%s9942_s24 + $0x88] sm:$0xff]  }
  0x19   : > { %9075 = vmatpush3.bf16.msra.mxu0 %v9623_v3  ;;  %9607 = vmatpush3.bf16.msra.mxu1 %v9623_v3  ;;  %v9659_v39 = vld [vmem:[%s9942_s24 + $0x478] sm:$0xff]   ;;  %v9661_v41 = vld [vmem:[%s9942_s24 + $0x480] sm:$0xff]   ;;  %v9663_v43 = vld [vmem:[%s9942_s24 + $0x488] sm:$0xff]  }
  0x1a   : > { %9076 = vmatprep.subr.bf16.mxu0 %v9624_v6  ;;  %9600 = vmatprep.subr.bf16.mxu1 %v9624_v6  ;;  %v9664_v44 = vld [vmem:[%s9942_s24 + $0x90] sm:$0xff]   ;;  %v9666_v46 = vld [vmem:[%s9942_s24 + $0x98] sm:$0xff]   ;;  %v9668_v48 = vld [vmem:[%s9942_s24 + $0xa0] sm:$0xff]  }
  0x1b   : > { %v9665_v45 = vld [vmem:[%s9942_s24 + $0x490] sm:$0xff]   ;;  %v9667_v47 = vld [vmem:[%s9942_s24 + $0x498] sm:$0xff]   ;;  %v9669_v49 = vld [vmem:[%s9942_s24 + $0x4a0] sm:$0xff]  }
  0x1c   : > { %v9670_v50 = vld [vmem:[%s9942_s24 + $0xa8] sm:$0xff]   ;;  %v9672_v52 = vld [vmem:[%s9942_s24 + $0xb0] sm:$0xff]   ;;  %v9674_v54 = vld [vmem:[%s9942_s24 + $0xb8] sm:$0xff]  }
  0x1d   : > { %9077 = vmatpush3.bf16.msra.mxu0 %v9624_v6  ;;  %9608 = vmatpush3.bf16.msra.mxu1 %v9624_v6  ;;  %v9671_v51 = vld [vmem:[%s9942_s24 + $0x4a8] sm:$0xff]   ;;  %v9673_v53 = vld [vmem:[%s9942_s24 + $0x4b0] sm:$0xff]   ;;  %v9675_v55 = vld [vmem:[%s9942_s24 + $0x4b8] sm:$0xff]  }
  0x1e   : > { %9078 = vmatprep.subr.bf16.mxu0 %v9625_v7  ;;  %9601 = vmatprep.subr.bf16.mxu1 %v9625_v7  ;;  %v9676_v56 = vld [vmem:[%s9942_s24 + $0xc0] sm:$0xff]   ;;  %v9678_v58 = vld [vmem:[%s9942_s24 + $0xc8] sm:$0xff]   ;;  %v9680_v60 = vld [vmem:[%s9942_s24 + $0xd0] sm:$0xff]  }
  0x1f   : > { %v9677_v57 = vld [vmem:[%s9942_s24 + $0x4c0] sm:$0xff]   ;;  %v9679_v59 = vld [vmem:[%s9942_s24 + $0x4c8] sm:$0xff]   ;;  %v9681_v61 = vld [vmem:[%s9942_s24 + $0x4d0] sm:$0xff]  }
  0x20   : > { %v9682_v62 = vld [vmem:[%s9942_s24 + $0xd8] sm:$0xff]   ;;  %v9684_v0 = vld [vmem:[%s9942_s24 + $0xe0] sm:$0xff]   ;;  %v9686_v2 = vld [vmem:[%s9942_s24 + $0xe8] sm:$0xff]  }
  0x21   : > { %9079 = vmatpush3.bf16.msra.mxu0 %v9625_v7  ;;  %9609 = vmatpush3.bf16.msra.mxu1 %v9625_v7  ;;  %v9683_v63 = vld [vmem:[%s9942_s24 + $0x4d8] sm:$0xff]   ;;  %v9685_v1 = vld [vmem:[%s9942_s24 + $0x4e0] sm:$0xff]   ;;  %v9687_v3 = vld [vmem:[%s9942_s24 + $0x4e8] sm:$0xff]  }
  0x22   : > { %9080 = vmatprep.subr.bf16.mxu0 %v9626_v8  ;;  %9602 = vmatprep.subr.bf16.mxu1 %v9626_v8  ;;  %v9688_v4 = vld [vmem:[%s9942_s24 + $0xf0] sm:$0xff]   ;;  %v9690_v6 = vld [vmem:[%s9942_s24 + $0xf8] sm:$0xff]  }
  0x23   : > { %v9689_v5 = vld [vmem:[%s9942_s24 + $0x4f0] sm:$0xff]   ;;  %v9691_v7 = vld [vmem:[%s9942_s24 + $0x4f8] sm:$0xff]  }
  0x25   : > { %9081 = vmatpush3.bf16.msra.mxu0 %v9626_v8  ;;  %9610 = vmatpush3.bf16.msra.mxu1 %v9626_v8  ;;  %v9692_v8 = vld [vmem:[%s9942_s24 + $0x100] sm:$0xff]  }
  0x26   : > { %9082 = vmatprep.subr.bf16.mxu0 %v9627_v9  ;;  %9603 = vmatprep.subr.bf16.mxu1 %v9627_v9 }
  0x29   : > { %9083 = vmatpush3.bf16.msra.mxu0 %v9627_v9  ;;  %9611 = vmatpush3.bf16.msra.mxu1 %v9627_v9  ;;  %v9693_v9 = vld [vmem:[%s9942_s24 + $0x500] sm:$0xff]  }
  0x2c   : > { %9085 = vmatmul.mubr.bf16.vlgmr.msra.gmra.mxu0 %v9630_v10  ;;  %9341 = vmatmul.mubr.bf16.vlgmr.msra.gmra.mxu1 %v9631_v11  ;;  %v9694_v10 = vld [vmem:[%s9942_s24 + $0x108] sm:$0xff]  }
  0x2d   : > { %9088 = vmatprep.mubr.bf16.mxu0 %v9632_v12  ;;  %9344 = vmatprep.mubr.bf16.mxu1 %v9633_v13  ;;  %v9695_v11 = vld [vmem:[%s9942_s24 + $0x508] sm:$0xff]   ;;  %v9696_v12 = vld [vmem:[%s9942_s24 + $0x110] sm:$0xff]  }
  0x2e   : > { %v9697_v13 = vld [vmem:[%s9942_s24 + $0x510] sm:$0xff]  }
  0x34   : > { %9089 = vmatmul.mubr.bf16.gmra.mxu0 %v9634_v14  ;;  %9345 = vmatmul.mubr.bf16.gmra.mxu1 %v9635_v15  ;;  %v9698_v14 = vld [vmem:[%s9942_s24 + $0x118] sm:$0xff]  }
  0x35   : > { %9092 = vmatprep.mubr.bf16.mxu0 %v9636_v16  ;;  %9348 = vmatprep.mubr.bf16.mxu1 %v9637_v17  ;;  %v9699_v15 = vld [vmem:[%s9942_s24 + $0x518] sm:$0xff]   ;;  %v9700_v16 = vld [vmem:[%s9942_s24 + $0x120] sm:$0xff]  }
  0x36   : > { %v9701_v17 = vld [vmem:[%s9942_s24 + $0x520] sm:$0xff]  }
  0x3c   : > { %9093 = vmatmul.mubr.bf16.gmra.mxu0 %v9638_v18  ;;  %9349 = vmatmul.mubr.bf16.gmra.mxu1 %v9639_v19  ;;  %v9702_v18 = vld [vmem:[%s9942_s24 + $0x128] sm:$0xff]  }
  0x3d   : > { %9096 = vmatprep.mubr.bf16.mxu0 %v9640_v20  ;;  %9352 = vmatprep.mubr.bf16.mxu1 %v9641_v21  ;;  %v9703_v19 = vld [vmem:[%s9942_s24 + $0x528] sm:$0xff]   ;;  %v9704_v20 = vld [vmem:[%s9942_s24 + $0x130] sm:$0xff]  }
  0x3e   : > { %v9705_v21 = vld [vmem:[%s9942_s24 + $0x530] sm:$0xff]  }
  0x44   : > { %9097 = vmatmul.mubr.bf16.gmra.mxu0 %v9642_v22  ;;  %9353 = vmatmul.mubr.bf16.gmra.mxu1 %v9643_v23  ;;  %v9706_v22 = vld [vmem:[%s9942_s24 + $0x138] sm:$0xff]  }
  0x45   : > { %9100 = vmatprep.mubr.bf16.mxu0 %v9644_v24  ;;  %9356 = vmatprep.mubr.bf16.mxu1 %v9645_v25  ;;  %v9707_v23 = vld [vmem:[%s9942_s24 + $0x538] sm:$0xff]   ;;  %v9708_v24 = vld [vmem:[%s9942_s24 + $0x140] sm:$0xff]  }
  0x46   : > { %v9709_v25 = vld [vmem:[%s9942_s24 + $0x540] sm:$0xff]  }
  0x4c   : > { %9101 = vmatmul.mubr.bf16.gmra.mxu0 %v9646_v26  ;;  %9357 = vmatmul.mubr.bf16.gmra.mxu1 %v9647_v27  ;;  %v9710_v26 = vld [vmem:[%s9942_s24 + $0x148] sm:$0xff]  }
  0x4d   : > { %9104 = vmatprep.mubr.bf16.mxu0 %v9648_v28  ;;  %9360 = vmatprep.mubr.bf16.mxu1 %v9649_v29  ;;  %v9711_v27 = vld [vmem:[%s9942_s24 + $0x548] sm:$0xff]   ;;  %v9712_v28 = vld [vmem:[%s9942_s24 + $0x150] sm:$0xff]  }
  0x4e   : > { %v9713_v29 = vld [vmem:[%s9942_s24 + $0x550] sm:$0xff]  }
  0x54   : > { %9105 = vmatmul.mubr.bf16.gmra.mxu0 %v9650_v30  ;;  %9361 = vmatmul.mubr.bf16.gmra.mxu1 %v9651_v31  ;;  %v9714_v30 = vld [vmem:[%s9942_s24 + $0x158] sm:$0xff]  }
  0x55   : > { %9108 = vmatprep.mubr.bf16.mxu0 %v9652_v32  ;;  %9364 = vmatprep.mubr.bf16.mxu1 %v9653_v33  ;;  %v9715_v31 = vld [vmem:[%s9942_s24 + $0x558] sm:$0xff]   ;;  %v9716_v32 = vld [vmem:[%s9942_s24 + $0x160] sm:$0xff]  }
  0x56   : > { %v9717_v33 = vld [vmem:[%s9942_s24 + $0x560] sm:$0xff]  }
  0x5c   : > { %9109 = vmatmul.mubr.bf16.gmra.mxu0 %v9654_v34  ;;  %9365 = vmatmul.mubr.bf16.gmra.mxu1 %v9655_v35  ;;  %v9718_v34 = vld [vmem:[%s9942_s24 + $0x168] sm:$0xff]  }
  0x5d   : > { %9112 = vmatprep.mubr.bf16.mxu0 %v9656_v36  ;;  %9368 = vmatprep.mubr.bf16.mxu1 %v9657_v37  ;;  %v9719_v35 = vld [vmem:[%s9942_s24 + $0x568] sm:$0xff]   ;;  %v9720_v36 = vld [vmem:[%s9942_s24 + $0x170] sm:$0xff]  }
  0x5e   : > { %v9721_v37 = vld [vmem:[%s9942_s24 + $0x570] sm:$0xff]  }
  0x64   : > { %9113 = vmatmul.mubr.bf16.gmra.mxu0 %v9658_v38  ;;  %9369 = vmatmul.mubr.bf16.gmra.mxu1 %v9659_v39  ;;  %v9722_v38 = vld [vmem:[%s9942_s24 + $0x178] sm:$0xff]  }
  0x65   : > { %9116 = vmatprep.mubr.bf16.mxu0 %v9660_v40  ;;  %9372 = vmatprep.mubr.bf16.mxu1 %v9661_v41  ;;  %v9723_v39 = vld [vmem:[%s9942_s24 + $0x578] sm:$0xff]   ;;  %v9724_v40 = vld [vmem:[%s9942_s24 + $0x180] sm:$0xff]  }
  0x66   : > { %v9725_v41 = vld [vmem:[%s9942_s24 + $0x580] sm:$0xff]  }
  0x6c   : > { %9117 = vmatmul.mubr.bf16.gmra.mxu0 %v9662_v42  ;;  %9373 = vmatmul.mubr.bf16.gmra.mxu1 %v9663_v43  ;;  %v9726_v42 = vld [vmem:[%s9942_s24 + $0x188] sm:$0xff]  }
  0x6d   : > { %9120 = vmatprep.mubr.bf16.mxu0 %v9664_v44  ;;  %9376 = vmatprep.mubr.bf16.mxu1 %v9665_v45  ;;  %v9727_v43 = vld [vmem:[%s9942_s24 + $0x588] sm:$0xff]   ;;  %v9728_v44 = vld [vmem:[%s9942_s24 + $0x190] sm:$0xff]  }
  0x6e   : > { %v9729_v45 = vld [vmem:[%s9942_s24 + $0x590] sm:$0xff]  }
  0x74   : > { %9121 = vmatmul.mubr.bf16.gmra.mxu0 %v9666_v46  ;;  %9377 = vmatmul.mubr.bf16.gmra.mxu1 %v9667_v47  ;;  %v10064_v46 = vld [vmem:[%s11793_s2] ss:$0 sm:$0xff] }
  0x75   : > { %9124 = vmatprep.mubr.bf16.mxu0 %v9668_v48  ;;  %9380 = vmatprep.mubr.bf16.mxu1 %v9669_v49 }
  0x7c   : > { %9125 = vmatmul.mubr.bf16.gmra.mxu0 %v9670_v50  ;;  %9381 = vmatmul.mubr.bf16.gmra.mxu1 %v9671_v51 }
  0x7d   : > { %9128 = vmatprep.mubr.bf16.mxu0 %v9672_v52  ;;  %9384 = vmatprep.mubr.bf16.mxu1 %v9673_v53  ;;  %v9730_v53 = vld [vmem:[%s9942_s24 + $0x198] sm:$0xff]  }
  0x84   : > { %9129 = vmatmul.mubr.bf16.gmra.mxu0 %v9674_v54  ;;  %9385 = vmatmul.mubr.bf16.gmra.mxu1 %v9675_v55  ;;  %v9731_v54 = vld [vmem:[%s9942_s24 + $0x598] sm:$0xff]  }
  0x85   : > { %9132 = vmatprep.mubr.bf16.mxu0 %v9676_v56  ;;  %9388 = vmatprep.mubr.bf16.mxu1 %v9677_v57 }
  0x8c   : > { %9133 = vmatmul.mubr.bf16.gmra.mxu0 %v9678_v58  ;;  %9389 = vmatmul.mubr.bf16.gmra.mxu1 %v9679_v59  ;;  %v9732_v59 = vld [vmem:[%s9942_s24 + $0x1a0] sm:$0xff]  }
  0x8d   : > { %9136 = vmatprep.mubr.bf16.mxu0 %v9680_v60  ;;  %9392 = vmatprep.mubr.bf16.mxu1 %v9681_v61  ;;  %v9733_v60 = vld [vmem:[%s9942_s24 + $0x5a0] sm:$0xff]  }
  0x94   : > { %9137 = vmatmul.mubr.bf16.gmra.mxu0 %v9682_v62  ;;  %9393 = vmatmul.mubr.bf16.gmra.mxu1 %v9683_v63 }
  0x95   : > { %9140 = vmatprep.mubr.bf16.mxu0 %v9684_v0  ;;  %9396 = vmatprep.mubr.bf16.mxu1 %v9685_v1 }
  0x9c   : > { %9141 = vmatmul.mubr.bf16.gmra.mxu0 %v9686_v2  ;;  %9397 = vmatmul.mubr.bf16.gmra.mxu1 %v9687_v3 }
  0x9d   : > { %9144 = vmatprep.mubr.bf16.mxu0 %v9688_v4  ;;  %9400 = vmatprep.mubr.bf16.mxu1 %v9689_v5 }
  0xa4   : > { %9145 = vmatmul.mubr.bf16.gmra.mxu0 %v9690_v6  ;;  %9401 = vmatmul.mubr.bf16.gmra.mxu1 %v9691_v7 }
  0xa5   : > { %9148 = vmatprep.mubr.bf16.mxu0 %v9692_v8  ;;  %9404 = vmatprep.mubr.bf16.mxu1 %v9693_v9 }
  0xac   : > { %9149 = vmatmul.mubr.bf16.gmra.mxu0 %v9694_v10  ;;  %9405 = vmatmul.mubr.bf16.gmra.mxu1 %v9695_v11 }
  0xad   : > { %9152 = vmatprep.mubr.bf16.mxu0 %v9696_v12  ;;  %9408 = vmatprep.mubr.bf16.mxu1 %v9697_v13 }
  0xb4   : > { %9153 = vmatmul.mubr.bf16.gmra.mxu0 %v9698_v14  ;;  %9409 = vmatmul.mubr.bf16.gmra.mxu1 %v9699_v15 }
  0xb5   : > { %9156 = vmatprep.mubr.bf16.mxu0 %v9700_v16  ;;  %9412 = vmatprep.mubr.bf16.mxu1 %v9701_v17 }
  0xbc   : > { %9157 = vmatmul.mubr.bf16.gmra.mxu0 %v9702_v18  ;;  %9413 = vmatmul.mubr.bf16.gmra.mxu1 %v9703_v19 }
  0xbd   : > { %9160 = vmatprep.mubr.bf16.mxu0 %v9704_v20  ;;  %9416 = vmatprep.mubr.bf16.mxu1 %v9705_v21 }
  0xc4   : > { %9161 = vmatmul.mubr.bf16.gmra.mxu0 %v9706_v22  ;;  %9417 = vmatmul.mubr.bf16.gmra.mxu1 %v9707_v23 }
  0xc5   : > { %9164 = vmatprep.mubr.bf16.mxu0 %v9708_v24  ;;  %9420 = vmatprep.mubr.bf16.mxu1 %v9709_v25 }
  0xcc   : > { %9165 = vmatmul.mubr.bf16.gmra.mxu0 %v9710_v26  ;;  %9421 = vmatmul.mubr.bf16.gmra.mxu1 %v9711_v27 }
  0xcd   : > { %9168 = vmatprep.mubr.bf16.mxu0 %v9712_v28  ;;  %9424 = vmatprep.mubr.bf16.mxu1 %v9713_v29 }
  0xd4   : > { %9169 = vmatmul.mubr.bf16.gmra.mxu0 %v9714_v30  ;;  %9425 = vmatmul.mubr.bf16.gmra.mxu1 %v9715_v31  ;;  %v9734_v31 = vld [vmem:[%s9942_s24 + $0x1a8] sm:$0xff]  }
  0xd5   : > { %9172 = vmatprep.mubr.bf16.mxu0 %v9716_v32  ;;  %9428 = vmatprep.mubr.bf16.mxu1 %v9717_v33  ;;  %v9735_v32 = vld [vmem:[%s9942_s24 + $0x5a8] sm:$0xff]  }
  0xdc   : > { %9173 = vmatmul.mubr.bf16.gmra.mxu0 %v9718_v34  ;;  %9429 = vmatmul.mubr.bf16.gmra.mxu1 %v9719_v35 }
  0xdd   : > { %9176 = vmatprep.mubr.bf16.mxu0 %v9720_v36  ;;  %9432 = vmatprep.mubr.bf16.mxu1 %v9721_v37  ;;  %v9736_v37 = vld [vmem:[%s9942_s24 + $0x1b0] sm:$0xff]  }
  0xe4   : > { %9177 = vmatmul.mubr.bf16.gmra.mxu0 %v9722_v38  ;;  %9433 = vmatmul.mubr.bf16.gmra.mxu1 %v9723_v39  ;;  %v9737_v38 = vld [vmem:[%s9942_s24 + $0x5b0] sm:$0xff]  }
  0xe5   : > { %9180 = vmatprep.mubr.bf16.mxu0 %v9724_v40  ;;  %9436 = vmatprep.mubr.bf16.mxu1 %v9725_v41 }
  0xec   : > { %v9086_v47 = vpop.f32.mrf.mxu0  ;;  %9181 = vmatmul.mubr.bf16.gmra.mxu0 %v9726_v42  ;;  %v9342_v48 = vpop.f32.mrf.mxu1  ;;  %9437 = vmatmul.mubr.bf16.gmra.mxu1 %v9727_v43 }
  0xed   : > { %v2337_v49 = vadd.f32 %v9086_v47, %v10064_v46  ;;  %v3361_v50 = vadd.f32 %v9342_v48, %v10064_v46  ;;  %9184 = vmatprep.mubr.bf16.mxu0 %v9728_v44  ;;  %9440 = vmatprep.mubr.bf16.mxu1 %v9729_v45 }
  0xee   : > { %v2328_v51 = vpop.f32.mrf.mxu0  ;;  %v3352_v52 = vpop.f32.mrf.mxu1 }
  0xef   : > { %v4377_v55 = vmax.f32 %v2337_v49, 0.0  ;;  %v4633_v56 = vmax.f32 %v3361_v50, 0.0  ;;  %v2329_v57 = vadd.f32 %v10064_v46, %v2328_v51  ;;  %v3353_v58 = vadd.f32 %v10064_v46, %v3352_v52 }
  0xf0   : > { %v9087_v61 = vpop.f32.mrf.mxu0  ;;  %v9343_v62 = vpop.f32.mrf.mxu1 }
  0xf1   : > { %v8294_v63 = vpack.c.bf16 %v4377_v55, %v4377_v55  ;;  %v8550_v0 = vpack.c.bf16 %v4633_v56, %v4633_v56  ;;  %v4375_v1 = vmax.f32 %v2329_v57, 0.0  ;;  %v4631_v2 = vmax.f32 %v3353_v58, 0.0 }
  0xf2   : > { %v2340_v3 = vadd.f32 %v9087_v61, %v10064_v46  ;;  %v3364_v4 = vadd.f32 %v9343_v62, %v10064_v46  ;;  %v2331_v5 = vpop.f32.mrf.mxu0  ;;  %v3355_v6 = vpop.f32.mrf.mxu1 }
  0xf3   : > { %6938 = vst.msk [vmem:[%s10079_s13 + $0x8] sm:$0xf] %vm6935_vm0, %v8294_v63  ;;  %7194 = vst.msk [vmem:[%s10079_s13 + $0x408] sm:$0xf] %vm6935_vm0, %v8550_v0  ;;  %v8292_v7 = vpack.c.bf16 %v4375_v1, %v4375_v1  ;;  %v8548_v8 = vpack.c.bf16 %v4631_v2, %v4631_v2  ;;  %v2332_v9 = vadd.f32 %v10064_v46, %v2331_v5  ;;  %v9739_v5 = vld [vmem:[%s9942_s24 + $0x5b8] sm:$0xff]  }
  0xf4   : > { %v3356_v10 = vadd.f32 %v10064_v46, %v3355_v6  ;;  %v4378_v11 = vmax.f32 %v2340_v3, 0.0  ;;  %v4634_v12 = vmax.f32 %v3364_v4, 0.0  ;;  %v9090_v13 = vpop.f32.mrf.mxu0  ;;  %9185 = vmatmul.mubr.bf16.gmra.mxu0 %v9730_v53  ;;  %v9346_v14 = vpop.f32.mrf.mxu1  ;;  %9441 = vmatmul.mubr.bf16.gmra.mxu1 %v9731_v54  ;;  %v9738_v4 = vld [vmem:[%s9942_s24 + $0x1b8] sm:$0xff]  }
  0xf5   : > { %6936 = vst.msk [vmem:[%s10079_s13] sm:$0xf] %vm6935_vm0, %v8292_v7  ;;  %7192 = vst.msk [vmem:[%s10079_s13 + $0x400] sm:$0xf] %vm6935_vm0, %v8548_v8  ;;  %v4376_v15 = vmax.f32 %v2332_v9, 0.0  ;;  %v2353_v17 = vadd.f32 %v9090_v13, %v10064_v46  ;;  %v3377_v18 = vadd.f32 %v9346_v14, %v10064_v46  ;;  %9188 = vmatprep.mubr.bf16.mxu0 %v9732_v59  ;;  %9444 = vmatprep.mubr.bf16.mxu1 %v9733_v60 }
  0xf6   : > { %v4632_v16 = vmax.f32 %v3356_v10, 0.0  ;;  %v8295_v19 = vpack.c.bf16 %v4378_v11, %v4378_v11  ;;  %v8551_v20 = vpack.c.bf16 %v4634_v12, %v4634_v12  ;;  %v2344_v21 = vpop.f32.mrf.mxu0  ;;  %v3368_v22 = vpop.f32.mrf.mxu1  ;;  %v9740_v10 = vld [vmem:[%s9942_s24 + $0x1c0] sm:$0xff]  }
  0xf7   : > { %v8293_v23 = vpack.c.bf16 %v4376_v15, %v4376_v15  ;;  %v4381_v25 = vmax.f32 %v2353_v17, 0.0  ;;  %v4637_v26 = vmax.f32 %v3377_v18, 0.0  ;;  %v2345_v27 = vadd.f32 %v10064_v46, %v2344_v21  ;;  %v9741_v15 = vld [vmem:[%s9942_s24 + $0x5c0] sm:$0xff]  }
  0xf8   : > { %v8549_v24 = vpack.c.bf16 %v4632_v16, %v4632_v16  ;;  %6939 = vst.msk [vmem:[%s10079_s13 + $0xc] sm:$0xf] %vm6935_vm0, %v8295_v19  ;;  %7195 = vst.msk [vmem:[%s10079_s13 + $0x40c] sm:$0xf] %vm6935_vm0, %v8551_v20  ;;  %v3369_v28 = vadd.f32 %v10064_v46, %v3368_v22  ;;  %v9091_v29 = vpop.f32.mrf.mxu0  ;;  %v9347_v30 = vpop.f32.mrf.mxu1 }
  0xf9   : > { %6937 = vst.msk [vmem:[%s10079_s13 + $0x4] sm:$0xf] %vm6935_vm0, %v8293_v23  ;;  %v8298_v33 = vpack.c.bf16 %v4381_v25, %v4381_v25  ;;  %v8554_v34 = vpack.c.bf16 %v4637_v26, %v4637_v26  ;;  %v2356_v35 = vadd.f32 %v9091_v29, %v10064_v46  ;;  %v3380_v36 = vadd.f32 %v9347_v30, %v10064_v46 }
  0xfa   : > { %7193 = vst.msk [vmem:[%s10079_s13 + $0x404] sm:$0xf] %vm6935_vm0, %v8549_v24  ;;  %v4379_v39 = vmax.f32 %v2345_v27, 0.0  ;;  %v4635_v40 = vmax.f32 %v3369_v28, 0.0  ;;  %v2347_v41 = vpop.f32.mrf.mxu0  ;;  %v3371_v42 = vpop.f32.mrf.mxu1 }
  0xfb   : > { %6942 = vst.msk [vmem:[%s10079_s13 + $0x18] sm:$0xf] %vm6935_vm0, %v8298_v33  ;;  %7198 = vst.msk [vmem:[%s10079_s13 + $0x418] sm:$0xf] %vm6935_vm0, %v8554_v34  ;;  %v4382_v43 = vmax.f32 %v2356_v35, 0.0  ;;  %v4638_v44 = vmax.f32 %v3380_v36, 0.0  ;;  %v2348_v45 = vadd.f32 %v10064_v46, %v2347_v41  ;;  %v3372_v47 = vadd.f32 %v10064_v46, %v3371_v42 }
  0xfc   : > { %v8296_v48 = vpack.c.bf16 %v4379_v39, %v4379_v39  ;;  %v8552_v49 = vpack.c.bf16 %v4635_v40, %v4635_v40  ;;  %v9094_v50 = vpop.f32.mrf.mxu0  ;;  %9189 = vmatmul.mubr.bf16.gmra.mxu0 %v9734_v31  ;;  %v9350_v51 = vpop.f32.mrf.mxu1  ;;  %9445 = vmatmul.mubr.bf16.gmra.mxu1 %v9735_v32  ;;  %v9742_v40 = vld [vmem:[%s9942_s24 + $0x1c8] sm:$0xff]  }
  0xfd   : > { %v8299_v52 = vpack.c.bf16 %v4382_v43, %v4382_v43  ;;  %v8555_v53 = vpack.c.bf16 %v4638_v44, %v4638_v44  ;;  %v4380_v54 = vmax.f32 %v2348_v45, 0.0  ;;  %v4636_v55 = vmax.f32 %v3372_v47, 0.0  ;;  %9192 = vmatprep.mubr.bf16.mxu0 %v9736_v37  ;;  %9448 = vmatprep.mubr.bf16.mxu1 %v9737_v38  ;;  %v9743_v41 = vld [vmem:[%s9942_s24 + $0x5c8] sm:$0xff]   ;;  %v9744_v47 = vld [vmem:[%s9942_s24 + $0x1d0] sm:$0xff]  }
  0xfe   : > { %6940 = vst.msk [vmem:[%s10079_s13 + $0x10] sm:$0xf] %vm6935_vm0, %v8296_v48  ;;  %7196 = vst.msk [vmem:[%s10079_s13 + $0x410] sm:$0xf] %vm6935_vm0, %v8552_v49  ;;  %v2369_v56 = vadd.f32 %v9094_v50, %v10064_v46  ;;  %v3393_v57 = vadd.f32 %v9350_v51, %v10064_v46  ;;  %v2360_v58 = vpop.f32.mrf.mxu0  ;;  %v3384_v59 = vpop.f32.mrf.mxu1  ;;  %v9745_v48 = vld [vmem:[%s9942_s24 + $0x5d0] sm:$0xff]  }
  0xff   : > { %6943 = vst.msk [vmem:[%s10079_s13 + $0x1c] sm:$0xf] %vm6935_vm0, %v8299_v52  ;;  %7199 = vst.msk [vmem:[%s10079_s13 + $0x41c] sm:$0xf] %vm6935_vm0, %v8555_v53  ;;  %v8297_v60 = vpack.c.bf16 %v4380_v54, %v4380_v54  ;;  %v8553_v61 = vpack.c.bf16 %v4636_v55, %v4636_v55  ;;  %v2361_v62 = vadd.f32 %v10064_v46, %v2360_v58 }
 0x100   : > { %v3385_v63 = vadd.f32 %v10064_v46, %v3384_v59  ;;  %v4385_v0 = vmax.f32 %v2369_v56, 0.0  ;;  %v4641_v1 = vmax.f32 %v3393_v57, 0.0  ;;  %v9095_v2 = vpop.f32.mrf.mxu0  ;;  %v9351_v3 = vpop.f32.mrf.mxu1 }
 0x101   : > { %6941 = vst.msk [vmem:[%s10079_s13 + $0x14] sm:$0xf] %vm6935_vm0, %v8297_v60  ;;  %7197 = vst.msk [vmem:[%s10079_s13 + $0x414] sm:$0xf] %vm6935_vm0, %v8553_v61  ;;  %v4383_v6 = vmax.f32 %v2361_v62, 0.0  ;;  %v2372_v8 = vadd.f32 %v9095_v2, %v10064_v46  ;;  %v3396_v9 = vadd.f32 %v9351_v3, %v10064_v46 }
 0x102   : > { %v4639_v7 = vmax.f32 %v3385_v63, 0.0  ;;  %v8302_v11 = vpack.c.bf16 %v4385_v0, %v4385_v0  ;;  %v8558_v12 = vpack.c.bf16 %v4641_v1, %v4641_v1  ;;  %v2363_v13 = vpop.f32.mrf.mxu0  ;;  %v3387_v14 = vpop.f32.mrf.mxu1 }
 0x103   : > { %v8300_v16 = vpack.c.bf16 %v4383_v6, %v4383_v6  ;;  %v4386_v18 = vmax.f32 %v2372_v8, 0.0  ;;  %v4642_v19 = vmax.f32 %v3396_v9, 0.0  ;;  %v2364_v20 = vadd.f32 %v10064_v46, %v2363_v13  ;;  %v9746_v13 = vld [vmem:[%s9942_s24 + $0x1d8] sm:$0xff]  }
 0x104   : > { %v8556_v17 = vpack.c.bf16 %v4639_v7, %v4639_v7  ;;  %6946 = vst.msk [vmem:[%s10079_s13 + $0x28] sm:$0xf] %vm6935_vm0, %v8302_v11  ;;  %7202 = vst.msk [vmem:[%s10079_s13 + $0x428] sm:$0xf] %vm6935_vm0, %v8558_v12  ;;  %v3388_v21 = vadd.f32 %v10064_v46, %v3387_v14  ;;  %v9098_v22 = vpop.f32.mrf.mxu0  ;;  %9193 = vmatmul.mubr.bf16.gmra.mxu0 %v9738_v4  ;;  %v9354_v23 = vpop.f32.mrf.mxu1  ;;  %9449 = vmatmul.mubr.bf16.gmra.mxu1 %v9739_v5  ;;  %v9747_v14 = vld [vmem:[%s9942_s24 + $0x5d8] sm:$0xff]  }
 0x105   : > { %6944 = vst.msk [vmem:[%s10079_s13 + $0x20] sm:$0xf] %vm6935_vm0, %v8300_v16  ;;  %v8303_v24 = vpack.c.bf16 %v4386_v18, %v4386_v18  ;;  %v8559_v25 = vpack.c.bf16 %v4642_v19, %v4642_v19  ;;  %v2385_v26 = vadd.f32 %v9098_v22, %v10064_v46  ;;  %v3409_v27 = vadd.f32 %v9354_v23, %v10064_v46  ;;  %v9748_v19 = vld [vmem:[%s9942_s24 + $0x1e0] sm:$0xff]  }
 0x106   : > { %7200 = vst.msk [vmem:[%s10079_s13 + $0x420] sm:$0xf] %vm6935_vm0, %v8556_v17  ;;  %9196 = vmatprep.mubr.bf16.mxu0 %v9740_v10  ;;  %v4384_v28 = vmax.f32 %v2364_v20, 0.0  ;;  %v4640_v29 = vmax.f32 %v3388_v21, 0.0  ;;  %v2376_v30 = vpop.f32.mrf.mxu0  ;;  %v3400_v31 = vpop.f32.mrf.mxu1  ;;  %9452 = vmatprep.mubr.bf16.mxu1 %v9741_v15  ;;  %v9749_v20 = vld [vmem:[%s9942_s24 + $0x5e0] sm:$0xff]  }
 0x107   : > { %6947 = vst.msk [vmem:[%s10079_s13 + $0x2c] sm:$0xf] %vm6935_vm0, %v8303_v24  ;;  %7203 = vst.msk [vmem:[%s10079_s13 + $0x42c] sm:$0xf] %vm6935_vm0, %v8559_v25  ;;  %v4389_v32 = vmax.f32 %v2385_v26, 0.0  ;;  %v4645_v33 = vmax.f32 %v3409_v27, 0.0  ;;  %v2377_v34 = vadd.f32 %v10064_v46, %v2376_v30  ;;  %v3401_v35 = vadd.f32 %v10064_v46, %v3400_v31 }
 0x108   : > { %v8301_v36 = vpack.c.bf16 %v4384_v28, %v4384_v28  ;;  %v8557_v37 = vpack.c.bf16 %v4640_v29, %v4640_v29  ;;  %v9099_v38 = vpop.f32.mrf.mxu0  ;;  %v9355_v39 = vpop.f32.mrf.mxu1 }
 0x109   : > { %v8306_v42 = vpack.c.bf16 %v4389_v32, %v4389_v32  ;;  %v8562_v43 = vpack.c.bf16 %v4645_v33, %v4645_v33  ;;  %v4387_v44 = vmax.f32 %v2377_v34, 0.0  ;;  %v4643_v45 = vmax.f32 %v3401_v35, 0.0 }
 0x10a   : > { %6945 = vst.msk [vmem:[%s10079_s13 + $0x24] sm:$0xf] %vm6935_vm0, %v8301_v36  ;;  %7201 = vst.msk [vmem:[%s10079_s13 + $0x424] sm:$0xf] %vm6935_vm0, %v8557_v37  ;;  %v2388_v49 = vadd.f32 %v9099_v38, %v10064_v46  ;;  %v3412_v50 = vadd.f32 %v9355_v39, %v10064_v46  ;;  %v2379_v51 = vpop.f32.mrf.mxu0  ;;  %v3403_v52 = vpop.f32.mrf.mxu1 }
 0x10b   : > { %6950 = vst.msk [vmem:[%s10079_s13 + $0x38] sm:$0xf] %vm6935_vm0, %v8306_v42  ;;  %7206 = vst.msk [vmem:[%s10079_s13 + $0x438] sm:$0xf] %vm6935_vm0, %v8562_v43  ;;  %v8304_v53 = vpack.c.bf16 %v4387_v44, %v4387_v44  ;;  %v8560_v54 = vpack.c.bf16 %v4643_v45, %v4643_v45  ;;  %v2380_v55 = vadd.f32 %v10064_v46, %v2379_v51  ;;  %v9751_v51 = vld [vmem:[%s9942_s24 + $0x5e8] sm:$0xff]  }
 0x10c   : > { %v3404_v56 = vadd.f32 %v10064_v46, %v3403_v52  ;;  %v4390_v57 = vmax.f32 %v2388_v49, 0.0  ;;  %v4646_v58 = vmax.f32 %v3412_v50, 0.0  ;;  %v9102_v59 = vpop.f32.mrf.mxu0  ;;  %9197 = vmatmul.mubr.bf16.gmra.mxu0 %v9742_v40  ;;  %v9358_v60 = vpop.f32.mrf.mxu1  ;;  %9453 = vmatmul.mubr.bf16.gmra.mxu1 %v9743_v41  ;;  %v9750_v50 = vld [vmem:[%s9942_s24 + $0x1e8] sm:$0xff]  }
 0x10d   : > { %6948 = vst.msk [vmem:[%s10079_s13 + $0x30] sm:$0xf] %vm6935_vm0, %v8304_v53  ;;  %7204 = vst.msk [vmem:[%s10079_s13 + $0x430] sm:$0xf] %vm6935_vm0, %v8560_v54  ;;  %v4388_v61 = vmax.f32 %v2380_v55, 0.0  ;;  %v2401_v63 = vadd.f32 %v9102_v59, %v10064_v46  ;;  %v3425_v0 = vadd.f32 %v9358_v60, %v10064_v46  ;;  %9200 = vmatprep.mubr.bf16.mxu0 %v9744_v47  ;;  %9456 = vmatprep.mubr.bf16.mxu1 %v9745_v48 }
 0x10e   : > { %v4644_v62 = vmax.f32 %v3404_v56, 0.0  ;;  %v8307_v1 = vpack.c.bf16 %v4390_v57, %v4390_v57  ;;  %v8563_v2 = vpack.c.bf16 %v4646_v58, %v4646_v58  ;;  %v2392_v3 = vpop.f32.mrf.mxu0  ;;  %v3416_v4 = vpop.f32.mrf.mxu1  ;;  %v9752_v56 = vld [vmem:[%s9942_s24 + $0x1f0] sm:$0xff]  }
 0x10f   : > { %v8305_v5 = vpack.c.bf16 %v4388_v61, %v4388_v61  ;;  %v4393_v7 = vmax.f32 %v2401_v63, 0.0  ;;  %v4649_v8 = vmax.f32 %v3425_v0, 0.0  ;;  %v2393_v9 = vadd.f32 %v10064_v46, %v2392_v3  ;;  %v9753_v61 = vld [vmem:[%s9942_s24 + $0x5f0] sm:$0xff]  }
 0x110   : > { %v8561_v6 = vpack.c.bf16 %v4644_v62, %v4644_v62  ;;  %6951 = vst.msk [vmem:[%s10079_s13 + $0x3c] sm:$0xf] %vm6935_vm0, %v8307_v1  ;;  %7207 = vst.msk [vmem:[%s10079_s13 + $0x43c] sm:$0xf] %vm6935_vm0, %v8563_v2  ;;  %v3417_v10 = vadd.f32 %v10064_v46, %v3416_v4  ;;  %v9103_v11 = vpop.f32.mrf.mxu0  ;;  %v9359_v12 = vpop.f32.mrf.mxu1 }
 0x111   : > { %6949 = vst.msk [vmem:[%s10079_s13 + $0x34] sm:$0xf] %vm6935_vm0, %v8305_v5  ;;  %v8310_v15 = vpack.c.bf16 %v4393_v7, %v4393_v7  ;;  %v8566_v16 = vpack.c.bf16 %v4649_v8, %v4649_v8  ;;  %v2404_v17 = vadd.f32 %v9103_v11, %v10064_v46  ;;  %v3428_v18 = vadd.f32 %v9359_v12, %v10064_v46 }
 0x112   : > { %7205 = vst.msk [vmem:[%s10079_s13 + $0x434] sm:$0xf] %vm6935_vm0, %v8561_v6  ;;  %v4391_v21 = vmax.f32 %v2393_v9, 0.0  ;;  %v4647_v22 = vmax.f32 %v3417_v10, 0.0  ;;  %v2395_v23 = vpop.f32.mrf.mxu0  ;;  %v3419_v24 = vpop.f32.mrf.mxu1 }
 0x113   : > { %6954 = vst.msk [vmem:[%s10079_s13 + $0x48] sm:$0xf] %vm6935_vm0, %v8310_v15  ;;  %7210 = vst.msk [vmem:[%s10079_s13 + $0x448] sm:$0xf] %vm6935_vm0, %v8566_v16  ;;  %v4394_v25 = vmax.f32 %v2404_v17, 0.0  ;;  %v4650_v26 = vmax.f32 %v3428_v18, 0.0  ;;  %v2396_v27 = vadd.f32 %v10064_v46, %v2395_v23  ;;  %v3420_v28 = vadd.f32 %v10064_v46, %v3419_v24 }
 0x114   : > { %v8308_v29 = vpack.c.bf16 %v4391_v21, %v4391_v21  ;;  %v8564_v30 = vpack.c.bf16 %v4647_v22, %v4647_v22  ;;  %v9106_v31 = vpop.f32.mrf.mxu0  ;;  %9201 = vmatmul.mubr.bf16.gmra.mxu0 %v9746_v13  ;;  %v9362_v32 = vpop.f32.mrf.mxu1  ;;  %9457 = vmatmul.mubr.bf16.gmra.mxu1 %v9747_v14  ;;  %v9754_v22 = vld [vmem:[%s9942_s24 + $0x1f8] sm:$0xff]  }
 0x115   : > { %v8311_v33 = vpack.c.bf16 %v4394_v25, %v4394_v25  ;;  %v8567_v34 = vpack.c.bf16 %v4650_v26, %v4650_v26  ;;  %v4392_v35 = vmax.f32 %v2396_v27, 0.0  ;;  %v4648_v36 = vmax.f32 %v3420_v28, 0.0  ;;  %9204 = vmatprep.mubr.bf16.mxu0 %v9748_v19  ;;  %9460 = vmatprep.mubr.bf16.mxu1 %v9749_v20  ;;  %v9755_v23 = vld [vmem:[%s9942_s24 + $0x5f8] sm:$0xff]   ;;  %v9756_v28 = vld [vmem:[%s9942_s24 + $0x200] sm:$0xff]  }
 0x116   : > { %6952 = vst.msk [vmem:[%s10079_s13 + $0x40] sm:$0xf] %vm6935_vm0, %v8308_v29  ;;  %7208 = vst.msk [vmem:[%s10079_s13 + $0x440] sm:$0xf] %vm6935_vm0, %v8564_v30  ;;  %v2417_v37 = vadd.f32 %v9106_v31, %v10064_v46  ;;  %v3441_v38 = vadd.f32 %v9362_v32, %v10064_v46  ;;  %v2408_v39 = vpop.f32.mrf.mxu0  ;;  %v3432_v40 = vpop.f32.mrf.mxu1  ;;  %v9757_v29 = vld [vmem:[%s9942_s24 + $0x600] sm:$0xff]  }
 0x117   : > { %6955 = vst.msk [vmem:[%s10079_s13 + $0x4c] sm:$0xf] %vm6935_vm0, %v8311_v33  ;;  %7211 = vst.msk [vmem:[%s10079_s13 + $0x44c] sm:$0xf] %vm6935_vm0, %v8567_v34  ;;  %v8309_v41 = vpack.c.bf16 %v4392_v35, %v4392_v35  ;;  %v8565_v42 = vpack.c.bf16 %v4648_v36, %v4648_v36  ;;  %v2409_v43 = vadd.f32 %v10064_v46, %v2408_v39 }
 0x118   : > { %v3433_v44 = vadd.f32 %v10064_v46, %v3432_v40  ;;  %v4397_v45 = vmax.f32 %v2417_v37, 0.0  ;;  %v4653_v47 = vmax.f32 %v3441_v38, 0.0  ;;  %v9107_v48 = vpop.f32.mrf.mxu0  ;;  %v9363_v49 = vpop.f32.mrf.mxu1 }
 0x119   : > { %6953 = vst.msk [vmem:[%s10079_s13 + $0x44] sm:$0xf] %vm6935_vm0, %v8309_v41  ;;  %7209 = vst.msk [vmem:[%s10079_s13 + $0x444] sm:$0xf] %vm6935_vm0, %v8565_v42  ;;  %v4395_v52 = vmax.f32 %v2409_v43, 0.0  ;;  %v2420_v54 = vadd.f32 %v9107_v48, %v10064_v46  ;;  %v3444_v55 = vadd.f32 %v9363_v49, %v10064_v46 }
 0x11a   : > { %v4651_v53 = vmax.f32 %v3433_v44, 0.0  ;;  %v8314_v57 = vpack.c.bf16 %v4397_v45, %v4397_v45  ;;  %v8570_v58 = vpack.c.bf16 %v4653_v47, %v4653_v47  ;;  %v2411_v59 = vpop.f32.mrf.mxu0  ;;  %v3435_v60 = vpop.f32.mrf.mxu1 }
 0x11b   : > { %v8312_v62 = vpack.c.bf16 %v4395_v52, %v4395_v52  ;;  %v4398_v0 = vmax.f32 %v2420_v54, 0.0  ;;  %v4654_v1 = vmax.f32 %v3444_v55, 0.0  ;;  %v2412_v2 = vadd.f32 %v10064_v46, %v2411_v59  ;;  %v9758_v59 = vld [vmem:[%s9942_s24 + $0x208] sm:$0xff]  }
 0x11c   : > { %v8568_v63 = vpack.c.bf16 %v4651_v53, %v4651_v53  ;;  %6958 = vst.msk [vmem:[%s10079_s13 + $0x58] sm:$0xf] %vm6935_vm0, %v8314_v57  ;;  %7214 = vst.msk [vmem:[%s10079_s13 + $0x458] sm:$0xf] %vm6935_vm0, %v8570_v58  ;;  %v3436_v3 = vadd.f32 %v10064_v46, %v3435_v60  ;;  %v9110_v4 = vpop.f32.mrf.mxu0  ;;  %9205 = vmatmul.mubr.bf16.gmra.mxu0 %v9750_v50  ;;  %v9366_v5 = vpop.f32.mrf.mxu1  ;;  %9461 = vmatmul.mubr.bf16.gmra.mxu1 %v9751_v51  ;;  %v9759_v60 = vld [vmem:[%s9942_s24 + $0x608] sm:$0xff]  }
 0x11d   : > { %6956 = vst.msk [vmem:[%s10079_s13 + $0x50] sm:$0xf] %vm6935_vm0, %v8312_v62  ;;  %v8315_v6 = vpack.c.bf16 %v4398_v0, %v4398_v0  ;;  %v8571_v7 = vpack.c.bf16 %v4654_v1, %v4654_v1  ;;  %v2433_v8 = vadd.f32 %v9110_v4, %v10064_v46  ;;  %v3457_v9 = vadd.f32 %v9366_v5, %v10064_v46  ;;  %v9760_v1 = vld [vmem:[%s9942_s24 + $0x210] sm:$0xff]  }
 0x11e   : > { %7212 = vst.msk [vmem:[%s10079_s13 + $0x450] sm:$0xf] %vm6935_vm0, %v8568_v63  ;;  %9208 = vmatprep.mubr.bf16.mxu0 %v9752_v56  ;;  %v4396_v10 = vmax.f32 %v2412_v2, 0.0  ;;  %v4652_v11 = vmax.f32 %v3436_v3, 0.0  ;;  %v2424_v12 = vpop.f32.mrf.mxu0  ;;  %v3448_v13 = vpop.f32.mrf.mxu1  ;;  %9464 = vmatprep.mubr.bf16.mxu1 %v9753_v61  ;;  %v9761_v2 = vld [vmem:[%s9942_s24 + $0x610] sm:$0xff]  }
 0x11f   : > { %6959 = vst.msk [vmem:[%s10079_s13 + $0x5c] sm:$0xf] %vm6935_vm0, %v8315_v6  ;;  %7215 = vst.msk [vmem:[%s10079_s13 + $0x45c] sm:$0xf] %vm6935_vm0, %v8571_v7  ;;  %v4401_v14 = vmax.f32 %v2433_v8, 0.0  ;;  %v4657_v15 = vmax.f32 %v3457_v9, 0.0  ;;  %v2425_v16 = vadd.f32 %v10064_v46, %v2424_v12  ;;  %v3449_v17 = vadd.f32 %v10064_v46, %v3448_v13 }
 0x120   : > { %v8313_v18 = vpack.c.bf16 %v4396_v10, %v4396_v10  ;;  %v8569_v19 = vpack.c.bf16 %v4652_v11, %v4652_v11  ;;  %v9111_v20 = vpop.f32.mrf.mxu0  ;;  %v9367_v21 = vpop.f32.mrf.mxu1 }
 0x121   : > { %v8318_v24 = vpack.c.bf16 %v4401_v14, %v4401_v14  ;;  %v8574_v25 = vpack.c.bf16 %v4657_v15, %v4657_v15  ;;  %v4399_v26 = vmax.f32 %v2425_v16, 0.0  ;;  %v4655_v27 = vmax.f32 %v3449_v17, 0.0 }
 0x122   : > { %6957 = vst.msk [vmem:[%s10079_s13 + $0x54] sm:$0xf] %vm6935_vm0, %v8313_v18  ;;  %7213 = vst.msk [vmem:[%s10079_s13 + $0x454] sm:$0xf] %vm6935_vm0, %v8569_v19  ;;  %v2436_v30 = vadd.f32 %v9111_v20, %v10064_v46  ;;  %v3460_v31 = vadd.f32 %v9367_v21, %v10064_v46  ;;  %v2427_v32 = vpop.f32.mrf.mxu0  ;;  %v3451_v33 = vpop.f32.mrf.mxu1 }
 0x123   : > { %6962 = vst.msk [vmem:[%s10079_s13 + $0x68] sm:$0xf] %vm6935_vm0, %v8318_v24  ;;  %7218 = vst.msk [vmem:[%s10079_s13 + $0x468] sm:$0xf] %vm6935_vm0, %v8574_v25  ;;  %v8316_v34 = vpack.c.bf16 %v4399_v26, %v4399_v26  ;;  %v8572_v35 = vpack.c.bf16 %v4655_v27, %v4655_v27  ;;  %v2428_v36 = vadd.f32 %v10064_v46, %v2427_v32  ;;  %v9763_v32 = vld [vmem:[%s9942_s24 + $0x618] sm:$0xff]  }
 0x124   : > { %v3452_v37 = vadd.f32 %v10064_v46, %v3451_v33  ;;  %v4402_v38 = vmax.f32 %v2436_v30, 0.0  ;;  %v4658_v39 = vmax.f32 %v3460_v31, 0.0  ;;  %v9114_v40 = vpop.f32.mrf.mxu0  ;;  %9209 = vmatmul.mubr.bf16.gmra.mxu0 %v9754_v22  ;;  %v9370_v41 = vpop.f32.mrf.mxu1  ;;  %9465 = vmatmul.mubr.bf16.gmra.mxu1 %v9755_v23  ;;  %v9762_v31 = vld [vmem:[%s9942_s24 + $0x218] sm:$0xff]  }
 0x125   : > { %6960 = vst.msk [vmem:[%s10079_s13 + $0x60] sm:$0xf] %vm6935_vm0, %v8316_v34  ;;  %7216 = vst.msk [vmem:[%s10079_s13 + $0x460] sm:$0xf] %vm6935_vm0, %v8572_v35  ;;  %v4400_v42 = vmax.f32 %v2428_v36, 0.0  ;;  %v2449_v44 = vadd.f32 %v9114_v40, %v10064_v46  ;;  %v3473_v45 = vadd.f32 %v9370_v41, %v10064_v46  ;;  %9212 = vmatprep.mubr.bf16.mxu0 %v9756_v28  ;;  %9468 = vmatprep.mubr.bf16.mxu1 %v9757_v29 }
 0x126   : > { %v4656_v43 = vmax.f32 %v3452_v37, 0.0  ;;  %v8319_v47 = vpack.c.bf16 %v4402_v38, %v4402_v38  ;;  %v8575_v48 = vpack.c.bf16 %v4658_v39, %v4658_v39  ;;  %v2440_v49 = vpop.f32.mrf.mxu0  ;;  %v3464_v50 = vpop.f32.mrf.mxu1  ;;  %v9764_v37 = vld [vmem:[%s9942_s24 + $0x220] sm:$0xff]  }
 0x127   : > { %v8317_v51 = vpack.c.bf16 %v4400_v42, %v4400_v42  ;;  %v4405_v53 = vmax.f32 %v2449_v44, 0.0  ;;  %v4661_v54 = vmax.f32 %v3473_v45, 0.0  ;;  %v2441_v55 = vadd.f32 %v10064_v46, %v2440_v49  ;;  %v9765_v42 = vld [vmem:[%s9942_s24 + $0x620] sm:$0xff]  }
 0x128   : > { %v8573_v52 = vpack.c.bf16 %v4656_v43, %v4656_v43  ;;  %6963 = vst.msk [vmem:[%s10079_s13 + $0x6c] sm:$0xf] %vm6935_vm0, %v8319_v47  ;;  %7219 = vst.msk [vmem:[%s10079_s13 + $0x46c] sm:$0xf] %vm6935_vm0, %v8575_v48  ;;  %v3465_v56 = vadd.f32 %v10064_v46, %v3464_v50  ;;  %v9115_v57 = vpop.f32.mrf.mxu0  ;;  %v9371_v58 = vpop.f32.mrf.mxu1 }
 0x129   : > { %6961 = vst.msk [vmem:[%s10079_s13 + $0x64] sm:$0xf] %vm6935_vm0, %v8317_v51  ;;  %v8322_v61 = vpack.c.bf16 %v4405_v53, %v4405_v53  ;;  %v8578_v62 = vpack.c.bf16 %v4661_v54, %v4661_v54  ;;  %v2452_v63 = vadd.f32 %v9115_v57, %v10064_v46  ;;  %v3476_v0 = vadd.f32 %v9371_v58, %v10064_v46 }
 0x12a   : > { %7217 = vst.msk [vmem:[%s10079_s13 + $0x464] sm:$0xf] %vm6935_vm0, %v8573_v52  ;;  %v4403_v3 = vmax.f32 %v2441_v55, 0.0  ;;  %v4659_v4 = vmax.f32 %v3465_v56, 0.0  ;;  %v2443_v5 = vpop.f32.mrf.mxu0  ;;  %v3467_v6 = vpop.f32.mrf.mxu1 }
 0x12b   : > { %6966 = vst.msk [vmem:[%s10079_s13 + $0x78] sm:$0xf] %vm6935_vm0, %v8322_v61  ;;  %7222 = vst.msk [vmem:[%s10079_s13 + $0x478] sm:$0xf] %vm6935_vm0, %v8578_v62  ;;  %v4406_v7 = vmax.f32 %v2452_v63, 0.0  ;;  %v4662_v8 = vmax.f32 %v3476_v0, 0.0  ;;  %v2444_v9 = vadd.f32 %v10064_v46, %v2443_v5  ;;  %v3468_v10 = vadd.f32 %v10064_v46, %v3467_v6 }
 0x12c   : > { %v8320_v11 = vpack.c.bf16 %v4403_v3, %v4403_v3  ;;  %v8576_v12 = vpack.c.bf16 %v4659_v4, %v4659_v4  ;;  %v9118_v13 = vpop.f32.mrf.mxu0  ;;  %9213 = vmatmul.mubr.bf16.gmra.mxu0 %v9758_v59  ;;  %v9374_v14 = vpop.f32.mrf.mxu1  ;;  %9469 = vmatmul.mubr.bf16.gmra.mxu1 %v9759_v60  ;;  %v9766_v4 = vld [vmem:[%s9942_s24 + $0x228] sm:$0xff]  }
 0x12d   : > { %v8323_v15 = vpack.c.bf16 %v4406_v7, %v4406_v7  ;;  %v8579_v16 = vpack.c.bf16 %v4662_v8, %v4662_v8  ;;  %v4404_v17 = vmax.f32 %v2444_v9, 0.0  ;;  %v4660_v18 = vmax.f32 %v3468_v10, 0.0  ;;  %9216 = vmatprep.mubr.bf16.mxu0 %v9760_v1  ;;  %9472 = vmatprep.mubr.bf16.mxu1 %v9761_v2  ;;  %v9767_v5 = vld [vmem:[%s9942_s24 + $0x628] sm:$0xff]   ;;  %v9768_v10 = vld [vmem:[%s9942_s24 + $0x230] sm:$0xff]  }
 0x12e   : > { %6964 = vst.msk [vmem:[%s10079_s13 + $0x70] sm:$0xf] %vm6935_vm0, %v8320_v11  ;;  %7220 = vst.msk [vmem:[%s10079_s13 + $0x470] sm:$0xf] %vm6935_vm0, %v8576_v12  ;;  %v2465_v19 = vadd.f32 %v9118_v13, %v10064_v46  ;;  %v3489_v20 = vadd.f32 %v9374_v14, %v10064_v46  ;;  %v2456_v21 = vpop.f32.mrf.mxu0  ;;  %v3480_v22 = vpop.f32.mrf.mxu1  ;;  %v9769_v11 = vld [vmem:[%s9942_s24 + $0x630] sm:$0xff]  }
 0x12f   : > { %6967 = vst.msk [vmem:[%s10079_s13 + $0x7c] sm:$0xf] %vm6935_vm0, %v8323_v15  ;;  %7223 = vst.msk [vmem:[%s10079_s13 + $0x47c] sm:$0xf] %vm6935_vm0, %v8579_v16  ;;  %v8321_v23 = vpack.c.bf16 %v4404_v17, %v4404_v17  ;;  %v8577_v24 = vpack.c.bf16 %v4660_v18, %v4660_v18  ;;  %v2457_v25 = vadd.f32 %v10064_v46, %v2456_v21 }
 0x130   : > { %v3481_v26 = vadd.f32 %v10064_v46, %v3480_v22  ;;  %v4409_v27 = vmax.f32 %v2465_v19, 0.0  ;;  %v4665_v28 = vmax.f32 %v3489_v20, 0.0  ;;  %v9119_v29 = vpop.f32.mrf.mxu0  ;;  %v9375_v30 = vpop.f32.mrf.mxu1 }
 0x131   : > { %6965 = vst.msk [vmem:[%s10079_s13 + $0x74] sm:$0xf] %vm6935_vm0, %v8321_v23  ;;  %7221 = vst.msk [vmem:[%s10079_s13 + $0x474] sm:$0xf] %vm6935_vm0, %v8577_v24  ;;  %v4407_v33 = vmax.f32 %v2457_v25, 0.0  ;;  %v2468_v35 = vadd.f32 %v9119_v29, %v10064_v46  ;;  %v3492_v36 = vadd.f32 %v9375_v30, %v10064_v46 }
 0x132   : > { %v4663_v34 = vmax.f32 %v3481_v26, 0.0  ;;  %v8326_v38 = vpack.c.bf16 %v4409_v27, %v4409_v27  ;;  %v8582_v39 = vpack.c.bf16 %v4665_v28, %v4665_v28  ;;  %v2459_v40 = vpop.f32.mrf.mxu0  ;;  %v3483_v41 = vpop.f32.mrf.mxu1 }
 0x133   : > { %v8324_v43 = vpack.c.bf16 %v4407_v33, %v4407_v33  ;;  %v4410_v45 = vmax.f32 %v2468_v35, 0.0  ;;  %v4666_v47 = vmax.f32 %v3492_v36, 0.0  ;;  %v2460_v48 = vadd.f32 %v10064_v46, %v2459_v40  ;;  %v9770_v40 = vld [vmem:[%s9942_s24 + $0x238] sm:$0xff]  }
 0x134   : > { %v8580_v44 = vpack.c.bf16 %v4663_v34, %v4663_v34  ;;  %6970 = vst.msk [vmem:[%s10079_s13 + $0x88] sm:$0xf] %vm6935_vm0, %v8326_v38  ;;  %7226 = vst.msk [vmem:[%s10079_s13 + $0x488] sm:$0xf] %vm6935_vm0, %v8582_v39  ;;  %v3484_v49 = vadd.f32 %v10064_v46, %v3483_v41  ;;  %v9122_v50 = vpop.f32.mrf.mxu0  ;;  %9217 = vmatmul.mubr.bf16.gmra.mxu0 %v9762_v31  ;;  %v9378_v51 = vpop.f32.mrf.mxu1  ;;  %9473 = vmatmul.mubr.bf16.gmra.mxu1 %v9763_v32  ;;  %v9771_v41 = vld [vmem:[%s9942_s24 + $0x638] sm:$0xff]  }
 0x135   : > { %6968 = vst.msk [vmem:[%s10079_s13 + $0x80] sm:$0xf] %vm6935_vm0, %v8324_v43  ;;  %v8327_v52 = vpack.c.bf16 %v4410_v45, %v4410_v45  ;;  %v8583_v53 = vpack.c.bf16 %v4666_v47, %v4666_v47  ;;  %v2481_v54 = vadd.f32 %v9122_v50, %v10064_v46  ;;  %v3505_v55 = vadd.f32 %v9378_v51, %v10064_v46  ;;  %v9772_v47 = vld [vmem:[%s9942_s24 + $0x240] sm:$0xff]  }
 0x136   : > { %7224 = vst.msk [vmem:[%s10079_s13 + $0x480] sm:$0xf] %vm6935_vm0, %v8580_v44  ;;  %9220 = vmatprep.mubr.bf16.mxu0 %v9764_v37  ;;  %v4408_v56 = vmax.f32 %v2460_v48, 0.0  ;;  %v4664_v57 = vmax.f32 %v3484_v49, 0.0  ;;  %v2472_v58 = vpop.f32.mrf.mxu0  ;;  %v3496_v59 = vpop.f32.mrf.mxu1  ;;  %9476 = vmatprep.mubr.bf16.mxu1 %v9765_v42  ;;  %v9773_v48 = vld [vmem:[%s9942_s24 + $0x640] sm:$0xff]  }
 0x137   : > { %6971 = vst.msk [vmem:[%s10079_s13 + $0x8c] sm:$0xf] %vm6935_vm0, %v8327_v52  ;;  %7227 = vst.msk [vmem:[%s10079_s13 + $0x48c] sm:$0xf] %vm6935_vm0, %v8583_v53  ;;  %v4413_v60 = vmax.f32 %v2481_v54, 0.0  ;;  %v4669_v61 = vmax.f32 %v3505_v55, 0.0  ;;  %v2473_v62 = vadd.f32 %v10064_v46, %v2472_v58  ;;  %v3497_v63 = vadd.f32 %v10064_v46, %v3496_v59 }
 0x138   : > { %v8325_v0 = vpack.c.bf16 %v4408_v56, %v4408_v56  ;;  %v8581_v1 = vpack.c.bf16 %v4664_v57, %v4664_v57  ;;  %v9123_v2 = vpop.f32.mrf.mxu0  ;;  %v9379_v3 = vpop.f32.mrf.mxu1 }
 0x139   : > { %v8330_v6 = vpack.c.bf16 %v4413_v60, %v4413_v60  ;;  %v8586_v7 = vpack.c.bf16 %v4669_v61, %v4669_v61  ;;  %v4411_v8 = vmax.f32 %v2473_v62, 0.0  ;;  %v4667_v9 = vmax.f32 %v3497_v63, 0.0 }
 0x13a   : > { %6969 = vst.msk [vmem:[%s10079_s13 + $0x84] sm:$0xf] %vm6935_vm0, %v8325_v0  ;;  %7225 = vst.msk [vmem:[%s10079_s13 + $0x484] sm:$0xf] %vm6935_vm0, %v8581_v1  ;;  %v2484_v12 = vadd.f32 %v9123_v2, %v10064_v46  ;;  %v3508_v13 = vadd.f32 %v9379_v3, %v10064_v46  ;;  %v2475_v14 = vpop.f32.mrf.mxu0  ;;  %v3499_v15 = vpop.f32.mrf.mxu1 }
 0x13b   : > { %6974 = vst.msk [vmem:[%s10079_s13 + $0x98] sm:$0xf] %vm6935_vm0, %v8330_v6  ;;  %7230 = vst.msk [vmem:[%s10079_s13 + $0x498] sm:$0xf] %vm6935_vm0, %v8586_v7  ;;  %v8328_v16 = vpack.c.bf16 %v4411_v8, %v4411_v8  ;;  %v8584_v17 = vpack.c.bf16 %v4667_v9, %v4667_v9  ;;  %v2476_v18 = vadd.f32 %v10064_v46, %v2475_v14  ;;  %v9775_v14 = vld [vmem:[%s9942_s24 + $0x648] sm:$0xff]  }
 0x13c   : > { %v3500_v19 = vadd.f32 %v10064_v46, %v3499_v15  ;;  %v4414_v20 = vmax.f32 %v2484_v12, 0.0  ;;  %v4670_v21 = vmax.f32 %v3508_v13, 0.0  ;;  %v9126_v22 = vpop.f32.mrf.mxu0  ;;  %9221 = vmatmul.mubr.bf16.gmra.mxu0 %v9766_v4  ;;  %v9382_v23 = vpop.f32.mrf.mxu1  ;;  %9477 = vmatmul.mubr.bf16.gmra.mxu1 %v9767_v5  ;;  %v9774_v13 = vld [vmem:[%s9942_s24 + $0x248] sm:$0xff]  }
 0x13d   : > { %6972 = vst.msk [vmem:[%s10079_s13 + $0x90] sm:$0xf] %vm6935_vm0, %v8328_v16  ;;  %7228 = vst.msk [vmem:[%s10079_s13 + $0x490] sm:$0xf] %vm6935_vm0, %v8584_v17  ;;  %v4412_v24 = vmax.f32 %v2476_v18, 0.0  ;;  %v2497_v26 = vadd.f32 %v9126_v22, %v10064_v46  ;;  %v3521_v27 = vadd.f32 %v9382_v23, %v10064_v46  ;;  %9224 = vmatprep.mubr.bf16.mxu0 %v9768_v10  ;;  %9480 = vmatprep.mubr.bf16.mxu1 %v9769_v11 }
 0x13e   : > { %v4668_v25 = vmax.f32 %v3500_v19, 0.0  ;;  %v8331_v28 = vpack.c.bf16 %v4414_v20, %v4414_v20  ;;  %v8587_v29 = vpack.c.bf16 %v4670_v21, %v4670_v21  ;;  %v2488_v30 = vpop.f32.mrf.mxu0  ;;  %v3512_v31 = vpop.f32.mrf.mxu1  ;;  %v10354_v46 = vld [vmem:[%s11793_s2] ss:$0 sm:$0xff]  ;;  %v9776_v19 = vld [vmem:[%s9942_s24 + $0x250] sm:$0xff]  }
 0x13f   : > { %v8329_v32 = vpack.c.bf16 %v4412_v24, %v4412_v24  ;;  %v4417_v34 = vmax.f32 %v2497_v26, 0.0  ;;  %v4673_v35 = vmax.f32 %v3521_v27, 0.0  ;;  %v2489_v36 = vadd.f32 %v10354_v46, %v2488_v30  ;;  %v9777_v24 = vld [vmem:[%s9942_s24 + $0x650] sm:$0xff]  }
 0x140   : > { %v8585_v33 = vpack.c.bf16 %v4668_v25, %v4668_v25  ;;  %6975 = vst.msk [vmem:[%s10079_s13 + $0x9c] sm:$0xf] %vm6935_vm0, %v8331_v28  ;;  %7231 = vst.msk [vmem:[%s10079_s13 + $0x49c] sm:$0xf] %vm6935_vm0, %v8587_v29  ;;  %v3513_v37 = vadd.f32 %v10354_v46, %v3512_v31  ;;  %v9127_v38 = vpop.f32.mrf.mxu0  ;;  %v9383_v39 = vpop.f32.mrf.mxu1 }
 0x141   : > { %6973 = vst.msk [vmem:[%s10079_s13 + $0x94] sm:$0xf] %vm6935_vm0, %v8329_v32  ;;  %v8334_v42 = vpack.c.bf16 %v4417_v34, %v4417_v34  ;;  %v8590_v43 = vpack.c.bf16 %v4673_v35, %v4673_v35  ;;  %v2500_v44 = vadd.f32 %v10354_v46, %v9127_v38  ;;  %v3524_v45 = vadd.f32 %v10354_v46, %v9383_v39 }
 0x142   : > { %7229 = vst.msk [vmem:[%s10079_s13 + $0x494] sm:$0xf] %vm6935_vm0, %v8585_v33  ;;  %v4415_v49 = vmax.f32 %v2489_v36, 0.0  ;;  %v4671_v50 = vmax.f32 %v3513_v37, 0.0  ;;  %v2491_v51 = vpop.f32.mrf.mxu0  ;;  %v3515_v52 = vpop.f32.mrf.mxu1 }
 0x143   : > { %6978 = vst.msk [vmem:[%s10079_s13 + $0xa8] sm:$0xf] %vm6935_vm0, %v8334_v42  ;;  %7234 = vst.msk [vmem:[%s10079_s13 + $0x4a8] sm:$0xf] %vm6935_vm0, %v8590_v43  ;;  %v4418_v53 = vmax.f32 %v2500_v44, 0.0  ;;  %v4674_v54 = vmax.f32 %v3524_v45, 0.0  ;;  %v2492_v55 = vadd.f32 %v10354_v46, %v2491_v51  ;;  %v3516_v56 = vadd.f32 %v10354_v46, %v3515_v52 }
 0x144   : > { %v8332_v57 = vpack.c.bf16 %v4415_v49, %v4415_v49  ;;  %v8588_v58 = vpack.c.bf16 %v4671_v50, %v4671_v50  ;;  %v9130_v59 = vpop.f32.mrf.mxu0  ;;  %9225 = vmatmul.mubr.bf16.gmra.mxu0 %v9770_v40  ;;  %v9386_v60 = vpop.f32.mrf.mxu1  ;;  %9481 = vmatmul.mubr.bf16.gmra.mxu1 %v9771_v41  ;;  %v9778_v50 = vld [vmem:[%s9942_s24 + $0x258] sm:$0xff]  }
 0x145   : > { %v8335_v61 = vpack.c.bf16 %v4418_v53, %v4418_v53  ;;  %v8591_v62 = vpack.c.bf16 %v4674_v54, %v4674_v54  ;;  %v4416_v63 = vmax.f32 %v2492_v55, 0.0  ;;  %v4672_v0 = vmax.f32 %v3516_v56, 0.0  ;;  %9228 = vmatprep.mubr.bf16.mxu0 %v9772_v47  ;;  %9484 = vmatprep.mubr.bf16.mxu1 %v9773_v48  ;;  %v9779_v51 = vld [vmem:[%s9942_s24 + $0x658] sm:$0xff]   ;;  %v9780_v56 = vld [vmem:[%s9942_s24 + $0x260] sm:$0xff]  }
 0x146   : > { %6976 = vst.msk [vmem:[%s10079_s13 + $0xa0] sm:$0xf] %vm6935_vm0, %v8332_v57  ;;  %7232 = vst.msk [vmem:[%s10079_s13 + $0x4a0] sm:$0xf] %vm6935_vm0, %v8588_v58  ;;  %v2513_v1 = vadd.f32 %v10354_v46, %v9130_v59  ;;  %v3537_v2 = vadd.f32 %v10354_v46, %v9386_v60  ;;  %v2504_v3 = vpop.f32.mrf.mxu0  ;;  %v3528_v4 = vpop.f32.mrf.mxu1  ;;  %v9781_v57 = vld [vmem:[%s9942_s24 + $0x660] sm:$0xff]  }
 0x147   : > { %6979 = vst.msk [vmem:[%s10079_s13 + $0xac] sm:$0xf] %vm6935_vm0, %v8335_v61  ;;  %7235 = vst.msk [vmem:[%s10079_s13 + $0x4ac] sm:$0xf] %vm6935_vm0, %v8591_v62  ;;  %v8333_v5 = vpack.c.bf16 %v4416_v63, %v4416_v63  ;;  %v8589_v6 = vpack.c.bf16 %v4672_v0, %v4672_v0  ;;  %v2505_v7 = vadd.f32 %v10354_v46, %v2504_v3 }
 0x148   : > { %v3529_v8 = vadd.f32 %v10354_v46, %v3528_v4  ;;  %v4421_v9 = vmax.f32 %v2513_v1, 0.0  ;;  %v4677_v10 = vmax.f32 %v3537_v2, 0.0  ;;  %v9131_v11 = vpop.f32.mrf.mxu0  ;;  %v9387_v12 = vpop.f32.mrf.mxu1 }
 0x149   : > { %6977 = vst.msk [vmem:[%s10079_s13 + $0xa4] sm:$0xf] %vm6935_vm0, %v8333_v5  ;;  %7233 = vst.msk [vmem:[%s10079_s13 + $0x4a4] sm:$0xf] %vm6935_vm0, %v8589_v6  ;;  %v4419_v15 = vmax.f32 %v2505_v7, 0.0  ;;  %v2516_v17 = vadd.f32 %v10354_v46, %v9131_v11  ;;  %v3540_v18 = vadd.f32 %v10354_v46, %v9387_v12 }
 0x14a   : > { %v4675_v16 = vmax.f32 %v3529_v8, 0.0  ;;  %v8338_v20 = vpack.c.bf16 %v4421_v9, %v4421_v9  ;;  %v8594_v21 = vpack.c.bf16 %v4677_v10, %v4677_v10  ;;  %v2507_v22 = vpop.f32.mrf.mxu0  ;;  %v3531_v23 = vpop.f32.mrf.mxu1 }
 0x14b   : > { %v8336_v25 = vpack.c.bf16 %v4419_v15, %v4419_v15  ;;  %v4422_v27 = vmax.f32 %v2516_v17, 0.0  ;;  %v4678_v28 = vmax.f32 %v3540_v18, 0.0  ;;  %v2508_v29 = vadd.f32 %v10354_v46, %v2507_v22  ;;  %v9782_v22 = vld [vmem:[%s9942_s24 + $0x268] sm:$0xff]  }
 0x14c   : > { %v8592_v26 = vpack.c.bf16 %v4675_v16, %v4675_v16  ;;  %6982 = vst.msk [vmem:[%s10079_s13 + $0xb8] sm:$0xf] %vm6935_vm0, %v8338_v20  ;;  %7238 = vst.msk [vmem:[%s10079_s13 + $0x4b8] sm:$0xf] %vm6935_vm0, %v8594_v21  ;;  %v3532_v30 = vadd.f32 %v10354_v46, %v3531_v23  ;;  %v9134_v31 = vpop.f32.mrf.mxu0  ;;  %9229 = vmatmul.mubr.bf16.gmra.mxu0 %v9774_v13  ;;  %v9390_v32 = vpop.f32.mrf.mxu1  ;;  %9485 = vmatmul.mubr.bf16.gmra.mxu1 %v9775_v14  ;;  %v9783_v23 = vld [vmem:[%s9942_s24 + $0x668] sm:$0xff]  }
 0x14d   : > { %6980 = vst.msk [vmem:[%s10079_s13 + $0xb0] sm:$0xf] %vm6935_vm0, %v8336_v25  ;;  %v8339_v33 = vpack.c.bf16 %v4422_v27, %v4422_v27  ;;  %v8595_v34 = vpack.c.bf16 %v4678_v28, %v4678_v28  ;;  %v2529_v35 = vadd.f32 %v10354_v46, %v9134_v31  ;;  %v3553_v36 = vadd.f32 %v10354_v46, %v9390_v32  ;;  %v9784_v28 = vld [vmem:[%s9942_s24 + $0x270] sm:$0xff]  }
 0x14e   : > { %7236 = vst.msk [vmem:[%s10079_s13 + $0x4b0] sm:$0xf] %vm6935_vm0, %v8592_v26  ;;  %9232 = vmatprep.mubr.bf16.mxu0 %v9776_v19  ;;  %v4420_v37 = vmax.f32 %v2508_v29, 0.0  ;;  %v4676_v38 = vmax.f32 %v3532_v30, 0.0  ;;  %v2520_v39 = vpop.f32.mrf.mxu0  ;;  %v3544_v40 = vpop.f32.mrf.mxu1  ;;  %9488 = vmatprep.mubr.bf16.mxu1 %v9777_v24  ;;  %v9785_v29 = vld [vmem:[%s9942_s24 + $0x670] sm:$0xff]  }
 0x14f   : > { %6983 = vst.msk [vmem:[%s10079_s13 + $0xbc] sm:$0xf] %vm6935_vm0, %v8339_v33  ;;  %7239 = vst.msk [vmem:[%s10079_s13 + $0x4bc] sm:$0xf] %vm6935_vm0, %v8595_v34  ;;  %v4425_v41 = vmax.f32 %v2529_v35, 0.0  ;;  %v4681_v42 = vmax.f32 %v3553_v36, 0.0  ;;  %v2521_v43 = vadd.f32 %v10354_v46, %v2520_v39  ;;  %v3545_v44 = vadd.f32 %v10354_v46, %v3544_v40 }
 0x150   : > { %v8337_v45 = vpack.c.bf16 %v4420_v37, %v4420_v37  ;;  %v8593_v47 = vpack.c.bf16 %v4676_v38, %v4676_v38  ;;  %v9135_v48 = vpop.f32.mrf.mxu0  ;;  %v9391_v49 = vpop.f32.mrf.mxu1 }
 0x151   : > { %v8342_v52 = vpack.c.bf16 %v4425_v41, %v4425_v41  ;;  %v8598_v53 = vpack.c.bf16 %v4681_v42, %v4681_v42  ;;  %v4423_v54 = vmax.f32 %v2521_v43, 0.0  ;;  %v4679_v55 = vmax.f32 %v3545_v44, 0.0 }
 0x152   : > { %6981 = vst.msk [vmem:[%s10079_s13 + $0xb4] sm:$0xf] %vm6935_vm0, %v8337_v45  ;;  %7237 = vst.msk [vmem:[%s10079_s13 + $0x4b4] sm:$0xf] %vm6935_vm0, %v8593_v47  ;;  %v2532_v58 = vadd.f32 %v10354_v46, %v9135_v48  ;;  %v3556_v59 = vadd.f32 %v10354_v46, %v9391_v49  ;;  %v2523_v60 = vpop.f32.mrf.mxu0  ;;  %v3547_v61 = vpop.f32.mrf.mxu1 }
 0x153   : > { %6986 = vst.msk [vmem:[%s10079_s13 + $0xc8] sm:$0xf] %vm6935_vm0, %v8342_v52  ;;  %7242 = vst.msk [vmem:[%s10079_s13 + $0x4c8] sm:$0xf] %vm6935_vm0, %v8598_v53  ;;  %v8340_v62 = vpack.c.bf16 %v4423_v54, %v4423_v54  ;;  %v8596_v63 = vpack.c.bf16 %v4679_v55, %v4679_v55  ;;  %v2524_v0 = vadd.f32 %v10354_v46, %v2523_v60  ;;  %v9787_v60 = vld [vmem:[%s9942_s24 + $0x678] sm:$0xff]  }
 0x154   : > { %v3548_v1 = vadd.f32 %v10354_v46, %v3547_v61  ;;  %v4426_v2 = vmax.f32 %v2532_v58, 0.0  ;;  %v4682_v3 = vmax.f32 %v3556_v59, 0.0  ;;  %v9138_v4 = vpop.f32.mrf.mxu0  ;;  %9233 = vmatmul.mubr.bf16.gmra.mxu0 %v9778_v50  ;;  %v9394_v5 = vpop.f32.mrf.mxu1  ;;  %9489 = vmatmul.mubr.bf16.gmra.mxu1 %v9779_v51  ;;  %v9786_v59 = vld [vmem:[%s9942_s24 + $0x278] sm:$0xff]  }
 0x155   : > { %6984 = vst.msk [vmem:[%s10079_s13 + $0xc0] sm:$0xf] %vm6935_vm0, %v8340_v62  ;;  %7240 = vst.msk [vmem:[%s10079_s13 + $0x4c0] sm:$0xf] %vm6935_vm0, %v8596_v63  ;;  %v4424_v6 = vmax.f32 %v2524_v0, 0.0  ;;  %v2545_v8 = vadd.f32 %v10354_v46, %v9138_v4  ;;  %v3569_v9 = vadd.f32 %v10354_v46, %v9394_v5  ;;  %9236 = vmatprep.mubr.bf16.mxu0 %v9780_v56  ;;  %9492 = vmatprep.mubr.bf16.mxu1 %v9781_v57 }
 0x156   : > { %v4680_v7 = vmax.f32 %v3548_v1, 0.0  ;;  %v8343_v10 = vpack.c.bf16 %v4426_v2, %v4426_v2  ;;  %v8599_v11 = vpack.c.bf16 %v4682_v3, %v4682_v3  ;;  %v2536_v12 = vpop.f32.mrf.mxu0  ;;  %v3560_v13 = vpop.f32.mrf.mxu1  ;;  %v9788_v1 = vld [vmem:[%s9942_s24 + $0x280] sm:$0xff]  }
 0x157   : > { %v8341_v14 = vpack.c.bf16 %v4424_v6, %v4424_v6  ;;  %v4429_v16 = vmax.f32 %v2545_v8, 0.0  ;;  %v4685_v17 = vmax.f32 %v3569_v9, 0.0  ;;  %v2537_v18 = vadd.f32 %v10354_v46, %v2536_v12  ;;  %v9789_v6 = vld [vmem:[%s9942_s24 + $0x680] sm:$0xff]  }
 0x158   : > { %v8597_v15 = vpack.c.bf16 %v4680_v7, %v4680_v7  ;;  %6987 = vst.msk [vmem:[%s10079_s13 + $0xcc] sm:$0xf] %vm6935_vm0, %v8343_v10  ;;  %7243 = vst.msk [vmem:[%s10079_s13 + $0x4cc] sm:$0xf] %vm6935_vm0, %v8599_v11  ;;  %v3561_v19 = vadd.f32 %v10354_v46, %v3560_v13  ;;  %v9139_v20 = vpop.f32.mrf.mxu0  ;;  %v9395_v21 = vpop.f32.mrf.mxu1 }
 0x159   : > { %6985 = vst.msk [vmem:[%s10079_s13 + $0xc4] sm:$0xf] %vm6935_vm0, %v8341_v14  ;;  %v8346_v24 = vpack.c.bf16 %v4429_v16, %v4429_v16  ;;  %v8602_v25 = vpack.c.bf16 %v4685_v17, %v4685_v17  ;;  %v2548_v26 = vadd.f32 %v10354_v46, %v9139_v20  ;;  %v3572_v27 = vadd.f32 %v10354_v46, %v9395_v21 }
 0x15a   : > { %7241 = vst.msk [vmem:[%s10079_s13 + $0x4c4] sm:$0xf] %vm6935_vm0, %v8597_v15  ;;  %v4427_v30 = vmax.f32 %v2537_v18, 0.0  ;;  %v4683_v31 = vmax.f32 %v3561_v19, 0.0  ;;  %v2539_v32 = vpop.f32.mrf.mxu0  ;;  %v3563_v33 = vpop.f32.mrf.mxu1 }
 0x15b   : > { %6990 = vst.msk [vmem:[%s10079_s13 + $0xd8] sm:$0xf] %vm6935_vm0, %v8346_v24  ;;  %7246 = vst.msk [vmem:[%s10079_s13 + $0x4d8] sm:$0xf] %vm6935_vm0, %v8602_v25  ;;  %v4430_v34 = vmax.f32 %v2548_v26, 0.0  ;;  %v4686_v35 = vmax.f32 %v3572_v27, 0.0  ;;  %v2540_v36 = vadd.f32 %v10354_v46, %v2539_v32  ;;  %v3564_v37 = vadd.f32 %v10354_v46, %v3563_v33 }
 0x15c   : > { %v8344_v38 = vpack.c.bf16 %v4427_v30, %v4427_v30  ;;  %v8600_v39 = vpack.c.bf16 %v4683_v31, %v4683_v31  ;;  %v9142_v40 = vpop.f32.mrf.mxu0  ;;  %9237 = vmatmul.mubr.bf16.gmra.mxu0 %v9782_v22  ;;  %v9398_v41 = vpop.f32.mrf.mxu1  ;;  %9493 = vmatmul.mubr.bf16.gmra.mxu1 %v9783_v23  ;;  %v9790_v31 = vld [vmem:[%s9942_s24 + $0x288] sm:$0xff]  }
 0x15d   : > { %v8347_v42 = vpack.c.bf16 %v4430_v34, %v4430_v34  ;;  %v8603_v43 = vpack.c.bf16 %v4686_v35, %v4686_v35  ;;  %v4428_v44 = vmax.f32 %v2540_v36, 0.0  ;;  %v4684_v45 = vmax.f32 %v3564_v37, 0.0  ;;  %9240 = vmatprep.mubr.bf16.mxu0 %v9784_v28  ;;  %9496 = vmatprep.mubr.bf16.mxu1 %v9785_v29  ;;  %v9791_v32 = vld [vmem:[%s9942_s24 + $0x688] sm:$0xff]   ;;  %v9792_v37 = vld [vmem:[%s9942_s24 + $0x290] sm:$0xff]  }
 0x15e   : > { %6988 = vst.msk [vmem:[%s10079_s13 + $0xd0] sm:$0xf] %vm6935_vm0, %v8344_v38  ;;  %7244 = vst.msk [vmem:[%s10079_s13 + $0x4d0] sm:$0xf] %vm6935_vm0, %v8600_v39  ;;  %v2561_v47 = vadd.f32 %v10354_v46, %v9142_v40  ;;  %v3585_v48 = vadd.f32 %v10354_v46, %v9398_v41  ;;  %v2552_v49 = vpop.f32.mrf.mxu0  ;;  %v3576_v50 = vpop.f32.mrf.mxu1  ;;  %v9793_v38 = vld [vmem:[%s9942_s24 + $0x690] sm:$0xff]  }
 0x15f   : > { %6991 = vst.msk [vmem:[%s10079_s13 + $0xdc] sm:$0xf] %vm6935_vm0, %v8347_v42  ;;  %7247 = vst.msk [vmem:[%s10079_s13 + $0x4dc] sm:$0xf] %vm6935_vm0, %v8603_v43  ;;  %v8345_v51 = vpack.c.bf16 %v4428_v44, %v4428_v44  ;;  %v8601_v52 = vpack.c.bf16 %v4684_v45, %v4684_v45  ;;  %v2553_v53 = vadd.f32 %v10354_v46, %v2552_v49 }
 0x160   : > { %v3577_v54 = vadd.f32 %v10354_v46, %v3576_v50  ;;  %v4433_v55 = vmax.f32 %v2561_v47, 0.0  ;;  %v4689_v56 = vmax.f32 %v3585_v48, 0.0  ;;  %v9143_v57 = vpop.f32.mrf.mxu0  ;;  %v9399_v58 = vpop.f32.mrf.mxu1 }
 0x161   : > { %6989 = vst.msk [vmem:[%s10079_s13 + $0xd4] sm:$0xf] %vm6935_vm0, %v8345_v51  ;;  %7245 = vst.msk [vmem:[%s10079_s13 + $0x4d4] sm:$0xf] %vm6935_vm0, %v8601_v52  ;;  %v4431_v61 = vmax.f32 %v2553_v53, 0.0  ;;  %v2564_v63 = vadd.f32 %v10354_v46, %v9143_v57  ;;  %v3588_v0 = vadd.f32 %v10354_v46, %v9399_v58 }
 0x162   : > { %v4687_v62 = vmax.f32 %v3577_v54, 0.0  ;;  %v8350_v2 = vpack.c.bf16 %v4433_v55, %v4433_v55  ;;  %v8606_v3 = vpack.c.bf16 %v4689_v56, %v4689_v56  ;;  %v2555_v4 = vpop.f32.mrf.mxu0  ;;  %v3579_v5 = vpop.f32.mrf.mxu1 }
 0x163   : > { %v8348_v7 = vpack.c.bf16 %v4431_v61, %v4431_v61  ;;  %v4434_v9 = vmax.f32 %v2564_v63, 0.0  ;;  %v4690_v10 = vmax.f32 %v3588_v0, 0.0  ;;  %v2556_v11 = vadd.f32 %v10354_v46, %v2555_v4  ;;  %v9794_v4 = vld [vmem:[%s9942_s24 + $0x298] sm:$0xff]  }
 0x164   : > { %v8604_v8 = vpack.c.bf16 %v4687_v62, %v4687_v62  ;;  %6994 = vst.msk [vmem:[%s10079_s13 + $0xe8] sm:$0xf] %vm6935_vm0, %v8350_v2  ;;  %7250 = vst.msk [vmem:[%s10079_s13 + $0x4e8] sm:$0xf] %vm6935_vm0, %v8606_v3  ;;  %v3580_v12 = vadd.f32 %v10354_v46, %v3579_v5  ;;  %v9146_v13 = vpop.f32.mrf.mxu0  ;;  %9241 = vmatmul.mubr.bf16.gmra.mxu0 %v9786_v59  ;;  %v9402_v14 = vpop.f32.mrf.mxu1  ;;  %9497 = vmatmul.mubr.bf16.gmra.mxu1 %v9787_v60  ;;  %v9795_v5 = vld [vmem:[%s9942_s24 + $0x698] sm:$0xff]  }
 0x165   : > { %6992 = vst.msk [vmem:[%s10079_s13 + $0xe0] sm:$0xf] %vm6935_vm0, %v8348_v7  ;;  %v8351_v15 = vpack.c.bf16 %v4434_v9, %v4434_v9  ;;  %v8607_v16 = vpack.c.bf16 %v4690_v10, %v4690_v10  ;;  %v2577_v17 = vadd.f32 %v10354_v46, %v9146_v13  ;;  %v3601_v18 = vadd.f32 %v10354_v46, %v9402_v14  ;;  %v9796_v10 = vld [vmem:[%s9942_s24 + $0x2a0] sm:$0xff]  }
 0x166   : > { %7248 = vst.msk [vmem:[%s10079_s13 + $0x4e0] sm:$0xf] %vm6935_vm0, %v8604_v8  ;;  %9244 = vmatprep.mubr.bf16.mxu0 %v9788_v1  ;;  %v4432_v19 = vmax.f32 %v2556_v11, 0.0  ;;  %v4688_v20 = vmax.f32 %v3580_v12, 0.0  ;;  %v2568_v21 = vpop.f32.mrf.mxu0  ;;  %v3592_v22 = vpop.f32.mrf.mxu1  ;;  %9500 = vmatprep.mubr.bf16.mxu1 %v9789_v6  ;;  %v9797_v11 = vld [vmem:[%s9942_s24 + $0x6a0] sm:$0xff]  }
 0x167   : > { %6995 = vst.msk [vmem:[%s10079_s13 + $0xec] sm:$0xf] %vm6935_vm0, %v8351_v15  ;;  %7251 = vst.msk [vmem:[%s10079_s13 + $0x4ec] sm:$0xf] %vm6935_vm0, %v8607_v16  ;;  %v4437_v23 = vmax.f32 %v2577_v17, 0.0  ;;  %v4693_v24 = vmax.f32 %v3601_v18, 0.0  ;;  %v2569_v25 = vadd.f32 %v10354_v46, %v2568_v21  ;;  %v3593_v26 = vadd.f32 %v10354_v46, %v3592_v22 }
 0x168   : > { %v8349_v27 = vpack.c.bf16 %v4432_v19, %v4432_v19  ;;  %v8605_v28 = vpack.c.bf16 %v4688_v20, %v4688_v20  ;;  %v9147_v29 = vpop.f32.mrf.mxu0  ;;  %v9403_v30 = vpop.f32.mrf.mxu1 }
 0x169   : > { %v8354_v33 = vpack.c.bf16 %v4437_v23, %v4437_v23  ;;  %v8610_v34 = vpack.c.bf16 %v4693_v24, %v4693_v24  ;;  %v4435_v35 = vmax.f32 %v2569_v25, 0.0  ;;  %v4691_v36 = vmax.f32 %v3593_v26, 0.0 }
 0x16a   : > { %6993 = vst.msk [vmem:[%s10079_s13 + $0xe4] sm:$0xf] %vm6935_vm0, %v8349_v27  ;;  %7249 = vst.msk [vmem:[%s10079_s13 + $0x4e4] sm:$0xf] %vm6935_vm0, %v8605_v28  ;;  %v2580_v39 = vadd.f32 %v10354_v46, %v9147_v29  ;;  %v3604_v40 = vadd.f32 %v10354_v46, %v9403_v30  ;;  %v2571_v41 = vpop.f32.mrf.mxu0  ;;  %v3595_v42 = vpop.f32.mrf.mxu1 }
 0x16b   : > { %6998 = vst.msk [vmem:[%s10079_s13 + $0xf8] sm:$0xf] %vm6935_vm0, %v8354_v33  ;;  %7254 = vst.msk [vmem:[%s10079_s13 + $0x4f8] sm:$0xf] %vm6935_vm0, %v8610_v34  ;;  %v8352_v43 = vpack.c.bf16 %v4435_v35, %v4435_v35  ;;  %v8608_v44 = vpack.c.bf16 %v4691_v36, %v4691_v36  ;;  %v2572_v45 = vadd.f32 %v10354_v46, %v2571_v41  ;;  %v9799_v41 = vld [vmem:[%s9942_s24 + $0x6a8] sm:$0xff]  }
 0x16c   : > { %v3596_v47 = vadd.f32 %v10354_v46, %v3595_v42  ;;  %v4438_v48 = vmax.f32 %v2580_v39, 0.0  ;;  %v4694_v49 = vmax.f32 %v3604_v40, 0.0  ;;  %v9150_v50 = vpop.f32.mrf.mxu0  ;;  %9245 = vmatmul.mubr.bf16.gmra.mxu0 %v9790_v31  ;;  %v9406_v51 = vpop.f32.mrf.mxu1  ;;  %9501 = vmatmul.mubr.bf16.gmra.mxu1 %v9791_v32  ;;  %v9798_v40 = vld [vmem:[%s9942_s24 + $0x2a8] sm:$0xff]  }
 0x16d   : > { %6996 = vst.msk [vmem:[%s10079_s13 + $0xf0] sm:$0xf] %vm6935_vm0, %v8352_v43  ;;  %7252 = vst.msk [vmem:[%s10079_s13 + $0x4f0] sm:$0xf] %vm6935_vm0, %v8608_v44  ;;  %v4436_v52 = vmax.f32 %v2572_v45, 0.0  ;;  %v2593_v54 = vadd.f32 %v10354_v46, %v9150_v50  ;;  %v3617_v55 = vadd.f32 %v10354_v46, %v9406_v51  ;;  %9248 = vmatprep.mubr.bf16.mxu0 %v9792_v37  ;;  %9504 = vmatprep.mubr.bf16.mxu1 %v9793_v38 }
 0x16e   : > { %v4692_v53 = vmax.f32 %v3596_v47, 0.0  ;;  %v8355_v56 = vpack.c.bf16 %v4438_v48, %v4438_v48  ;;  %v8611_v57 = vpack.c.bf16 %v4694_v49, %v4694_v49  ;;  %v2584_v58 = vpop.f32.mrf.mxu0  ;;  %v3608_v59 = vpop.f32.mrf.mxu1  ;;  %v9800_v47 = vld [vmem:[%s9942_s24 + $0x2b0] sm:$0xff]  }
 0x16f   : > { %v8353_v60 = vpack.c.bf16 %v4436_v52, %v4436_v52  ;;  %v4441_v62 = vmax.f32 %v2593_v54, 0.0  ;;  %v4697_v63 = vmax.f32 %v3617_v55, 0.0  ;;  %v2585_v0 = vadd.f32 %v10354_v46, %v2584_v58  ;;  %v9801_v52 = vld [vmem:[%s9942_s24 + $0x6b0] sm:$0xff]  }
 0x170   : > { %v8609_v61 = vpack.c.bf16 %v4692_v53, %v4692_v53  ;;  %6999 = vst.msk [vmem:[%s10079_s13 + $0xfc] sm:$0xf] %vm6935_vm0, %v8355_v56  ;;  %7255 = vst.msk [vmem:[%s10079_s13 + $0x4fc] sm:$0xf] %vm6935_vm0, %v8611_v57  ;;  %v3609_v1 = vadd.f32 %v10354_v46, %v3608_v59  ;;  %v9151_v2 = vpop.f32.mrf.mxu0  ;;  %v9407_v3 = vpop.f32.mrf.mxu1 }
 0x171   : > { %6997 = vst.msk [vmem:[%s10079_s13 + $0xf4] sm:$0xf] %vm6935_vm0, %v8353_v60  ;;  %v8358_v6 = vpack.c.bf16 %v4441_v62, %v4441_v62  ;;  %v8614_v7 = vpack.c.bf16 %v4697_v63, %v4697_v63  ;;  %v2596_v8 = vadd.f32 %v10354_v46, %v9151_v2  ;;  %v3620_v9 = vadd.f32 %v10354_v46, %v9407_v3 }
 0x172   : > { %7253 = vst.msk [vmem:[%s10079_s13 + $0x4f4] sm:$0xf] %vm6935_vm0, %v8609_v61  ;;  %v4439_v12 = vmax.f32 %v2585_v0, 0.0  ;;  %v4695_v13 = vmax.f32 %v3609_v1, 0.0  ;;  %v2587_v14 = vpop.f32.mrf.mxu0  ;;  %v3611_v15 = vpop.f32.mrf.mxu1 }
 0x173   : > { %7002 = vst.msk [vmem:[%s10079_s13 + $0x108] sm:$0xf] %vm6935_vm0, %v8358_v6  ;;  %7258 = vst.msk [vmem:[%s10079_s13 + $0x508] sm:$0xf] %vm6935_vm0, %v8614_v7  ;;  %v4442_v16 = vmax.f32 %v2596_v8, 0.0  ;;  %v4698_v17 = vmax.f32 %v3620_v9, 0.0  ;;  %v2588_v18 = vadd.f32 %v10354_v46, %v2587_v14  ;;  %v3612_v19 = vadd.f32 %v10354_v46, %v3611_v15 }
 0x174   : > { %v8356_v20 = vpack.c.bf16 %v4439_v12, %v4439_v12  ;;  %v8612_v21 = vpack.c.bf16 %v4695_v13, %v4695_v13  ;;  %v9154_v22 = vpop.f32.mrf.mxu0  ;;  %9249 = vmatmul.mubr.bf16.gmra.mxu0 %v9794_v4  ;;  %v9410_v23 = vpop.f32.mrf.mxu1  ;;  %9505 = vmatmul.mubr.bf16.gmra.mxu1 %v9795_v5  ;;  %v9802_v13 = vld [vmem:[%s9942_s24 + $0x2b8] sm:$0xff]  }
 0x175   : > { %v8359_v24 = vpack.c.bf16 %v4442_v16, %v4442_v16  ;;  %v8615_v25 = vpack.c.bf16 %v4698_v17, %v4698_v17  ;;  %v4440_v26 = vmax.f32 %v2588_v18, 0.0  ;;  %v4696_v27 = vmax.f32 %v3612_v19, 0.0  ;;  %9252 = vmatprep.mubr.bf16.mxu0 %v9796_v10  ;;  %9508 = vmatprep.mubr.bf16.mxu1 %v9797_v11  ;;  %v9803_v14 = vld [vmem:[%s9942_s24 + $0x6b8] sm:$0xff]   ;;  %v9804_v19 = vld [vmem:[%s9942_s24 + $0x2c0] sm:$0xff]  }
 0x176   : > { %7000 = vst.msk [vmem:[%s10079_s13 + $0x100] sm:$0xf] %vm6935_vm0, %v8356_v20  ;;  %7256 = vst.msk [vmem:[%s10079_s13 + $0x500] sm:$0xf] %vm6935_vm0, %v8612_v21  ;;  %v2609_v28 = vadd.f32 %v10354_v46, %v9154_v22  ;;  %v3633_v29 = vadd.f32 %v10354_v46, %v9410_v23  ;;  %v2600_v30 = vpop.f32.mrf.mxu0  ;;  %v3624_v31 = vpop.f32.mrf.mxu1  ;;  %v9805_v20 = vld [vmem:[%s9942_s24 + $0x6c0] sm:$0xff]  }
 0x177   : > { %7003 = vst.msk [vmem:[%s10079_s13 + $0x10c] sm:$0xf] %vm6935_vm0, %v8359_v24  ;;  %7259 = vst.msk [vmem:[%s10079_s13 + $0x50c] sm:$0xf] %vm6935_vm0, %v8615_v25  ;;  %v8357_v32 = vpack.c.bf16 %v4440_v26, %v4440_v26  ;;  %v8613_v33 = vpack.c.bf16 %v4696_v27, %v4696_v27  ;;  %v2601_v34 = vadd.f32 %v10354_v46, %v2600_v30 }
 0x178   : > { %v3625_v35 = vadd.f32 %v10354_v46, %v3624_v31  ;;  %v4445_v36 = vmax.f32 %v2609_v28, 0.0  ;;  %v4701_v37 = vmax.f32 %v3633_v29, 0.0  ;;  %v9155_v38 = vpop.f32.mrf.mxu0  ;;  %v9411_v39 = vpop.f32.mrf.mxu1 }
 0x179   : > { %7001 = vst.msk [vmem:[%s10079_s13 + $0x104] sm:$0xf] %vm6935_vm0, %v8357_v32  ;;  %7257 = vst.msk [vmem:[%s10079_s13 + $0x504] sm:$0xf] %vm6935_vm0, %v8613_v33  ;;  %v4443_v42 = vmax.f32 %v2601_v34, 0.0  ;;  %v2612_v44 = vadd.f32 %v10354_v46, %v9155_v38  ;;  %v3636_v45 = vadd.f32 %v10354_v46, %v9411_v39 }
 0x17a   : > { %v4699_v43 = vmax.f32 %v3625_v35, 0.0  ;;  %v8362_v48 = vpack.c.bf16 %v4445_v36, %v4445_v36  ;;  %v8618_v49 = vpack.c.bf16 %v4701_v37, %v4701_v37  ;;  %v2603_v50 = vpop.f32.mrf.mxu0  ;;  %v3627_v51 = vpop.f32.mrf.mxu1 }
 0x17b   : > { %v8360_v53 = vpack.c.bf16 %v4443_v42, %v4443_v42  ;;  %v4446_v55 = vmax.f32 %v2612_v44, 0.0  ;;  %v4702_v56 = vmax.f32 %v3636_v45, 0.0  ;;  %v2604_v57 = vadd.f32 %v10354_v46, %v2603_v50  ;;  %v9806_v50 = vld [vmem:[%s9942_s24 + $0x2c8] sm:$0xff]  }
 0x17c   : > { %v8616_v54 = vpack.c.bf16 %v4699_v43, %v4699_v43  ;;  %7006 = vst.msk [vmem:[%s10079_s13 + $0x118] sm:$0xf] %vm6935_vm0, %v8362_v48  ;;  %7262 = vst.msk [vmem:[%s10079_s13 + $0x518] sm:$0xf] %vm6935_vm0, %v8618_v49  ;;  %v3628_v58 = vadd.f32 %v10354_v46, %v3627_v51  ;;  %v9158_v59 = vpop.f32.mrf.mxu0  ;;  %9253 = vmatmul.mubr.bf16.gmra.mxu0 %v9798_v40  ;;  %v9414_v60 = vpop.f32.mrf.mxu1  ;;  %9509 = vmatmul.mubr.bf16.gmra.mxu1 %v9799_v41  ;;  %v9807_v51 = vld [vmem:[%s9942_s24 + $0x6c8] sm:$0xff]  }
 0x17d   : > { %7004 = vst.msk [vmem:[%s10079_s13 + $0x110] sm:$0xf] %vm6935_vm0, %v8360_v53  ;;  %v8363_v61 = vpack.c.bf16 %v4446_v55, %v4446_v55  ;;  %v8619_v62 = vpack.c.bf16 %v4702_v56, %v4702_v56  ;;  %v2625_v63 = vadd.f32 %v10354_v46, %v9158_v59  ;;  %v3649_v0 = vadd.f32 %v10354_v46, %v9414_v60  ;;  %v9808_v56 = vld [vmem:[%s9942_s24 + $0x2d0] sm:$0xff]  }
 0x17e   : > { %7260 = vst.msk [vmem:[%s10079_s13 + $0x510] sm:$0xf] %vm6935_vm0, %v8616_v54  ;;  %9256 = vmatprep.mubr.bf16.mxu0 %v9800_v47  ;;  %v4444_v1 = vmax.f32 %v2604_v57, 0.0  ;;  %v4700_v2 = vmax.f32 %v3628_v58, 0.0  ;;  %v2616_v3 = vpop.f32.mrf.mxu0  ;;  %v3640_v4 = vpop.f32.mrf.mxu1  ;;  %9512 = vmatprep.mubr.bf16.mxu1 %v9801_v52  ;;  %v9809_v57 = vld [vmem:[%s9942_s24 + $0x6d0] sm:$0xff]  }
 0x17f   : > { %7007 = vst.msk [vmem:[%s10079_s13 + $0x11c] sm:$0xf] %vm6935_vm0, %v8363_v61  ;;  %7263 = vst.msk [vmem:[%s10079_s13 + $0x51c] sm:$0xf] %vm6935_vm0, %v8619_v62  ;;  %v4449_v5 = vmax.f32 %v2625_v63, 0.0  ;;  %v4705_v6 = vmax.f32 %v3649_v0, 0.0  ;;  %v2617_v7 = vadd.f32 %v10354_v46, %v2616_v3  ;;  %v3641_v8 = vadd.f32 %v10354_v46, %v3640_v4 }
 0x180   : > { %v8361_v9 = vpack.c.bf16 %v4444_v1, %v4444_v1  ;;  %v8617_v10 = vpack.c.bf16 %v4700_v2, %v4700_v2  ;;  %v9159_v11 = vpop.f32.mrf.mxu0  ;;  %v9415_v12 = vpop.f32.mrf.mxu1 }
 0x181   : > { %v8366_v15 = vpack.c.bf16 %v4449_v5, %v4449_v5  ;;  %v8622_v16 = vpack.c.bf16 %v4705_v6, %v4705_v6  ;;  %v4447_v17 = vmax.f32 %v2617_v7, 0.0  ;;  %v4703_v18 = vmax.f32 %v3641_v8, 0.0 }
 0x182   : > { %7005 = vst.msk [vmem:[%s10079_s13 + $0x114] sm:$0xf] %vm6935_vm0, %v8361_v9  ;;  %7261 = vst.msk [vmem:[%s10079_s13 + $0x514] sm:$0xf] %vm6935_vm0, %v8617_v10  ;;  %v2628_v21 = vadd.f32 %v10354_v46, %v9159_v11  ;;  %v3652_v22 = vadd.f32 %v10354_v46, %v9415_v12  ;;  %v2619_v23 = vpop.f32.mrf.mxu0  ;;  %v3643_v24 = vpop.f32.mrf.mxu1 }
 0x183   : > { %7010 = vst.msk [vmem:[%s10079_s13 + $0x128] sm:$0xf] %vm6935_vm0, %v8366_v15  ;;  %7266 = vst.msk [vmem:[%s10079_s13 + $0x528] sm:$0xf] %vm6935_vm0, %v8622_v16  ;;  %v8364_v25 = vpack.c.bf16 %v4447_v17, %v4447_v17  ;;  %v8620_v26 = vpack.c.bf16 %v4703_v18, %v4703_v18  ;;  %v2620_v27 = vadd.f32 %v10354_v46, %v2619_v23  ;;  %v9811_v23 = vld [vmem:[%s9942_s24 + $0x6d8] sm:$0xff]  }
 0x184   : > { %v3644_v28 = vadd.f32 %v10354_v46, %v3643_v24  ;;  %v4450_v29 = vmax.f32 %v2628_v21, 0.0  ;;  %v4706_v30 = vmax.f32 %v3652_v22, 0.0  ;;  %v9162_v31 = vpop.f32.mrf.mxu0  ;;  %9257 = vmatmul.mubr.bf16.gmra.mxu0 %v9802_v13  ;;  %v9418_v32 = vpop.f32.mrf.mxu1  ;;  %9513 = vmatmul.mubr.bf16.gmra.mxu1 %v9803_v14  ;;  %v9810_v22 = vld [vmem:[%s9942_s24 + $0x2d8] sm:$0xff]  }
 0x185   : > { %7008 = vst.msk [vmem:[%s10079_s13 + $0x120] sm:$0xf] %vm6935_vm0, %v8364_v25  ;;  %7264 = vst.msk [vmem:[%s10079_s13 + $0x520] sm:$0xf] %vm6935_vm0, %v8620_v26  ;;  %v4448_v33 = vmax.f32 %v2620_v27, 0.0  ;;  %v2641_v35 = vadd.f32 %v10354_v46, %v9162_v31  ;;  %v3665_v36 = vadd.f32 %v10354_v46, %v9418_v32  ;;  %9260 = vmatprep.mubr.bf16.mxu0 %v9804_v19  ;;  %9516 = vmatprep.mubr.bf16.mxu1 %v9805_v20 }
 0x186   : > { %v4704_v34 = vmax.f32 %v3644_v28, 0.0  ;;  %v8367_v37 = vpack.c.bf16 %v4450_v29, %v4450_v29  ;;  %v8623_v38 = vpack.c.bf16 %v4706_v30, %v4706_v30  ;;  %v2632_v39 = vpop.f32.mrf.mxu0  ;;  %v3656_v40 = vpop.f32.mrf.mxu1  ;;  %v9812_v28 = vld [vmem:[%s9942_s24 + $0x2e0] sm:$0xff]  }
 0x187   : > { %v8365_v41 = vpack.c.bf16 %v4448_v33, %v4448_v33  ;;  %v4453_v43 = vmax.f32 %v2641_v35, 0.0  ;;  %v4709_v44 = vmax.f32 %v3665_v36, 0.0  ;;  %v2633_v45 = vadd.f32 %v10354_v46, %v2632_v39  ;;  %v9813_v33 = vld [vmem:[%s9942_s24 + $0x6e0] sm:$0xff]  }
 0x188   : > { %v8621_v42 = vpack.c.bf16 %v4704_v34, %v4704_v34  ;;  %7011 = vst.msk [vmem:[%s10079_s13 + $0x12c] sm:$0xf] %vm6935_vm0, %v8367_v37  ;;  %7267 = vst.msk [vmem:[%s10079_s13 + $0x52c] sm:$0xf] %vm6935_vm0, %v8623_v38  ;;  %v3657_v47 = vadd.f32 %v10354_v46, %v3656_v40  ;;  %v9163_v48 = vpop.f32.mrf.mxu0  ;;  %v9419_v49 = vpop.f32.mrf.mxu1 }
 0x189   : > { %7009 = vst.msk [vmem:[%s10079_s13 + $0x124] sm:$0xf] %vm6935_vm0, %v8365_v41  ;;  %v8370_v52 = vpack.c.bf16 %v4453_v43, %v4453_v43  ;;  %v8626_v53 = vpack.c.bf16 %v4709_v44, %v4709_v44  ;;  %v2644_v54 = vadd.f32 %v10354_v46, %v9163_v48  ;;  %v3668_v55 = vadd.f32 %v10354_v46, %v9419_v49  ;;  %v10661_v44 = vld [vmem:[%s11793_s2] ss:$0 sm:$0xff] }
 0x18a   : > { %7265 = vst.msk [vmem:[%s10079_s13 + $0x524] sm:$0xf] %vm6935_vm0, %v8621_v42  ;;  %v4451_v58 = vmax.f32 %v2633_v45, 0.0  ;;  %v4707_v59 = vmax.f32 %v3657_v47, 0.0  ;;  %v2635_v60 = vpop.f32.mrf.mxu0  ;;  %v3659_v61 = vpop.f32.mrf.mxu1 }
 0x18b   : > { %7014 = vst.msk [vmem:[%s10079_s13 + $0x138] sm:$0xf] %vm6935_vm0, %v8370_v52  ;;  %7270 = vst.msk [vmem:[%s10079_s13 + $0x538] sm:$0xf] %vm6935_vm0, %v8626_v53  ;;  %v4454_v62 = vmax.f32 %v2644_v54, 0.0  ;;  %v4710_v63 = vmax.f32 %v3668_v55, 0.0  ;;  %v2636_v0 = vadd.f32 %v10354_v46, %v2635_v60  ;;  %v3660_v1 = vadd.f32 %v10354_v46, %v3659_v61 }
 0x18c   : > { %v8368_v2 = vpack.c.bf16 %v4451_v58, %v4451_v58  ;;  %v8624_v3 = vpack.c.bf16 %v4707_v59, %v4707_v59  ;;  %v9166_v4 = vpop.f32.mrf.mxu0  ;;  %9261 = vmatmul.mubr.bf16.gmra.mxu0 %v9806_v50  ;;  %v9422_v5 = vpop.f32.mrf.mxu1  ;;  %9517 = vmatmul.mubr.bf16.gmra.mxu1 %v9807_v51  ;;  %v9814_v59 = vld [vmem:[%s9942_s24 + $0x2e8] sm:$0xff]  }
 0x18d   : > { %v8371_v6 = vpack.c.bf16 %v4454_v62, %v4454_v62  ;;  %v8627_v7 = vpack.c.bf16 %v4710_v63, %v4710_v63  ;;  %v4452_v8 = vmax.f32 %v2636_v0, 0.0  ;;  %v4708_v9 = vmax.f32 %v3660_v1, 0.0  ;;  %9264 = vmatprep.mubr.bf16.mxu0 %v9808_v56  ;;  %9520 = vmatprep.mubr.bf16.mxu1 %v9809_v57  ;;  %v9815_v60 = vld [vmem:[%s9942_s24 + $0x6e8] sm:$0xff]   ;;  %v9816_v1 = vld [vmem:[%s9942_s24 + $0x2f0] sm:$0xff]  }
 0x18e   : > { %7012 = vst.msk [vmem:[%s10079_s13 + $0x130] sm:$0xf] %vm6935_vm0, %v8368_v2  ;;  %7268 = vst.msk [vmem:[%s10079_s13 + $0x530] sm:$0xf] %vm6935_vm0, %v8624_v3  ;;  %v2657_v10 = vadd.f32 %v10354_v46, %v9166_v4  ;;  %v3681_v11 = vadd.f32 %v10354_v46, %v9422_v5  ;;  %v2648_v12 = vpop.f32.mrf.mxu0  ;;  %v3672_v13 = vpop.f32.mrf.mxu1  ;;  %v9817_v2 = vld [vmem:[%s9942_s24 + $0x6f0] sm:$0xff]  }
 0x18f   : > { %7015 = vst.msk [vmem:[%s10079_s13 + $0x13c] sm:$0xf] %vm6935_vm0, %v8371_v6  ;;  %7271 = vst.msk [vmem:[%s10079_s13 + $0x53c] sm:$0xf] %vm6935_vm0, %v8627_v7  ;;  %v8369_v14 = vpack.c.bf16 %v4452_v8, %v4452_v8  ;;  %v8625_v15 = vpack.c.bf16 %v4708_v9, %v4708_v9  ;;  %v2649_v16 = vadd.f32 %v10354_v46, %v2648_v12 }
 0x190   : > { %v3673_v17 = vadd.f32 %v10354_v46, %v3672_v13  ;;  %v4457_v18 = vmax.f32 %v2657_v10, 0.0  ;;  %v4713_v19 = vmax.f32 %v3681_v11, 0.0  ;;  %v9167_v20 = vpop.f32.mrf.mxu0  ;;  %v9423_v21 = vpop.f32.mrf.mxu1 }
 0x191   : > { %7013 = vst.msk [vmem:[%s10079_s13 + $0x134] sm:$0xf] %vm6935_vm0, %v8369_v14  ;;  %7269 = vst.msk [vmem:[%s10079_s13 + $0x534] sm:$0xf] %vm6935_vm0, %v8625_v15  ;;  %v4455_v24 = vmax.f32 %v2649_v16, 0.0  ;;  %v2660_v26 = vadd.f32 %v10354_v46, %v9167_v20  ;;  %v3684_v27 = vadd.f32 %v10354_v46, %v9423_v21 }
 0x192   : > { %v4711_v25 = vmax.f32 %v3673_v17, 0.0  ;;  %v8374_v29 = vpack.c.bf16 %v4457_v18, %v4457_v18  ;;  %v8630_v30 = vpack.c.bf16 %v4713_v19, %v4713_v19  ;;  %v2651_v31 = vpop.f32.mrf.mxu0  ;;  %v3675_v32 = vpop.f32.mrf.mxu1 }
 0x193   : > { %v8372_v34 = vpack.c.bf16 %v4455_v24, %v4455_v24  ;;  %v4458_v36 = vmax.f32 %v2660_v26, 0.0  ;;  %v4714_v37 = vmax.f32 %v3684_v27, 0.0  ;;  %v2652_v38 = vadd.f32 %v10354_v46, %v2651_v31  ;;  %v9818_v31 = vld [vmem:[%s9942_s24 + $0x2f8] sm:$0xff]  }
 0x194   : > { %v8628_v35 = vpack.c.bf16 %v4711_v25, %v4711_v25  ;;  %7018 = vst.msk [vmem:[%s10079_s13 + $0x148] sm:$0xf] %vm6935_vm0, %v8374_v29  ;;  %7274 = vst.msk [vmem:[%s10079_s13 + $0x548] sm:$0xf] %vm6935_vm0, %v8630_v30  ;;  %v3676_v39 = vadd.f32 %v10354_v46, %v3675_v32  ;;  %v9170_v40 = vpop.f32.mrf.mxu0  ;;  %9265 = vmatmul.mubr.bf16.gmra.mxu0 %v9810_v22  ;;  %v9426_v41 = vpop.f32.mrf.mxu1  ;;  %9521 = vmatmul.mubr.bf16.gmra.mxu1 %v9811_v23  ;;  %v9819_v32 = vld [vmem:[%s9942_s24 + $0x6f8] sm:$0xff]  }
 0x195   : > { %7016 = vst.msk [vmem:[%s10079_s13 + $0x140] sm:$0xf] %vm6935_vm0, %v8372_v34  ;;  %v8375_v42 = vpack.c.bf16 %v4458_v36, %v4458_v36  ;;  %v8631_v43 = vpack.c.bf16 %v4714_v37, %v4714_v37  ;;  %v2673_v45 = vadd.f32 %v10661_v44, %v9170_v40  ;;  %v3697_v46 = vadd.f32 %v10661_v44, %v9426_v41  ;;  %v9820_v37 = vld [vmem:[%s9942_s24 + $0x300] sm:$0xff]  }
 0x196   : > { %7272 = vst.msk [vmem:[%s10079_s13 + $0x540] sm:$0xf] %vm6935_vm0, %v8628_v35  ;;  %9268 = vmatprep.mubr.bf16.mxu0 %v9812_v28  ;;  %v4456_v47 = vmax.f32 %v2652_v38, 0.0  ;;  %v4712_v48 = vmax.f32 %v3676_v39, 0.0  ;;  %v2664_v49 = vpop.f32.mrf.mxu0  ;;  %v3688_v50 = vpop.f32.mrf.mxu1  ;;  %9524 = vmatprep.mubr.bf16.mxu1 %v9813_v33  ;;  %v9821_v38 = vld [vmem:[%s9942_s24 + $0x700] sm:$0xff]  }
 0x197   : > { %7019 = vst.msk [vmem:[%s10079_s13 + $0x14c] sm:$0xf] %vm6935_vm0, %v8375_v42  ;;  %7275 = vst.msk [vmem:[%s10079_s13 + $0x54c] sm:$0xf] %vm6935_vm0, %v8631_v43  ;;  %v4461_v51 = vmax.f32 %v2673_v45, 0.0  ;;  %v4717_v52 = vmax.f32 %v3697_v46, 0.0  ;;  %v2665_v53 = vadd.f32 %v10661_v44, %v2664_v49  ;;  %v3689_v54 = vadd.f32 %v10661_v44, %v3688_v50 }
 0x198   : > { %v8373_v55 = vpack.c.bf16 %v4456_v47, %v4456_v47  ;;  %v8629_v56 = vpack.c.bf16 %v4712_v48, %v4712_v48  ;;  %v9171_v57 = vpop.f32.mrf.mxu0  ;;  %v9427_v58 = vpop.f32.mrf.mxu1 }
 0x199   : > { %v8378_v61 = vpack.c.bf16 %v4461_v51, %v4461_v51  ;;  %v8634_v62 = vpack.c.bf16 %v4717_v52, %v4717_v52  ;;  %v4459_v63 = vmax.f32 %v2665_v53, 0.0  ;;  %v4715_v0 = vmax.f32 %v3689_v54, 0.0 }
 0x19a   : > { %7017 = vst.msk [vmem:[%s10079_s13 + $0x144] sm:$0xf] %vm6935_vm0, %v8373_v55  ;;  %7273 = vst.msk [vmem:[%s10079_s13 + $0x544] sm:$0xf] %vm6935_vm0, %v8629_v56  ;;  %v2676_v3 = vadd.f32 %v10661_v44, %v9171_v57  ;;  %v3700_v4 = vadd.f32 %v10661_v44, %v9427_v58  ;;  %v2667_v5 = vpop.f32.mrf.mxu0  ;;  %v3691_v6 = vpop.f32.mrf.mxu1 }
 0x19b   : > { %7022 = vst.msk [vmem:[%s10079_s13 + $0x158] sm:$0xf] %vm6935_vm0, %v8378_v61  ;;  %7278 = vst.msk [vmem:[%s10079_s13 + $0x558] sm:$0xf] %vm6935_vm0, %v8634_v62  ;;  %v8376_v7 = vpack.c.bf16 %v4459_v63, %v4459_v63  ;;  %v8632_v8 = vpack.c.bf16 %v4715_v0, %v4715_v0  ;;  %v2668_v9 = vadd.f32 %v10661_v44, %v2667_v5  ;;  %v9823_v5 = vld [vmem:[%s9942_s24 + $0x708] sm:$0xff]  }
 0x19c   : > { %v3692_v10 = vadd.f32 %v10661_v44, %v3691_v6  ;;  %v4462_v11 = vmax.f32 %v2676_v3, 0.0  ;;  %v4718_v12 = vmax.f32 %v3700_v4, 0.0  ;;  %v9174_v13 = vpop.f32.mrf.mxu0  ;;  %9269 = vmatmul.mubr.bf16.gmra.mxu0 %v9814_v59  ;;  %v9430_v14 = vpop.f32.mrf.mxu1  ;;  %9525 = vmatmul.mubr.bf16.gmra.mxu1 %v9815_v60  ;;  %v9822_v4 = vld [vmem:[%s9942_s24 + $0x308] sm:$0xff]  }
 0x19d   : > { %7020 = vst.msk [vmem:[%s10079_s13 + $0x150] sm:$0xf] %vm6935_vm0, %v8376_v7  ;;  %7276 = vst.msk [vmem:[%s10079_s13 + $0x550] sm:$0xf] %vm6935_vm0, %v8632_v8  ;;  %v4460_v15 = vmax.f32 %v2668_v9, 0.0  ;;  %v2689_v17 = vadd.f32 %v10661_v44, %v9174_v13  ;;  %v3713_v18 = vadd.f32 %v10661_v44, %v9430_v14  ;;  %9272 = vmatprep.mubr.bf16.mxu0 %v9816_v1  ;;  %9528 = vmatprep.mubr.bf16.mxu1 %v9817_v2 }
 0x19e   : > { %v4716_v16 = vmax.f32 %v3692_v10, 0.0  ;;  %v8379_v19 = vpack.c.bf16 %v4462_v11, %v4462_v11  ;;  %v8635_v20 = vpack.c.bf16 %v4718_v12, %v4718_v12  ;;  %v2680_v21 = vpop.f32.mrf.mxu0  ;;  %v3704_v22 = vpop.f32.mrf.mxu1  ;;  %v9824_v10 = vld [vmem:[%s9942_s24 + $0x310] sm:$0xff]  }
 0x19f   : > { %v8377_v23 = vpack.c.bf16 %v4460_v15, %v4460_v15  ;;  %v4465_v25 = vmax.f32 %v2689_v17, 0.0  ;;  %v4721_v26 = vmax.f32 %v3713_v18, 0.0  ;;  %v2681_v27 = vadd.f32 %v10661_v44, %v2680_v21  ;;  %v9825_v15 = vld [vmem:[%s9942_s24 + $0x710] sm:$0xff]  }
 0x1a0   : > { %v8633_v24 = vpack.c.bf16 %v4716_v16, %v4716_v16  ;;  %7023 = vst.msk [vmem:[%s10079_s13 + $0x15c] sm:$0xf] %vm6935_vm0, %v8379_v19  ;;  %7279 = vst.msk [vmem:[%s10079_s13 + $0x55c] sm:$0xf] %vm6935_vm0, %v8635_v20  ;;  %v3705_v28 = vadd.f32 %v10661_v44, %v3704_v22  ;;  %v9175_v29 = vpop.f32.mrf.mxu0  ;;  %v9431_v30 = vpop.f32.mrf.mxu1 }
 0x1a1   : > { %7021 = vst.msk [vmem:[%s10079_s13 + $0x154] sm:$0xf] %vm6935_vm0, %v8377_v23  ;;  %v8382_v33 = vpack.c.bf16 %v4465_v25, %v4465_v25  ;;  %v8638_v34 = vpack.c.bf16 %v4721_v26, %v4721_v26  ;;  %v2692_v35 = vadd.f32 %v10661_v44, %v9175_v29  ;;  %v3716_v36 = vadd.f32 %v10661_v44, %v9431_v30 }
 0x1a2   : > { %7277 = vst.msk [vmem:[%s10079_s13 + $0x554] sm:$0xf] %vm6935_vm0, %v8633_v24  ;;  %v4463_v39 = vmax.f32 %v2681_v27, 0.0  ;;  %v4719_v40 = vmax.f32 %v3705_v28, 0.0  ;;  %v2683_v41 = vpop.f32.mrf.mxu0  ;;  %v3707_v42 = vpop.f32.mrf.mxu1 }
 0x1a3   : > { %7026 = vst.msk [vmem:[%s10079_s13 + $0x168] sm:$0xf] %vm6935_vm0, %v8382_v33  ;;  %7282 = vst.msk [vmem:[%s10079_s13 + $0x568] sm:$0xf] %vm6935_vm0, %v8638_v34  ;;  %v4466_v43 = vmax.f32 %v2692_v35, 0.0  ;;  %v4722_v45 = vmax.f32 %v3716_v36, 0.0  ;;  %v2684_v46 = vadd.f32 %v10661_v44, %v2683_v41  ;;  %v3708_v47 = vadd.f32 %v10661_v44, %v3707_v42 }
 0x1a4   : > { %v8380_v48 = vpack.c.bf16 %v4463_v39, %v4463_v39  ;;  %v8636_v49 = vpack.c.bf16 %v4719_v40, %v4719_v40  ;;  %v9178_v50 = vpop.f32.mrf.mxu0  ;;  %9273 = vmatmul.mubr.bf16.gmra.mxu0 %v9818_v31  ;;  %v9434_v51 = vpop.f32.mrf.mxu1  ;;  %9529 = vmatmul.mubr.bf16.gmra.mxu1 %v9819_v32  ;;  %v9826_v40 = vld [vmem:[%s9942_s24 + $0x318] sm:$0xff]  }
 0x1a5   : > { %v8383_v52 = vpack.c.bf16 %v4466_v43, %v4466_v43  ;;  %v8639_v53 = vpack.c.bf16 %v4722_v45, %v4722_v45  ;;  %v4464_v54 = vmax.f32 %v2684_v46, 0.0  ;;  %v4720_v55 = vmax.f32 %v3708_v47, 0.0  ;;  %9276 = vmatprep.mubr.bf16.mxu0 %v9820_v37  ;;  %9532 = vmatprep.mubr.bf16.mxu1 %v9821_v38  ;;  %v9827_v41 = vld [vmem:[%s9942_s24 + $0x718] sm:$0xff]   ;;  %v9828_v47 = vld [vmem:[%s9942_s24 + $0x320] sm:$0xff]  }
 0x1a6   : > { %7024 = vst.msk [vmem:[%s10079_s13 + $0x160] sm:$0xf] %vm6935_vm0, %v8380_v48  ;;  %7280 = vst.msk [vmem:[%s10079_s13 + $0x560] sm:$0xf] %vm6935_vm0, %v8636_v49  ;;  %v2705_v56 = vadd.f32 %v10661_v44, %v9178_v50  ;;  %v3729_v57 = vadd.f32 %v10661_v44, %v9434_v51  ;;  %v2696_v58 = vpop.f32.mrf.mxu0  ;;  %v3720_v59 = vpop.f32.mrf.mxu1  ;;  %v9829_v48 = vld [vmem:[%s9942_s24 + $0x720] sm:$0xff]  }
 0x1a7   : > { %7027 = vst.msk [vmem:[%s10079_s13 + $0x16c] sm:$0xf] %vm6935_vm0, %v8383_v52  ;;  %7283 = vst.msk [vmem:[%s10079_s13 + $0x56c] sm:$0xf] %vm6935_vm0, %v8639_v53  ;;  %v8381_v60 = vpack.c.bf16 %v4464_v54, %v4464_v54  ;;  %v8637_v61 = vpack.c.bf16 %v4720_v55, %v4720_v55  ;;  %v2697_v62 = vadd.f32 %v10661_v44, %v2696_v58 }
 0x1a8   : > { %v3721_v63 = vadd.f32 %v10661_v44, %v3720_v59  ;;  %v4469_v0 = vmax.f32 %v2705_v56, 0.0  ;;  %v4725_v1 = vmax.f32 %v3729_v57, 0.0  ;;  %v9179_v2 = vpop.f32.mrf.mxu0  ;;  %v9435_v3 = vpop.f32.mrf.mxu1 }
 0x1a9   : > { %7025 = vst.msk [vmem:[%s10079_s13 + $0x164] sm:$0xf] %vm6935_vm0, %v8381_v60  ;;  %7281 = vst.msk [vmem:[%s10079_s13 + $0x564] sm:$0xf] %vm6935_vm0, %v8637_v61  ;;  %v4467_v6 = vmax.f32 %v2697_v62, 0.0  ;;  %v2708_v8 = vadd.f32 %v10661_v44, %v9179_v2  ;;  %v3732_v9 = vadd.f32 %v10661_v44, %v9435_v3 }
 0x1aa   : > { %v4723_v7 = vmax.f32 %v3721_v63, 0.0  ;;  %v8386_v11 = vpack.c.bf16 %v4469_v0, %v4469_v0  ;;  %v8642_v12 = vpack.c.bf16 %v4725_v1, %v4725_v1  ;;  %v2699_v13 = vpop.f32.mrf.mxu0  ;;  %v3723_v14 = vpop.f32.mrf.mxu1 }
 0x1ab   : > { %v8384_v16 = vpack.c.bf16 %v4467_v6, %v4467_v6  ;;  %v4470_v18 = vmax.f32 %v2708_v8, 0.0  ;;  %v4726_v19 = vmax.f32 %v3732_v9, 0.0  ;;  %v2700_v20 = vadd.f32 %v10661_v44, %v2699_v13  ;;  %v9830_v13 = vld [vmem:[%s9942_s24 + $0x328] sm:$0xff]  }
 0x1ac   : > { %v8640_v17 = vpack.c.bf16 %v4723_v7, %v4723_v7  ;;  %7030 = vst.msk [vmem:[%s10079_s13 + $0x178] sm:$0xf] %vm6935_vm0, %v8386_v11  ;;  %7286 = vst.msk [vmem:[%s10079_s13 + $0x578] sm:$0xf] %vm6935_vm0, %v8642_v12  ;;  %v3724_v21 = vadd.f32 %v10661_v44, %v3723_v14  ;;  %v9182_v22 = vpop.f32.mrf.mxu0  ;;  %9277 = vmatmul.mubr.bf16.gmra.mxu0 %v9822_v4  ;;  %v9438_v23 = vpop.f32.mrf.mxu1  ;;  %9533 = vmatmul.mubr.bf16.gmra.mxu1 %v9823_v5  ;;  %v9831_v14 = vld [vmem:[%s9942_s24 + $0x728] sm:$0xff]  }
 0x1ad   : > { %7028 = vst.msk [vmem:[%s10079_s13 + $0x170] sm:$0xf] %vm6935_vm0, %v8384_v16  ;;  %v8387_v24 = vpack.c.bf16 %v4470_v18, %v4470_v18  ;;  %v8643_v25 = vpack.c.bf16 %v4726_v19, %v4726_v19  ;;  %v2721_v26 = vadd.f32 %v10661_v44, %v9182_v22  ;;  %v3745_v27 = vadd.f32 %v10661_v44, %v9438_v23  ;;  %v9832_v19 = vld [vmem:[%s9942_s24 + $0x330] sm:$0xff]  }
 0x1ae   : > { %7284 = vst.msk [vmem:[%s10079_s13 + $0x570] sm:$0xf] %vm6935_vm0, %v8640_v17  ;;  %9280 = vmatprep.mubr.bf16.mxu0 %v9824_v10  ;;  %v4468_v28 = vmax.f32 %v2700_v20, 0.0  ;;  %v4724_v29 = vmax.f32 %v3724_v21, 0.0  ;;  %v2712_v30 = vpop.f32.mrf.mxu0  ;;  %v3736_v31 = vpop.f32.mrf.mxu1  ;;  %9536 = vmatprep.mubr.bf16.mxu1 %v9825_v15  ;;  %v9833_v20 = vld [vmem:[%s9942_s24 + $0x730] sm:$0xff]  }
 0x1af   : > { %7031 = vst.msk [vmem:[%s10079_s13 + $0x17c] sm:$0xf] %vm6935_vm0, %v8387_v24  ;;  %7287 = vst.msk [vmem:[%s10079_s13 + $0x57c] sm:$0xf] %vm6935_vm0, %v8643_v25  ;;  %v4473_v32 = vmax.f32 %v2721_v26, 0.0  ;;  %v4729_v33 = vmax.f32 %v3745_v27, 0.0  ;;  %v2713_v34 = vadd.f32 %v10661_v44, %v2712_v30  ;;  %v3737_v35 = vadd.f32 %v10661_v44, %v3736_v31 }
 0x1b0   : > { %v8385_v36 = vpack.c.bf16 %v4468_v28, %v4468_v28  ;;  %v8641_v37 = vpack.c.bf16 %v4724_v29, %v4724_v29  ;;  %v9183_v38 = vpop.f32.mrf.mxu0  ;;  %v9439_v39 = vpop.f32.mrf.mxu1 }
 0x1b1   : > { %v8390_v42 = vpack.c.bf16 %v4473_v32, %v4473_v32  ;;  %v8646_v43 = vpack.c.bf16 %v4729_v33, %v4729_v33  ;;  %v4471_v45 = vmax.f32 %v2713_v34, 0.0  ;;  %v4727_v46 = vmax.f32 %v3737_v35, 0.0 }
 0x1b2   : > { %7029 = vst.msk [vmem:[%s10079_s13 + $0x174] sm:$0xf] %vm6935_vm0, %v8385_v36  ;;  %7285 = vst.msk [vmem:[%s10079_s13 + $0x574] sm:$0xf] %vm6935_vm0, %v8641_v37  ;;  %v2724_v49 = vadd.f32 %v10661_v44, %v9183_v38  ;;  %v3748_v50 = vadd.f32 %v10661_v44, %v9439_v39  ;;  %v2715_v51 = vpop.f32.mrf.mxu0  ;;  %v3739_v52 = vpop.f32.mrf.mxu1 }
 0x1b3   : > { %7034 = vst.msk [vmem:[%s10079_s13 + $0x188] sm:$0xf] %vm6935_vm0, %v8390_v42  ;;  %7290 = vst.msk [vmem:[%s10079_s13 + $0x588] sm:$0xf] %vm6935_vm0, %v8646_v43  ;;  %v8388_v53 = vpack.c.bf16 %v4471_v45, %v4471_v45  ;;  %v8644_v54 = vpack.c.bf16 %v4727_v46, %v4727_v46  ;;  %v2716_v55 = vadd.f32 %v10661_v44, %v2715_v51  ;;  %v9835_v51 = vld [vmem:[%s9942_s24 + $0x738] sm:$0xff]  }
 0x1b4   : > { %v3740_v56 = vadd.f32 %v10661_v44, %v3739_v52  ;;  %v4474_v57 = vmax.f32 %v2724_v49, 0.0  ;;  %v4730_v58 = vmax.f32 %v3748_v50, 0.0  ;;  %v9186_v59 = vpop.f32.mrf.mxu0  ;;  %9281 = vmatmul.mubr.bf16.gmra.mxu0 %v9826_v40  ;;  %v9442_v60 = vpop.f32.mrf.mxu1  ;;  %9537 = vmatmul.mubr.bf16.gmra.mxu1 %v9827_v41  ;;  %v9834_v50 = vld [vmem:[%s9942_s24 + $0x338] sm:$0xff]  }
 0x1b5   : > { %7032 = vst.msk [vmem:[%s10079_s13 + $0x180] sm:$0xf] %vm6935_vm0, %v8388_v53  ;;  %7288 = vst.msk [vmem:[%s10079_s13 + $0x580] sm:$0xf] %vm6935_vm0, %v8644_v54  ;;  %v4472_v61 = vmax.f32 %v2716_v55, 0.0  ;;  %v2737_v63 = vadd.f32 %v10661_v44, %v9186_v59  ;;  %v3761_v0 = vadd.f32 %v10661_v44, %v9442_v60  ;;  %9284 = vmatprep.mubr.bf16.mxu0 %v9828_v47  ;;  %9540 = vmatprep.mubr.bf16.mxu1 %v9829_v48 }
 0x1b6   : > { %v4728_v62 = vmax.f32 %v3740_v56, 0.0  ;;  %v8391_v1 = vpack.c.bf16 %v4474_v57, %v4474_v57  ;;  %v8647_v2 = vpack.c.bf16 %v4730_v58, %v4730_v58  ;;  %v2728_v3 = vpop.f32.mrf.mxu0  ;;  %v3752_v4 = vpop.f32.mrf.mxu1  ;;  %v9836_v56 = vld [vmem:[%s9942_s24 + $0x340] sm:$0xff]  }
 0x1b7   : > { %v8389_v5 = vpack.c.bf16 %v4472_v61, %v4472_v61  ;;  %v4477_v7 = vmax.f32 %v2737_v63, 0.0  ;;  %v4733_v8 = vmax.f32 %v3761_v0, 0.0  ;;  %v2729_v9 = vadd.f32 %v10661_v44, %v2728_v3  ;;  %v9837_v61 = vld [vmem:[%s9942_s24 + $0x740] sm:$0xff]  }
 0x1b8   : > { %v8645_v6 = vpack.c.bf16 %v4728_v62, %v4728_v62  ;;  %7035 = vst.msk [vmem:[%s10079_s13 + $0x18c] sm:$0xf] %vm6935_vm0, %v8391_v1  ;;  %7291 = vst.msk [vmem:[%s10079_s13 + $0x58c] sm:$0xf] %vm6935_vm0, %v8647_v2  ;;  %v3753_v10 = vadd.f32 %v10661_v44, %v3752_v4  ;;  %v9187_v11 = vpop.f32.mrf.mxu0  ;;  %v9443_v12 = vpop.f32.mrf.mxu1 }
 0x1b9   : > { %7033 = vst.msk [vmem:[%s10079_s13 + $0x184] sm:$0xf] %vm6935_vm0, %v8389_v5  ;;  %v8394_v15 = vpack.c.bf16 %v4477_v7, %v4477_v7  ;;  %v8650_v16 = vpack.c.bf16 %v4733_v8, %v4733_v8  ;;  %v2740_v17 = vadd.f32 %v10661_v44, %v9187_v11  ;;  %v3764_v18 = vadd.f32 %v10661_v44, %v9443_v12 }
 0x1ba   : > { %7289 = vst.msk [vmem:[%s10079_s13 + $0x584] sm:$0xf] %vm6935_vm0, %v8645_v6  ;;  %v4475_v21 = vmax.f32 %v2729_v9, 0.0  ;;  %v4731_v22 = vmax.f32 %v3753_v10, 0.0  ;;  %v2731_v23 = vpop.f32.mrf.mxu0  ;;  %v3755_v24 = vpop.f32.mrf.mxu1 }
 0x1bb   : > { %7038 = vst.msk [vmem:[%s10079_s13 + $0x198] sm:$0xf] %vm6935_vm0, %v8394_v15  ;;  %7294 = vst.msk [vmem:[%s10079_s13 + $0x598] sm:$0xf] %vm6935_vm0, %v8650_v16  ;;  %v4478_v25 = vmax.f32 %v2740_v17, 0.0  ;;  %v4734_v26 = vmax.f32 %v3764_v18, 0.0  ;;  %v2732_v27 = vadd.f32 %v10661_v44, %v2731_v23  ;;  %v3756_v28 = vadd.f32 %v10661_v44, %v3755_v24 }
 0x1bc   : > { %v8392_v29 = vpack.c.bf16 %v4475_v21, %v4475_v21  ;;  %v8648_v30 = vpack.c.bf16 %v4731_v22, %v4731_v22  ;;  %v9190_v31 = vpop.f32.mrf.mxu0  ;;  %9285 = vmatmul.mubr.bf16.gmra.mxu0 %v9830_v13  ;;  %v9446_v32 = vpop.f32.mrf.mxu1  ;;  %9541 = vmatmul.mubr.bf16.gmra.mxu1 %v9831_v14  ;;  %v9838_v22 = vld [vmem:[%s9942_s24 + $0x348] sm:$0xff]  }
 0x1bd   : > { %v8395_v33 = vpack.c.bf16 %v4478_v25, %v4478_v25  ;;  %v8651_v34 = vpack.c.bf16 %v4734_v26, %v4734_v26  ;;  %v4476_v35 = vmax.f32 %v2732_v27, 0.0  ;;  %v4732_v36 = vmax.f32 %v3756_v28, 0.0  ;;  %9288 = vmatprep.mubr.bf16.mxu0 %v9832_v19  ;;  %9544 = vmatprep.mubr.bf16.mxu1 %v9833_v20  ;;  %v9839_v23 = vld [vmem:[%s9942_s24 + $0x748] sm:$0xff]   ;;  %v9840_v28 = vld [vmem:[%s9942_s24 + $0x350] sm:$0xff]  }
 0x1be   : > { %7036 = vst.msk [vmem:[%s10079_s13 + $0x190] sm:$0xf] %vm6935_vm0, %v8392_v29  ;;  %7292 = vst.msk [vmem:[%s10079_s13 + $0x590] sm:$0xf] %vm6935_vm0, %v8648_v30  ;;  %v2753_v37 = vadd.f32 %v10661_v44, %v9190_v31  ;;  %v3777_v38 = vadd.f32 %v10661_v44, %v9446_v32  ;;  %v2744_v39 = vpop.f32.mrf.mxu0  ;;  %v3768_v40 = vpop.f32.mrf.mxu1  ;;  %v9841_v29 = vld [vmem:[%s9942_s24 + $0x750] sm:$0xff]  }
 0x1bf   : > { %7039 = vst.msk [vmem:[%s10079_s13 + $0x19c] sm:$0xf] %vm6935_vm0, %v8395_v33  ;;  %7295 = vst.msk [vmem:[%s10079_s13 + $0x59c] sm:$0xf] %vm6935_vm0, %v8651_v34  ;;  %v8393_v41 = vpack.c.bf16 %v4476_v35, %v4476_v35  ;;  %v8649_v42 = vpack.c.bf16 %v4732_v36, %v4732_v36  ;;  %v2745_v43 = vadd.f32 %v10661_v44, %v2744_v39 }
 0x1c0   : > { %v3769_v45 = vadd.f32 %v10661_v44, %v3768_v40  ;;  %v4481_v46 = vmax.f32 %v2753_v37, 0.0  ;;  %v4737_v47 = vmax.f32 %v3777_v38, 0.0  ;;  %v9191_v48 = vpop.f32.mrf.mxu0  ;;  %v9447_v49 = vpop.f32.mrf.mxu1 }
 0x1c1   : > { %7037 = vst.msk [vmem:[%s10079_s13 + $0x194] sm:$0xf] %vm6935_vm0, %v8393_v41  ;;  %7293 = vst.msk [vmem:[%s10079_s13 + $0x594] sm:$0xf] %vm6935_vm0, %v8649_v42  ;;  %v4479_v52 = vmax.f32 %v2745_v43, 0.0  ;;  %v2756_v54 = vadd.f32 %v10661_v44, %v9191_v48  ;;  %v3780_v55 = vadd.f32 %v10661_v44, %v9447_v49 }
 0x1c2   : > { %v4735_v53 = vmax.f32 %v3769_v45, 0.0  ;;  %v8398_v57 = vpack.c.bf16 %v4481_v46, %v4481_v46  ;;  %v8654_v58 = vpack.c.bf16 %v4737_v47, %v4737_v47  ;;  %v2747_v59 = vpop.f32.mrf.mxu0  ;;  %v3771_v60 = vpop.f32.mrf.mxu1 }
 0x1c3   : > { %v8396_v62 = vpack.c.bf16 %v4479_v52, %v4479_v52  ;;  %v4482_v0 = vmax.f32 %v2756_v54, 0.0  ;;  %v4738_v1 = vmax.f32 %v3780_v55, 0.0  ;;  %v2748_v2 = vadd.f32 %v10661_v44, %v2747_v59  ;;  %v9842_v59 = vld [vmem:[%s9942_s24 + $0x358] sm:$0xff]  }
 0x1c4   : > { %v8652_v63 = vpack.c.bf16 %v4735_v53, %v4735_v53  ;;  %7042 = vst.msk [vmem:[%s10079_s13 + $0x1a8] sm:$0xf] %vm6935_vm0, %v8398_v57  ;;  %7298 = vst.msk [vmem:[%s10079_s13 + $0x5a8] sm:$0xf] %vm6935_vm0, %v8654_v58  ;;  %v3772_v3 = vadd.f32 %v10661_v44, %v3771_v60  ;;  %v9194_v4 = vpop.f32.mrf.mxu0  ;;  %9289 = vmatmul.mubr.bf16.gmra.mxu0 %v9834_v50  ;;  %v9450_v5 = vpop.f32.mrf.mxu1  ;;  %9545 = vmatmul.mubr.bf16.gmra.mxu1 %v9835_v51  ;;  %v9843_v60 = vld [vmem:[%s9942_s24 + $0x758] sm:$0xff]  }
 0x1c5   : > { %7040 = vst.msk [vmem:[%s10079_s13 + $0x1a0] sm:$0xf] %vm6935_vm0, %v8396_v62  ;;  %v8399_v6 = vpack.c.bf16 %v4482_v0, %v4482_v0  ;;  %v8655_v7 = vpack.c.bf16 %v4738_v1, %v4738_v1  ;;  %v2769_v8 = vadd.f32 %v10661_v44, %v9194_v4  ;;  %v3793_v9 = vadd.f32 %v10661_v44, %v9450_v5  ;;  %v9844_v1 = vld [vmem:[%s9942_s24 + $0x360] sm:$0xff]  }
 0x1c6   : > { %7296 = vst.msk [vmem:[%s10079_s13 + $0x5a0] sm:$0xf] %vm6935_vm0, %v8652_v63  ;;  %9292 = vmatprep.mubr.bf16.mxu0 %v9836_v56  ;;  %v4480_v10 = vmax.f32 %v2748_v2, 0.0  ;;  %v4736_v11 = vmax.f32 %v3772_v3, 0.0  ;;  %v2760_v12 = vpop.f32.mrf.mxu0  ;;  %v3784_v13 = vpop.f32.mrf.mxu1  ;;  %9548 = vmatprep.mubr.bf16.mxu1 %v9837_v61  ;;  %v9845_v2 = vld [vmem:[%s9942_s24 + $0x760] sm:$0xff]  }
 0x1c7   : > { %7043 = vst.msk [vmem:[%s10079_s13 + $0x1ac] sm:$0xf] %vm6935_vm0, %v8399_v6  ;;  %7299 = vst.msk [vmem:[%s10079_s13 + $0x5ac] sm:$0xf] %vm6935_vm0, %v8655_v7  ;;  %v4485_v14 = vmax.f32 %v2769_v8, 0.0  ;;  %v4741_v15 = vmax.f32 %v3793_v9, 0.0  ;;  %v2761_v16 = vadd.f32 %v10661_v44, %v2760_v12  ;;  %v3785_v17 = vadd.f32 %v10661_v44, %v3784_v13 }
 0x1c8   : > { %v8397_v18 = vpack.c.bf16 %v4480_v10, %v4480_v10  ;;  %v8653_v19 = vpack.c.bf16 %v4736_v11, %v4736_v11  ;;  %v9195_v20 = vpop.f32.mrf.mxu0  ;;  %v9451_v21 = vpop.f32.mrf.mxu1 }
 0x1c9   : > { %v8402_v24 = vpack.c.bf16 %v4485_v14, %v4485_v14  ;;  %v8658_v25 = vpack.c.bf16 %v4741_v15, %v4741_v15  ;;  %v4483_v26 = vmax.f32 %v2761_v16, 0.0  ;;  %v4739_v27 = vmax.f32 %v3785_v17, 0.0 }
 0x1ca   : > { %7041 = vst.msk [vmem:[%s10079_s13 + $0x1a4] sm:$0xf] %vm6935_vm0, %v8397_v18  ;;  %7297 = vst.msk [vmem:[%s10079_s13 + $0x5a4] sm:$0xf] %vm6935_vm0, %v8653_v19  ;;  %v2772_v30 = vadd.f32 %v10661_v44, %v9195_v20  ;;  %v3796_v31 = vadd.f32 %v10661_v44, %v9451_v21  ;;  %v2763_v32 = vpop.f32.mrf.mxu0  ;;  %v3787_v33 = vpop.f32.mrf.mxu1 }
 0x1cb   : > { %7046 = vst.msk [vmem:[%s10079_s13 + $0x1b8] sm:$0xf] %vm6935_vm0, %v8402_v24  ;;  %7302 = vst.msk [vmem:[%s10079_s13 + $0x5b8] sm:$0xf] %vm6935_vm0, %v8658_v25  ;;  %v8400_v34 = vpack.c.bf16 %v4483_v26, %v4483_v26  ;;  %v8656_v35 = vpack.c.bf16 %v4739_v27, %v4739_v27  ;;  %v2764_v36 = vadd.f32 %v10661_v44, %v2763_v32  ;;  %v9847_v32 = vld [vmem:[%s9942_s24 + $0x768] sm:$0xff]  }
 0x1cc   : > { %v3788_v37 = vadd.f32 %v10661_v44, %v3787_v33  ;;  %v4486_v38 = vmax.f32 %v2772_v30, 0.0  ;;  %v4742_v39 = vmax.f32 %v3796_v31, 0.0  ;;  %v9198_v40 = vpop.f32.mrf.mxu0  ;;  %9293 = vmatmul.mubr.bf16.gmra.mxu0 %v9838_v22  ;;  %v9454_v41 = vpop.f32.mrf.mxu1  ;;  %9549 = vmatmul.mubr.bf16.gmra.mxu1 %v9839_v23  ;;  %v9846_v31 = vld [vmem:[%s9942_s24 + $0x368] sm:$0xff]  }
 0x1cd   : > { %7044 = vst.msk [vmem:[%s10079_s13 + $0x1b0] sm:$0xf] %vm6935_vm0, %v8400_v34  ;;  %7300 = vst.msk [vmem:[%s10079_s13 + $0x5b0] sm:$0xf] %vm6935_vm0, %v8656_v35  ;;  %v4484_v42 = vmax.f32 %v2764_v36, 0.0  ;;  %v2785_v45 = vadd.f32 %v10661_v44, %v9198_v40  ;;  %v3809_v46 = vadd.f32 %v10661_v44, %v9454_v41  ;;  %9296 = vmatprep.mubr.bf16.mxu0 %v9840_v28  ;;  %9552 = vmatprep.mubr.bf16.mxu1 %v9841_v29 }
 0x1ce   : > { %v4740_v43 = vmax.f32 %v3788_v37, 0.0  ;;  %v8403_v47 = vpack.c.bf16 %v4486_v38, %v4486_v38  ;;  %v8659_v48 = vpack.c.bf16 %v4742_v39, %v4742_v39  ;;  %v2776_v49 = vpop.f32.mrf.mxu0  ;;  %v3800_v50 = vpop.f32.mrf.mxu1  ;;  %v9848_v37 = vld [vmem:[%s9942_s24 + $0x370] sm:$0xff]  }
 0x1cf   : > { %v8401_v51 = vpack.c.bf16 %v4484_v42, %v4484_v42  ;;  %v4489_v53 = vmax.f32 %v2785_v45, 0.0  ;;  %v4745_v54 = vmax.f32 %v3809_v46, 0.0  ;;  %v2777_v55 = vadd.f32 %v10661_v44, %v2776_v49  ;;  %v9849_v42 = vld [vmem:[%s9942_s24 + $0x770] sm:$0xff]  }
 0x1d0   : > { %v8657_v52 = vpack.c.bf16 %v4740_v43, %v4740_v43  ;;  %7047 = vst.msk [vmem:[%s10079_s13 + $0x1bc] sm:$0xf] %vm6935_vm0, %v8403_v47  ;;  %7303 = vst.msk [vmem:[%s10079_s13 + $0x5bc] sm:$0xf] %vm6935_vm0, %v8659_v48  ;;  %v3801_v56 = vadd.f32 %v10661_v44, %v3800_v50  ;;  %v9199_v57 = vpop.f32.mrf.mxu0  ;;  %v9455_v58 = vpop.f32.mrf.mxu1 }
 0x1d1   : > { %7045 = vst.msk [vmem:[%s10079_s13 + $0x1b4] sm:$0xf] %vm6935_vm0, %v8401_v51  ;;  %v8406_v61 = vpack.c.bf16 %v4489_v53, %v4489_v53  ;;  %v8662_v62 = vpack.c.bf16 %v4745_v54, %v4745_v54  ;;  %v2788_v63 = vadd.f32 %v10661_v44, %v9199_v57  ;;  %v3812_v0 = vadd.f32 %v10661_v44, %v9455_v58 }
 0x1d2   : > { %7301 = vst.msk [vmem:[%s10079_s13 + $0x5b4] sm:$0xf] %vm6935_vm0, %v8657_v52  ;;  %v4487_v3 = vmax.f32 %v2777_v55, 0.0  ;;  %v4743_v4 = vmax.f32 %v3801_v56, 0.0  ;;  %v2779_v5 = vpop.f32.mrf.mxu0  ;;  %v3803_v6 = vpop.f32.mrf.mxu1 }
 0x1d3   : > { %7050 = vst.msk [vmem:[%s10079_s13 + $0x1c8] sm:$0xf] %vm6935_vm0, %v8406_v61  ;;  %7306 = vst.msk [vmem:[%s10079_s13 + $0x5c8] sm:$0xf] %vm6935_vm0, %v8662_v62  ;;  %v4490_v7 = vmax.f32 %v2788_v63, 0.0  ;;  %v4746_v8 = vmax.f32 %v3812_v0, 0.0  ;;  %v2780_v9 = vadd.f32 %v10661_v44, %v2779_v5  ;;  %v3804_v10 = vadd.f32 %v10661_v44, %v3803_v6 }
 0x1d4   : > { %v8404_v11 = vpack.c.bf16 %v4487_v3, %v4487_v3  ;;  %v8660_v12 = vpack.c.bf16 %v4743_v4, %v4743_v4  ;;  %v9202_v13 = vpop.f32.mrf.mxu0  ;;  %9297 = vmatmul.mubr.bf16.gmra.mxu0 %v9842_v59  ;;  %v9458_v14 = vpop.f32.mrf.mxu1  ;;  %9553 = vmatmul.mubr.bf16.gmra.mxu1 %v9843_v60  ;;  %v9850_v4 = vld [vmem:[%s9942_s24 + $0x378] sm:$0xff]  }
 0x1d5   : > { %v8407_v15 = vpack.c.bf16 %v4490_v7, %v4490_v7  ;;  %v8663_v16 = vpack.c.bf16 %v4746_v8, %v4746_v8  ;;  %v4488_v17 = vmax.f32 %v2780_v9, 0.0  ;;  %v4744_v18 = vmax.f32 %v3804_v10, 0.0  ;;  %9300 = vmatprep.mubr.bf16.mxu0 %v9844_v1  ;;  %9556 = vmatprep.mubr.bf16.mxu1 %v9845_v2  ;;  %v9851_v5 = vld [vmem:[%s9942_s24 + $0x778] sm:$0xff]   ;;  %v9852_v10 = vld [vmem:[%s9942_s24 + $0x380] sm:$0xff]  }
 0x1d6   : > { %7048 = vst.msk [vmem:[%s10079_s13 + $0x1c0] sm:$0xf] %vm6935_vm0, %v8404_v11  ;;  %7304 = vst.msk [vmem:[%s10079_s13 + $0x5c0] sm:$0xf] %vm6935_vm0, %v8660_v12  ;;  %v2801_v19 = vadd.f32 %v10661_v44, %v9202_v13  ;;  %v3825_v20 = vadd.f32 %v10661_v44, %v9458_v14  ;;  %v2792_v21 = vpop.f32.mrf.mxu0  ;;  %v3816_v22 = vpop.f32.mrf.mxu1  ;;  %v9853_v11 = vld [vmem:[%s9942_s24 + $0x780] sm:$0xff]  }
 0x1d7   : > { %7051 = vst.msk [vmem:[%s10079_s13 + $0x1cc] sm:$0xf] %vm6935_vm0, %v8407_v15  ;;  %7307 = vst.msk [vmem:[%s10079_s13 + $0x5cc] sm:$0xf] %vm6935_vm0, %v8663_v16  ;;  %v8405_v23 = vpack.c.bf16 %v4488_v17, %v4488_v17  ;;  %v8661_v24 = vpack.c.bf16 %v4744_v18, %v4744_v18  ;;  %v2793_v25 = vadd.f32 %v10661_v44, %v2792_v21 }
 0x1d8   : > { %v3817_v26 = vadd.f32 %v10661_v44, %v3816_v22  ;;  %v4493_v27 = vmax.f32 %v2801_v19, 0.0  ;;  %v4749_v28 = vmax.f32 %v3825_v20, 0.0  ;;  %v9203_v29 = vpop.f32.mrf.mxu0  ;;  %v9459_v30 = vpop.f32.mrf.mxu1 }
 0x1d9   : > { %7049 = vst.msk [vmem:[%s10079_s13 + $0x1c4] sm:$0xf] %vm6935_vm0, %v8405_v23  ;;  %7305 = vst.msk [vmem:[%s10079_s13 + $0x5c4] sm:$0xf] %vm6935_vm0, %v8661_v24  ;;  %v4491_v33 = vmax.f32 %v2793_v25, 0.0  ;;  %v2804_v35 = vadd.f32 %v10661_v44, %v9203_v29  ;;  %v3828_v36 = vadd.f32 %v10661_v44, %v9459_v30 }
 0x1da   : > { %v4747_v34 = vmax.f32 %v3817_v26, 0.0  ;;  %v8410_v38 = vpack.c.bf16 %v4493_v27, %v4493_v27  ;;  %v8666_v39 = vpack.c.bf16 %v4749_v28, %v4749_v28  ;;  %v2795_v40 = vpop.f32.mrf.mxu0  ;;  %v3819_v41 = vpop.f32.mrf.mxu1 }
 0x1db   : > { %v8408_v43 = vpack.c.bf16 %v4491_v33, %v4491_v33  ;;  %v4494_v46 = vmax.f32 %v2804_v35, 0.0  ;;  %v4750_v47 = vmax.f32 %v3828_v36, 0.0  ;;  %v2796_v48 = vadd.f32 %v10661_v44, %v2795_v40  ;;  %v9854_v40 = vld [vmem:[%s9942_s24 + $0x388] sm:$0xff]  }
 0x1dc   : > { %v8664_v45 = vpack.c.bf16 %v4747_v34, %v4747_v34  ;;  %7054 = vst.msk [vmem:[%s10079_s13 + $0x1d8] sm:$0xf] %vm6935_vm0, %v8410_v38  ;;  %7310 = vst.msk [vmem:[%s10079_s13 + $0x5d8] sm:$0xf] %vm6935_vm0, %v8666_v39  ;;  %v3820_v49 = vadd.f32 %v10661_v44, %v3819_v41  ;;  %v9206_v50 = vpop.f32.mrf.mxu0  ;;  %9301 = vmatmul.mubr.bf16.gmra.mxu0 %v9846_v31  ;;  %v9462_v51 = vpop.f32.mrf.mxu1  ;;  %9557 = vmatmul.mubr.bf16.gmra.mxu1 %v9847_v32  ;;  %v9855_v41 = vld [vmem:[%s9942_s24 + $0x788] sm:$0xff]  }
 0x1dd   : > { %7052 = vst.msk [vmem:[%s10079_s13 + $0x1d0] sm:$0xf] %vm6935_vm0, %v8408_v43  ;;  %v8411_v52 = vpack.c.bf16 %v4494_v46, %v4494_v46  ;;  %v8667_v53 = vpack.c.bf16 %v4750_v47, %v4750_v47  ;;  %v2817_v54 = vadd.f32 %v10661_v44, %v9206_v50  ;;  %v3841_v55 = vadd.f32 %v10661_v44, %v9462_v51  ;;  %v9856_v47 = vld [vmem:[%s9942_s24 + $0x390] sm:$0xff]  }
 0x1de   : > { %7308 = vst.msk [vmem:[%s10079_s13 + $0x5d0] sm:$0xf] %vm6935_vm0, %v8664_v45  ;;  %9304 = vmatprep.mubr.bf16.mxu0 %v9848_v37  ;;  %v4492_v56 = vmax.f32 %v2796_v48, 0.0  ;;  %v4748_v57 = vmax.f32 %v3820_v49, 0.0  ;;  %v2808_v58 = vpop.f32.mrf.mxu0  ;;  %v3832_v59 = vpop.f32.mrf.mxu1  ;;  %9560 = vmatprep.mubr.bf16.mxu1 %v9849_v42  ;;  %v9857_v48 = vld [vmem:[%s9942_s24 + $0x790] sm:$0xff]  }
 0x1df   : > { %7055 = vst.msk [vmem:[%s10079_s13 + $0x1dc] sm:$0xf] %vm6935_vm0, %v8411_v52  ;;  %7311 = vst.msk [vmem:[%s10079_s13 + $0x5dc] sm:$0xf] %vm6935_vm0, %v8667_v53  ;;  %v4497_v60 = vmax.f32 %v2817_v54, 0.0  ;;  %v4753_v61 = vmax.f32 %v3841_v55, 0.0  ;;  %v2809_v62 = vadd.f32 %v10661_v44, %v2808_v58  ;;  %v3833_v63 = vadd.f32 %v10661_v44, %v3832_v59 }
 0x1e0   : > { %v8409_v0 = vpack.c.bf16 %v4492_v56, %v4492_v56  ;;  %v8665_v1 = vpack.c.bf16 %v4748_v57, %v4748_v57  ;;  %v9207_v2 = vpop.f32.mrf.mxu0  ;;  %v9463_v3 = vpop.f32.mrf.mxu1  ;;  %v10968_v55 = vld [vmem:[%s11793_s2] ss:$0 sm:$0xff] }
 0x1e1   : > { %v8414_v6 = vpack.c.bf16 %v4497_v60, %v4497_v60  ;;  %v8670_v7 = vpack.c.bf16 %v4753_v61, %v4753_v61  ;;  %v4495_v8 = vmax.f32 %v2809_v62, 0.0  ;;  %v4751_v9 = vmax.f32 %v3833_v63, 0.0 }
 0x1e2   : > { %7053 = vst.msk [vmem:[%s10079_s13 + $0x1d4] sm:$0xf] %vm6935_vm0, %v8409_v0  ;;  %7309 = vst.msk [vmem:[%s10079_s13 + $0x5d4] sm:$0xf] %vm6935_vm0, %v8665_v1  ;;  %v2820_v12 = vadd.f32 %v10661_v44, %v9207_v2  ;;  %v3844_v13 = vadd.f32 %v10661_v44, %v9463_v3  ;;  %v2811_v14 = vpop.f32.mrf.mxu0  ;;  %v3835_v15 = vpop.f32.mrf.mxu1 }
 0x1e3   : > { %7058 = vst.msk [vmem:[%s10079_s13 + $0x1e8] sm:$0xf] %vm6935_vm0, %v8414_v6  ;;  %7314 = vst.msk [vmem:[%s10079_s13 + $0x5e8] sm:$0xf] %vm6935_vm0, %v8670_v7  ;;  %v8412_v16 = vpack.c.bf16 %v4495_v8, %v4495_v8  ;;  %v8668_v17 = vpack.c.bf16 %v4751_v9, %v4751_v9  ;;  %v2812_v18 = vadd.f32 %v10661_v44, %v2811_v14  ;;  %v9859_v14 = vld [vmem:[%s9942_s24 + $0x798] sm:$0xff]  }
 0x1e4   : > { %v3836_v19 = vadd.f32 %v10661_v44, %v3835_v15  ;;  %v4498_v20 = vmax.f32 %v2820_v12, 0.0  ;;  %v4754_v21 = vmax.f32 %v3844_v13, 0.0  ;;  %v9210_v22 = vpop.f32.mrf.mxu0  ;;  %9305 = vmatmul.mubr.bf16.gmra.mxu0 %v9850_v4  ;;  %v9466_v23 = vpop.f32.mrf.mxu1  ;;  %9561 = vmatmul.mubr.bf16.gmra.mxu1 %v9851_v5  ;;  %v9858_v13 = vld [vmem:[%s9942_s24 + $0x398] sm:$0xff]  }
 0x1e5   : > { %7056 = vst.msk [vmem:[%s10079_s13 + $0x1e0] sm:$0xf] %vm6935_vm0, %v8412_v16  ;;  %7312 = vst.msk [vmem:[%s10079_s13 + $0x5e0] sm:$0xf] %vm6935_vm0, %v8668_v17  ;;  %v4496_v24 = vmax.f32 %v2812_v18, 0.0  ;;  %v2833_v26 = vadd.f32 %v10661_v44, %v9210_v22  ;;  %v3857_v27 = vadd.f32 %v10661_v44, %v9466_v23  ;;  %9308 = vmatprep.mubr.bf16.mxu0 %v9852_v10  ;;  %9564 = vmatprep.mubr.bf16.mxu1 %v9853_v11 }
 0x1e6   : > { %v4752_v25 = vmax.f32 %v3836_v19, 0.0  ;;  %v8415_v28 = vpack.c.bf16 %v4498_v20, %v4498_v20  ;;  %v8671_v29 = vpack.c.bf16 %v4754_v21, %v4754_v21  ;;  %v2824_v30 = vpop.f32.mrf.mxu0  ;;  %v3848_v31 = vpop.f32.mrf.mxu1  ;;  %v9860_v19 = vld [vmem:[%s9942_s24 + $0x3a0] sm:$0xff]  }
 0x1e7   : > { %v8413_v32 = vpack.c.bf16 %v4496_v24, %v4496_v24  ;;  %v4501_v34 = vmax.f32 %v2833_v26, 0.0  ;;  %v4757_v35 = vmax.f32 %v3857_v27, 0.0  ;;  %v2825_v36 = vadd.f32 %v10661_v44, %v2824_v30  ;;  %v9861_v24 = vld [vmem:[%s9942_s24 + $0x7a0] sm:$0xff]  }
 0x1e8   : > { %v8669_v33 = vpack.c.bf16 %v4752_v25, %v4752_v25  ;;  %7059 = vst.msk [vmem:[%s10079_s13 + $0x1ec] sm:$0xf] %vm6935_vm0, %v8415_v28  ;;  %7315 = vst.msk [vmem:[%s10079_s13 + $0x5ec] sm:$0xf] %vm6935_vm0, %v8671_v29  ;;  %v3849_v37 = vadd.f32 %v10661_v44, %v3848_v31  ;;  %v9211_v38 = vpop.f32.mrf.mxu0  ;;  %v9467_v39 = vpop.f32.mrf.mxu1 }
 0x1e9   : > { %7057 = vst.msk [vmem:[%s10079_s13 + $0x1e4] sm:$0xf] %vm6935_vm0, %v8413_v32  ;;  %v8418_v42 = vpack.c.bf16 %v4501_v34, %v4501_v34  ;;  %v8674_v43 = vpack.c.bf16 %v4757_v35, %v4757_v35  ;;  %v2836_v45 = vadd.f32 %v10661_v44, %v9211_v38  ;;  %v3860_v46 = vadd.f32 %v10661_v44, %v9467_v39 }
 0x1ea   : > { %7313 = vst.msk [vmem:[%s10079_s13 + $0x5e4] sm:$0xf] %vm6935_vm0, %v8669_v33  ;;  %v4499_v49 = vmax.f32 %v2825_v36, 0.0  ;;  %v4755_v50 = vmax.f32 %v3849_v37, 0.0  ;;  %v2827_v51 = vpop.f32.mrf.mxu0  ;;  %v3851_v52 = vpop.f32.mrf.mxu1 }
 0x1eb   : > { %7062 = vst.msk [vmem:[%s10079_s13 + $0x1f8] sm:$0xf] %vm6935_vm0, %v8418_v42  ;;  %7318 = vst.msk [vmem:[%s10079_s13 + $0x5f8] sm:$0xf] %vm6935_vm0, %v8674_v43  ;;  %v4502_v53 = vmax.f32 %v2836_v45, 0.0  ;;  %v4758_v54 = vmax.f32 %v3860_v46, 0.0  ;;  %v2828_v44 = vadd.f32 %v10968_v55, %v2827_v51  ;;  %v3852_v56 = vadd.f32 %v10968_v55, %v3851_v52 }
 0x1ec   : > { %v8416_v57 = vpack.c.bf16 %v4499_v49, %v4499_v49  ;;  %v8672_v58 = vpack.c.bf16 %v4755_v50, %v4755_v50  ;;  %v9214_v59 = vpop.f32.mrf.mxu0  ;;  %9309 = vmatmul.mubr.bf16.gmra.mxu0 %v9854_v40  ;;  %v9470_v60 = vpop.f32.mrf.mxu1  ;;  %9565 = vmatmul.mubr.bf16.gmra.mxu1 %v9855_v41  ;;  %v9862_v50 = vld [vmem:[%s9942_s24 + $0x3a8] sm:$0xff]  }
 0x1ed   : > { %v8419_v61 = vpack.c.bf16 %v4502_v53, %v4502_v53  ;;  %v8675_v62 = vpack.c.bf16 %v4758_v54, %v4758_v54  ;;  %v4500_v63 = vmax.f32 %v2828_v44, 0.0  ;;  %v4756_v0 = vmax.f32 %v3852_v56, 0.0  ;;  %9312 = vmatprep.mubr.bf16.mxu0 %v9856_v47  ;;  %9568 = vmatprep.mubr.bf16.mxu1 %v9857_v48  ;;  %v9863_v51 = vld [vmem:[%s9942_s24 + $0x7a8] sm:$0xff]   ;;  %v9864_v56 = vld [vmem:[%s9942_s24 + $0x3b0] sm:$0xff]  }
 0x1ee   : > { %7060 = vst.msk [vmem:[%s10079_s13 + $0x1f0] sm:$0xf] %vm6935_vm0, %v8416_v57  ;;  %7316 = vst.msk [vmem:[%s10079_s13 + $0x5f0] sm:$0xf] %vm6935_vm0, %v8672_v58  ;;  %v2849_v1 = vadd.f32 %v10968_v55, %v9214_v59  ;;  %v3873_v2 = vadd.f32 %v10968_v55, %v9470_v60  ;;  %v2840_v3 = vpop.f32.mrf.mxu0  ;;  %v3864_v4 = vpop.f32.mrf.mxu1  ;;  %v9865_v57 = vld [vmem:[%s9942_s24 + $0x7b0] sm:$0xff]  }
 0x1ef   : > { %7063 = vst.msk [vmem:[%s10079_s13 + $0x1fc] sm:$0xf] %vm6935_vm0, %v8419_v61  ;;  %7319 = vst.msk [vmem:[%s10079_s13 + $0x5fc] sm:$0xf] %vm6935_vm0, %v8675_v62  ;;  %v8417_v5 = vpack.c.bf16 %v4500_v63, %v4500_v63  ;;  %v8673_v6 = vpack.c.bf16 %v4756_v0, %v4756_v0  ;;  %v2841_v7 = vadd.f32 %v10968_v55, %v2840_v3 }
 0x1f0   : > { %v3865_v8 = vadd.f32 %v10968_v55, %v3864_v4  ;;  %v4505_v9 = vmax.f32 %v2849_v1, 0.0  ;;  %v4761_v10 = vmax.f32 %v3873_v2, 0.0  ;;  %v9215_v11 = vpop.f32.mrf.mxu0  ;;  %v9471_v12 = vpop.f32.mrf.mxu1 }
 0x1f1   : > { %7061 = vst.msk [vmem:[%s10079_s13 + $0x1f4] sm:$0xf] %vm6935_vm0, %v8417_v5  ;;  %7317 = vst.msk [vmem:[%s10079_s13 + $0x5f4] sm:$0xf] %vm6935_vm0, %v8673_v6  ;;  %v4503_v15 = vmax.f32 %v2841_v7, 0.0  ;;  %v2852_v17 = vadd.f32 %v10968_v55, %v9215_v11  ;;  %v3876_v18 = vadd.f32 %v10968_v55, %v9471_v12 }
 0x1f2   : > { %v4759_v16 = vmax.f32 %v3865_v8, 0.0  ;;  %v8422_v20 = vpack.c.bf16 %v4505_v9, %v4505_v9  ;;  %v8678_v21 = vpack.c.bf16 %v4761_v10, %v4761_v10  ;;  %v2843_v22 = vpop.f32.mrf.mxu0  ;;  %v3867_v23 = vpop.f32.mrf.mxu1 }
 0x1f3   : > { %v8420_v25 = vpack.c.bf16 %v4503_v15, %v4503_v15  ;;  %v4506_v27 = vmax.f32 %v2852_v17, 0.0  ;;  %v4762_v28 = vmax.f32 %v3876_v18, 0.0  ;;  %v2844_v29 = vadd.f32 %v10968_v55, %v2843_v22  ;;  %v9866_v22 = vld [vmem:[%s9942_s24 + $0x3b8] sm:$0xff]  }
 0x1f4   : > { %v8676_v26 = vpack.c.bf16 %v4759_v16, %v4759_v16  ;;  %7066 = vst.msk [vmem:[%s10079_s13 + $0x208] sm:$0xf] %vm6935_vm0, %v8422_v20  ;;  %7322 = vst.msk [vmem:[%s10079_s13 + $0x608] sm:$0xf] %vm6935_vm0, %v8678_v21  ;;  %v3868_v30 = vadd.f32 %v10968_v55, %v3867_v23  ;;  %v9218_v31 = vpop.f32.mrf.mxu0  ;;  %9313 = vmatmul.mubr.bf16.gmra.mxu0 %v9858_v13  ;;  %v9474_v32 = vpop.f32.mrf.mxu1  ;;  %9569 = vmatmul.mubr.bf16.gmra.mxu1 %v9859_v14  ;;  %v9867_v23 = vld [vmem:[%s9942_s24 + $0x7b8] sm:$0xff]  }
 0x1f5   : > { %7064 = vst.msk [vmem:[%s10079_s13 + $0x200] sm:$0xf] %vm6935_vm0, %v8420_v25  ;;  %v8423_v33 = vpack.c.bf16 %v4506_v27, %v4506_v27  ;;  %v8679_v34 = vpack.c.bf16 %v4762_v28, %v4762_v28  ;;  %v2865_v35 = vadd.f32 %v10968_v55, %v9218_v31  ;;  %v3889_v36 = vadd.f32 %v10968_v55, %v9474_v32  ;;  %v9868_v28 = vld [vmem:[%s9942_s24 + $0x3c0] sm:$0xff]  }
 0x1f6   : > { %7320 = vst.msk [vmem:[%s10079_s13 + $0x600] sm:$0xf] %vm6935_vm0, %v8676_v26  ;;  %9316 = vmatprep.mubr.bf16.mxu0 %v9860_v19  ;;  %v4504_v37 = vmax.f32 %v2844_v29, 0.0  ;;  %v4760_v38 = vmax.f32 %v3868_v30, 0.0  ;;  %v2856_v39 = vpop.f32.mrf.mxu0  ;;  %v3880_v40 = vpop.f32.mrf.mxu1  ;;  %9572 = vmatprep.mubr.bf16.mxu1 %v9861_v24  ;;  %v9869_v29 = vld [vmem:[%s9942_s24 + $0x7c0] sm:$0xff]  }
 0x1f7   : > { %7067 = vst.msk [vmem:[%s10079_s13 + $0x20c] sm:$0xf] %vm6935_vm0, %v8423_v33  ;;  %7323 = vst.msk [vmem:[%s10079_s13 + $0x60c] sm:$0xf] %vm6935_vm0, %v8679_v34  ;;  %v4509_v41 = vmax.f32 %v2865_v35, 0.0  ;;  %v4765_v42 = vmax.f32 %v3889_v36, 0.0  ;;  %v2857_v43 = vadd.f32 %v10968_v55, %v2856_v39  ;;  %v3881_v45 = vadd.f32 %v10968_v55, %v3880_v40 }
 0x1f8   : > { %v8421_v46 = vpack.c.bf16 %v4504_v37, %v4504_v37  ;;  %v8677_v47 = vpack.c.bf16 %v4760_v38, %v4760_v38  ;;  %v9219_v48 = vpop.f32.mrf.mxu0  ;;  %v9475_v49 = vpop.f32.mrf.mxu1 }
 0x1f9   : > { %v8426_v52 = vpack.c.bf16 %v4509_v41, %v4509_v41  ;;  %v8682_v53 = vpack.c.bf16 %v4765_v42, %v4765_v42  ;;  %v4507_v54 = vmax.f32 %v2857_v43, 0.0  ;;  %v4763_v44 = vmax.f32 %v3881_v45, 0.0 }
 0x1fa   : > { %7065 = vst.msk [vmem:[%s10079_s13 + $0x204] sm:$0xf] %vm6935_vm0, %v8421_v46  ;;  %7321 = vst.msk [vmem:[%s10079_s13 + $0x604] sm:$0xf] %vm6935_vm0, %v8677_v47  ;;  %v2868_v58 = vadd.f32 %v10968_v55, %v9219_v48  ;;  %v3892_v59 = vadd.f32 %v10968_v55, %v9475_v49  ;;  %v2859_v60 = vpop.f32.mrf.mxu0  ;;  %v3883_v61 = vpop.f32.mrf.mxu1 }
 0x1fb   : > { %7070 = vst.msk [vmem:[%s10079_s13 + $0x218] sm:$0xf] %vm6935_vm0, %v8426_v52  ;;  %7326 = vst.msk [vmem:[%s10079_s13 + $0x618] sm:$0xf] %vm6935_vm0, %v8682_v53  ;;  %v8424_v62 = vpack.c.bf16 %v4507_v54, %v4507_v54  ;;  %v8680_v63 = vpack.c.bf16 %v4763_v44, %v4763_v44  ;;  %v2860_v0 = vadd.f32 %v10968_v55, %v2859_v60  ;;  %v9871_v60 = vld [vmem:[%s9942_s24 + $0x7c8] sm:$0xff]  }
 0x1fc   : > { %v3884_v1 = vadd.f32 %v10968_v55, %v3883_v61  ;;  %v4510_v2 = vmax.f32 %v2868_v58, 0.0  ;;  %v4766_v3 = vmax.f32 %v3892_v59, 0.0  ;;  %v9222_v4 = vpop.f32.mrf.mxu0  ;;  %9317 = vmatmul.mubr.bf16.gmra.mxu0 %v9862_v50  ;;  %v9478_v5 = vpop.f32.mrf.mxu1  ;;  %9573 = vmatmul.mubr.bf16.gmra.mxu1 %v9863_v51  ;;  %v9870_v59 = vld [vmem:[%s9942_s24 + $0x3c8] sm:$0xff]  }
 0x1fd   : > { %7068 = vst.msk [vmem:[%s10079_s13 + $0x210] sm:$0xf] %vm6935_vm0, %v8424_v62  ;;  %7324 = vst.msk [vmem:[%s10079_s13 + $0x610] sm:$0xf] %vm6935_vm0, %v8680_v63  ;;  %v4508_v6 = vmax.f32 %v2860_v0, 0.0  ;;  %v2881_v8 = vadd.f32 %v10968_v55, %v9222_v4  ;;  %v3905_v9 = vadd.f32 %v10968_v55, %v9478_v5  ;;  %9320 = vmatprep.mubr.bf16.mxu0 %v9864_v56  ;;  %9576 = vmatprep.mubr.bf16.mxu1 %v9865_v57 }
 0x1fe   : > { %v4764_v7 = vmax.f32 %v3884_v1, 0.0  ;;  %v8427_v10 = vpack.c.bf16 %v4510_v2, %v4510_v2  ;;  %v8683_v11 = vpack.c.bf16 %v4766_v3, %v4766_v3  ;;  %v2872_v12 = vpop.f32.mrf.mxu0  ;;  %v3896_v13 = vpop.f32.mrf.mxu1  ;;  %v9872_v1 = vld [vmem:[%s9942_s24 + $0x3d0] sm:$0xff]  }
 0x1ff   : > { %v8425_v14 = vpack.c.bf16 %v4508_v6, %v4508_v6  ;;  %v4513_v16 = vmax.f32 %v2881_v8, 0.0  ;;  %v4769_v17 = vmax.f32 %v3905_v9, 0.0  ;;  %v2873_v18 = vadd.f32 %v10968_v55, %v2872_v12  ;;  %v9873_v6 = vld [vmem:[%s9942_s24 + $0x7d0] sm:$0xff]  }
 0x200   : > { %v8681_v15 = vpack.c.bf16 %v4764_v7, %v4764_v7  ;;  %7071 = vst.msk [vmem:[%s10079_s13 + $0x21c] sm:$0xf] %vm6935_vm0, %v8427_v10  ;;  %7327 = vst.msk [vmem:[%s10079_s13 + $0x61c] sm:$0xf] %vm6935_vm0, %v8683_v11  ;;  %v3897_v19 = vadd.f32 %v10968_v55, %v3896_v13  ;;  %v9223_v20 = vpop.f32.mrf.mxu0  ;;  %v9479_v21 = vpop.f32.mrf.mxu1 }
 0x201   : > { %7069 = vst.msk [vmem:[%s10079_s13 + $0x214] sm:$0xf] %vm6935_vm0, %v8425_v14  ;;  %v8430_v24 = vpack.c.bf16 %v4513_v16, %v4513_v16  ;;  %v8686_v25 = vpack.c.bf16 %v4769_v17, %v4769_v17  ;;  %v2884_v26 = vadd.f32 %v10968_v55, %v9223_v20  ;;  %v3908_v27 = vadd.f32 %v10968_v55, %v9479_v21 }
 0x202   : > { %7325 = vst.msk [vmem:[%s10079_s13 + $0x614] sm:$0xf] %vm6935_vm0, %v8681_v15  ;;  %v4511_v30 = vmax.f32 %v2873_v18, 0.0  ;;  %v4767_v31 = vmax.f32 %v3897_v19, 0.0  ;;  %v2875_v32 = vpop.f32.mrf.mxu0  ;;  %v3899_v33 = vpop.f32.mrf.mxu1 }
 0x203   : > { %7074 = vst.msk [vmem:[%s10079_s13 + $0x228] sm:$0xf] %vm6935_vm0, %v8430_v24  ;;  %7330 = vst.msk [vmem:[%s10079_s13 + $0x628] sm:$0xf] %vm6935_vm0, %v8686_v25  ;;  %v4514_v34 = vmax.f32 %v2884_v26, 0.0  ;;  %v4770_v35 = vmax.f32 %v3908_v27, 0.0  ;;  %v2876_v36 = vadd.f32 %v10968_v55, %v2875_v32  ;;  %v3900_v37 = vadd.f32 %v10968_v55, %v3899_v33 }
 0x204   : > { %v8428_v38 = vpack.c.bf16 %v4511_v30, %v4511_v30  ;;  %v8684_v39 = vpack.c.bf16 %v4767_v31, %v4767_v31  ;;  %v9226_v40 = vpop.f32.mrf.mxu0  ;;  %9321 = vmatmul.mubr.bf16.gmra.mxu0 %v9866_v22  ;;  %v9482_v41 = vpop.f32.mrf.mxu1  ;;  %9577 = vmatmul.mubr.bf16.gmra.mxu1 %v9867_v23  ;;  %v9874_v31 = vld [vmem:[%s9942_s24 + $0x3d8] sm:$0xff]  }
 0x205   : > { %v8431_v42 = vpack.c.bf16 %v4514_v34, %v4514_v34  ;;  %v8687_v43 = vpack.c.bf16 %v4770_v35, %v4770_v35  ;;  %v4512_v45 = vmax.f32 %v2876_v36, 0.0  ;;  %v4768_v46 = vmax.f32 %v3900_v37, 0.0  ;;  %9324 = vmatprep.mubr.bf16.mxu0 %v9868_v28  ;;  %9580 = vmatprep.mubr.bf16.mxu1 %v9869_v29  ;;  %v9875_v32 = vld [vmem:[%s9942_s24 + $0x7d8] sm:$0xff]   ;;  %v9876_v37 = vld [vmem:[%s9942_s24 + $0x3e0] sm:$0xff]  }
 0x206   : > { %7072 = vst.msk [vmem:[%s10079_s13 + $0x220] sm:$0xf] %vm6935_vm0, %v8428_v38  ;;  %7328 = vst.msk [vmem:[%s10079_s13 + $0x620] sm:$0xf] %vm6935_vm0, %v8684_v39  ;;  %v2897_v47 = vadd.f32 %v10968_v55, %v9226_v40  ;;  %v3921_v48 = vadd.f32 %v10968_v55, %v9482_v41  ;;  %v2888_v49 = vpop.f32.mrf.mxu0  ;;  %v3912_v50 = vpop.f32.mrf.mxu1  ;;  %v9877_v38 = vld [vmem:[%s9942_s24 + $0x7e0] sm:$0xff]  }
 0x207   : > { %7075 = vst.msk [vmem:[%s10079_s13 + $0x22c] sm:$0xf] %vm6935_vm0, %v8431_v42  ;;  %7331 = vst.msk [vmem:[%s10079_s13 + $0x62c] sm:$0xf] %vm6935_vm0, %v8687_v43  ;;  %v8429_v51 = vpack.c.bf16 %v4512_v45, %v4512_v45  ;;  %v8685_v52 = vpack.c.bf16 %v4768_v46, %v4768_v46  ;;  %v2889_v53 = vadd.f32 %v10968_v55, %v2888_v49 }
 0x208   : > { %v3913_v54 = vadd.f32 %v10968_v55, %v3912_v50  ;;  %v4517_v44 = vmax.f32 %v2897_v47, 0.0  ;;  %v4773_v56 = vmax.f32 %v3921_v48, 0.0  ;;  %v9227_v57 = vpop.f32.mrf.mxu0  ;;  %v9483_v58 = vpop.f32.mrf.mxu1 }
 0x209   : > { %7073 = vst.msk [vmem:[%s10079_s13 + $0x224] sm:$0xf] %vm6935_vm0, %v8429_v51  ;;  %7329 = vst.msk [vmem:[%s10079_s13 + $0x624] sm:$0xf] %vm6935_vm0, %v8685_v52  ;;  %v4515_v61 = vmax.f32 %v2889_v53, 0.0  ;;  %v2900_v63 = vadd.f32 %v10968_v55, %v9227_v57  ;;  %v3924_v0 = vadd.f32 %v10968_v55, %v9483_v58 }
 0x20a   : > { %v4771_v62 = vmax.f32 %v3913_v54, 0.0  ;;  %v8434_v2 = vpack.c.bf16 %v4517_v44, %v4517_v44  ;;  %v8690_v3 = vpack.c.bf16 %v4773_v56, %v4773_v56  ;;  %v2891_v4 = vpop.f32.mrf.mxu0  ;;  %v3915_v5 = vpop.f32.mrf.mxu1 }
 0x20b   : > { %v8432_v7 = vpack.c.bf16 %v4515_v61, %v4515_v61  ;;  %v4518_v9 = vmax.f32 %v2900_v63, 0.0  ;;  %v4774_v10 = vmax.f32 %v3924_v0, 0.0  ;;  %v2892_v11 = vadd.f32 %v10968_v55, %v2891_v4  ;;  %v9878_v4 = vld [vmem:[%s9942_s24 + $0x3e8] sm:$0xff]  }
 0x20c   : > { %v8688_v8 = vpack.c.bf16 %v4771_v62, %v4771_v62  ;;  %7078 = vst.msk [vmem:[%s10079_s13 + $0x238] sm:$0xf] %vm6935_vm0, %v8434_v2  ;;  %7334 = vst.msk [vmem:[%s10079_s13 + $0x638] sm:$0xf] %vm6935_vm0, %v8690_v3  ;;  %v3916_v12 = vadd.f32 %v10968_v55, %v3915_v5  ;;  %v9230_v13 = vpop.f32.mrf.mxu0  ;;  %9325 = vmatmul.mubr.bf16.gmra.mxu0 %v9870_v59  ;;  %v9486_v14 = vpop.f32.mrf.mxu1  ;;  %9581 = vmatmul.mubr.bf16.gmra.mxu1 %v9871_v60  ;;  %v9879_v5 = vld [vmem:[%s9942_s24 + $0x7e8] sm:$0xff]  }
 0x20d   : > { %7076 = vst.msk [vmem:[%s10079_s13 + $0x230] sm:$0xf] %vm6935_vm0, %v8432_v7  ;;  %v8435_v15 = vpack.c.bf16 %v4518_v9, %v4518_v9  ;;  %v8691_v16 = vpack.c.bf16 %v4774_v10, %v4774_v10  ;;  %v2913_v17 = vadd.f32 %v10968_v55, %v9230_v13  ;;  %v3937_v18 = vadd.f32 %v10968_v55, %v9486_v14  ;;  %v9880_v10 = vld [vmem:[%s9942_s24 + $0x3f0] sm:$0xff]  }
 0x20e   : > { %7332 = vst.msk [vmem:[%s10079_s13 + $0x630] sm:$0xf] %vm6935_vm0, %v8688_v8  ;;  %9328 = vmatprep.mubr.bf16.mxu0 %v9872_v1  ;;  %v4516_v19 = vmax.f32 %v2892_v11, 0.0  ;;  %v4772_v20 = vmax.f32 %v3916_v12, 0.0  ;;  %v2904_v21 = vpop.f32.mrf.mxu0  ;;  %v3928_v22 = vpop.f32.mrf.mxu1  ;;  %9584 = vmatprep.mubr.bf16.mxu1 %v9873_v6  ;;  %v9881_v11 = vld [vmem:[%s9942_s24 + $0x7f0] sm:$0xff]  }
 0x20f   : > { %7079 = vst.msk [vmem:[%s10079_s13 + $0x23c] sm:$0xf] %vm6935_vm0, %v8435_v15  ;;  %7335 = vst.msk [vmem:[%s10079_s13 + $0x63c] sm:$0xf] %vm6935_vm0, %v8691_v16  ;;  %v4521_v23 = vmax.f32 %v2913_v17, 0.0  ;;  %v4777_v24 = vmax.f32 %v3937_v18, 0.0  ;;  %v2905_v25 = vadd.f32 %v10968_v55, %v2904_v21  ;;  %v3929_v26 = vadd.f32 %v10968_v55, %v3928_v22 }
 0x210   : > { %v8433_v27 = vpack.c.bf16 %v4516_v19, %v4516_v19  ;;  %v8689_v28 = vpack.c.bf16 %v4772_v20, %v4772_v20  ;;  %v9231_v29 = vpop.f32.mrf.mxu0  ;;  %v9487_v30 = vpop.f32.mrf.mxu1 }
 0x211   : > { %v8438_v33 = vpack.c.bf16 %v4521_v23, %v4521_v23  ;;  %v8694_v34 = vpack.c.bf16 %v4777_v24, %v4777_v24  ;;  %v4519_v35 = vmax.f32 %v2905_v25, 0.0  ;;  %v4775_v36 = vmax.f32 %v3929_v26, 0.0 }
 0x212   : > { %7077 = vst.msk [vmem:[%s10079_s13 + $0x234] sm:$0xf] %vm6935_vm0, %v8433_v27  ;;  %7333 = vst.msk [vmem:[%s10079_s13 + $0x634] sm:$0xf] %vm6935_vm0, %v8689_v28  ;;  %v2916_v39 = vadd.f32 %v10968_v55, %v9231_v29  ;;  %v3940_v40 = vadd.f32 %v10968_v55, %v9487_v30  ;;  %v2907_v41 = vpop.f32.mrf.mxu0  ;;  %v3931_v42 = vpop.f32.mrf.mxu1 }
 0x213   : > { %7082 = vst.msk [vmem:[%s10079_s13 + $0x248] sm:$0xf] %vm6935_vm0, %v8438_v33  ;;  %7338 = vst.msk [vmem:[%s10079_s13 + $0x648] sm:$0xf] %vm6935_vm0, %v8694_v34  ;;  %v8436_v43 = vpack.c.bf16 %v4519_v35, %v4519_v35  ;;  %v8692_v45 = vpack.c.bf16 %v4775_v36, %v4775_v36  ;;  %v2908_v46 = vadd.f32 %v10968_v55, %v2907_v41  ;;  %v9883_v41 = vld [vmem:[%s9942_s24 + $0x7f8] sm:$0xff]  }
 0x214   : > { %v3932_v47 = vadd.f32 %v10968_v55, %v3931_v42  ;;  %v4522_v48 = vmax.f32 %v2916_v39, 0.0  ;;  %v4778_v49 = vmax.f32 %v3940_v40, 0.0  ;;  %v9234_v50 = vpop.f32.mrf.mxu0  ;;  %9329 = vmatmul.mubr.bf16.gmra.mxu0 %v9874_v31  ;;  %v9490_v51 = vpop.f32.mrf.mxu1  ;;  %9585 = vmatmul.mubr.bf16.gmra.mxu1 %v9875_v32  ;;  %v9882_v40 = vld [vmem:[%s9942_s24 + $0x3f8] sm:$0xff]  }
 0x215   : > { %7080 = vst.msk [vmem:[%s10079_s13 + $0x240] sm:$0xf] %vm6935_vm0, %v8436_v43  ;;  %7336 = vst.msk [vmem:[%s10079_s13 + $0x640] sm:$0xf] %vm6935_vm0, %v8692_v45  ;;  %v4520_v52 = vmax.f32 %v2908_v46, 0.0  ;;  %v2929_v54 = vadd.f32 %v10968_v55, %v9234_v50  ;;  %v3953_v44 = vadd.f32 %v10968_v55, %v9490_v51  ;;  %9332 = vmatprep.mubr.bf16.mxu0 %v9876_v37  ;;  %9588 = vmatprep.mubr.bf16.mxu1 %v9877_v38 }
 0x216   : > { %v4776_v53 = vmax.f32 %v3932_v47, 0.0  ;;  %v8439_v56 = vpack.c.bf16 %v4522_v48, %v4522_v48  ;;  %v8695_v57 = vpack.c.bf16 %v4778_v49, %v4778_v49  ;;  %v2920_v58 = vpop.f32.mrf.mxu0  ;;  %v3944_v59 = vpop.f32.mrf.mxu1 }
 0x217   : > { %v8437_v60 = vpack.c.bf16 %v4520_v52, %v4520_v52  ;;  %v4525_v62 = vmax.f32 %v2929_v54, 0.0  ;;  %v4781_v63 = vmax.f32 %v3953_v44, 0.0  ;;  %v2921_v0 = vadd.f32 %v10968_v55, %v2920_v58 }
 0x218   : > { %v8693_v61 = vpack.c.bf16 %v4776_v53, %v4776_v53  ;;  %7083 = vst.msk [vmem:[%s10079_s13 + $0x24c] sm:$0xf] %vm6935_vm0, %v8439_v56  ;;  %7339 = vst.msk [vmem:[%s10079_s13 + $0x64c] sm:$0xf] %vm6935_vm0, %v8695_v57  ;;  %v3945_v1 = vadd.f32 %v10968_v55, %v3944_v59  ;;  %v9235_v2 = vpop.f32.mrf.mxu0  ;;  %v9491_v3 = vpop.f32.mrf.mxu1 }
 0x219   : > { %7081 = vst.msk [vmem:[%s10079_s13 + $0x244] sm:$0xf] %vm6935_vm0, %v8437_v60  ;;  %v8442_v6 = vpack.c.bf16 %v4525_v62, %v4525_v62  ;;  %v8698_v7 = vpack.c.bf16 %v4781_v63, %v4781_v63  ;;  %v2932_v8 = vadd.f32 %v10968_v55, %v9235_v2  ;;  %v3956_v9 = vadd.f32 %v10968_v55, %v9491_v3 }
 0x21a   : > { %7337 = vst.msk [vmem:[%s10079_s13 + $0x644] sm:$0xf] %vm6935_vm0, %v8693_v61  ;;  %v4523_v12 = vmax.f32 %v2921_v0, 0.0  ;;  %v4779_v13 = vmax.f32 %v3945_v1, 0.0  ;;  %v2923_v14 = vpop.f32.mrf.mxu0  ;;  %v3947_v15 = vpop.f32.mrf.mxu1 }
 0x21b   : > { %7086 = vst.msk [vmem:[%s10079_s13 + $0x258] sm:$0xf] %vm6935_vm0, %v8442_v6  ;;  %7342 = vst.msk [vmem:[%s10079_s13 + $0x658] sm:$0xf] %vm6935_vm0, %v8698_v7  ;;  %v4526_v16 = vmax.f32 %v2932_v8, 0.0  ;;  %v4782_v17 = vmax.f32 %v3956_v9, 0.0  ;;  %v2924_v18 = vadd.f32 %v10968_v55, %v2923_v14  ;;  %v3948_v19 = vadd.f32 %v10968_v55, %v3947_v15 }
 0x21c   : > { %v8440_v20 = vpack.c.bf16 %v4523_v12, %v4523_v12  ;;  %v8696_v21 = vpack.c.bf16 %v4779_v13, %v4779_v13  ;;  %v9238_v22 = vpop.f32.mrf.mxu0  ;;  %9333 = vmatmul.mubr.bf16.gmra.mxu0 %v9878_v4  ;;  %v9494_v23 = vpop.f32.mrf.mxu1  ;;  %9589 = vmatmul.mubr.bf16.gmra.mxu1 %v9879_v5 }
 0x21d   : > { %v8443_v24 = vpack.c.bf16 %v4526_v16, %v4526_v16  ;;  %v8699_v25 = vpack.c.bf16 %v4782_v17, %v4782_v17  ;;  %v4524_v26 = vmax.f32 %v2924_v18, 0.0  ;;  %v4780_v27 = vmax.f32 %v3948_v19, 0.0  ;;  %9336 = vmatprep.mubr.bf16.mxu0 %v9880_v10  ;;  %9592 = vmatprep.mubr.bf16.mxu1 %v9881_v11 }
 0x21e   : > { %7084 = vst.msk [vmem:[%s10079_s13 + $0x250] sm:$0xf] %vm6935_vm0, %v8440_v20  ;;  %7340 = vst.msk [vmem:[%s10079_s13 + $0x650] sm:$0xf] %vm6935_vm0, %v8696_v21  ;;  %v2945_v28 = vadd.f32 %v10968_v55, %v9238_v22  ;;  %v3969_v29 = vadd.f32 %v10968_v55, %v9494_v23  ;;  %v2936_v30 = vpop.f32.mrf.mxu0  ;;  %v3960_v31 = vpop.f32.mrf.mxu1 }
 0x21f   : > { %7087 = vst.msk [vmem:[%s10079_s13 + $0x25c] sm:$0xf] %vm6935_vm0, %v8443_v24  ;;  %7343 = vst.msk [vmem:[%s10079_s13 + $0x65c] sm:$0xf] %vm6935_vm0, %v8699_v25  ;;  %v8441_v32 = vpack.c.bf16 %v4524_v26, %v4524_v26  ;;  %v8697_v33 = vpack.c.bf16 %v4780_v27, %v4780_v27  ;;  %v2937_v34 = vadd.f32 %v10968_v55, %v2936_v30 }
 0x220   : > { %v3961_v35 = vadd.f32 %v10968_v55, %v3960_v31  ;;  %v4529_v36 = vmax.f32 %v2945_v28, 0.0  ;;  %v4785_v37 = vmax.f32 %v3969_v29, 0.0  ;;  %v9239_v38 = vpop.f32.mrf.mxu0  ;;  %v9495_v39 = vpop.f32.mrf.mxu1 }
 0x221   : > { %7085 = vst.msk [vmem:[%s10079_s13 + $0x254] sm:$0xf] %vm6935_vm0, %v8441_v32  ;;  %7341 = vst.msk [vmem:[%s10079_s13 + $0x654] sm:$0xf] %vm6935_vm0, %v8697_v33  ;;  %v4527_v42 = vmax.f32 %v2937_v34, 0.0  ;;  %v2948_v45 = vadd.f32 %v10968_v55, %v9239_v38  ;;  %v3972_v46 = vadd.f32 %v10968_v55, %v9495_v39 }
 0x222   : > { %v4783_v43 = vmax.f32 %v3961_v35, 0.0  ;;  %v8446_v47 = vpack.c.bf16 %v4529_v36, %v4529_v36  ;;  %v8702_v48 = vpack.c.bf16 %v4785_v37, %v4785_v37  ;;  %v2939_v49 = vpop.f32.mrf.mxu0  ;;  %v3963_v50 = vpop.f32.mrf.mxu1 }
 0x223   : > { %v8444_v51 = vpack.c.bf16 %v4527_v42, %v4527_v42  ;;  %v4530_v53 = vmax.f32 %v2948_v45, 0.0  ;;  %v4786_v54 = vmax.f32 %v3972_v46, 0.0  ;;  %v2940_v44 = vadd.f32 %v10968_v55, %v2939_v49 }
 0x224   : > { %v8700_v52 = vpack.c.bf16 %v4783_v43, %v4783_v43  ;;  %7090 = vst.msk [vmem:[%s10079_s13 + $0x268] sm:$0xf] %vm6935_vm0, %v8446_v47  ;;  %7346 = vst.msk [vmem:[%s10079_s13 + $0x668] sm:$0xf] %vm6935_vm0, %v8702_v48  ;;  %v3964_v56 = vadd.f32 %v10968_v55, %v3963_v50  ;;  %v9242_v57 = vpop.f32.mrf.mxu0  ;;  %9337 = vmatmul.mubr.bf16.gmra.mxu0 %v9882_v40  ;;  %v9498_v58 = vpop.f32.mrf.mxu1  ;;  %9593 = vmatmul.mubr.bf16.gmra.mxu1 %v9883_v41 }
 0x225   : > { %7088 = vst.msk [vmem:[%s10079_s13 + $0x260] sm:$0xf] %vm6935_vm0, %v8444_v51  ;;  %v8447_v59 = vpack.c.bf16 %v4530_v53, %v4530_v53  ;;  %v8703_v60 = vpack.c.bf16 %v4786_v54, %v4786_v54  ;;  %v2961_v61 = vadd.f32 %v10968_v55, %v9242_v57  ;;  %v3985_v62 = vadd.f32 %v10968_v55, %v9498_v58 }
 0x226   : > { %7344 = vst.msk [vmem:[%s10079_s13 + $0x660] sm:$0xf] %vm6935_vm0, %v8700_v52  ;;  %v4528_v63 = vmax.f32 %v2940_v44, 0.0  ;;  %v4784_v0 = vmax.f32 %v3964_v56, 0.0  ;;  %v2952_v1 = vpop.f32.mrf.mxu0  ;;  %v3976_v2 = vpop.f32.mrf.mxu1 }
 0x227   : > { %7091 = vst.msk [vmem:[%s10079_s13 + $0x26c] sm:$0xf] %vm6935_vm0, %v8447_v59  ;;  %7347 = vst.msk [vmem:[%s10079_s13 + $0x66c] sm:$0xf] %vm6935_vm0, %v8703_v60  ;;  %v4533_v3 = vmax.f32 %v2961_v61, 0.0  ;;  %v4789_v4 = vmax.f32 %v3985_v62, 0.0  ;;  %v2953_v5 = vadd.f32 %v10968_v55, %v2952_v1  ;;  %v3977_v6 = vadd.f32 %v10968_v55, %v3976_v2 }
 0x228   : > { %v8445_v7 = vpack.c.bf16 %v4528_v63, %v4528_v63  ;;  %v8701_v8 = vpack.c.bf16 %v4784_v0, %v4784_v0  ;;  %v9243_v9 = vpop.f32.mrf.mxu0  ;;  %v9499_v10 = vpop.f32.mrf.mxu1 }
 0x229   : > { %v8450_v11 = vpack.c.bf16 %v4533_v3, %v4533_v3  ;;  %v8706_v12 = vpack.c.bf16 %v4789_v4, %v4789_v4  ;;  %v4531_v13 = vmax.f32 %v2953_v5, 0.0  ;;  %v4787_v14 = vmax.f32 %v3977_v6, 0.0 }
 0x22a   : > { %7089 = vst.msk [vmem:[%s10079_s13 + $0x264] sm:$0xf] %vm6935_vm0, %v8445_v7  ;;  %7345 = vst.msk [vmem:[%s10079_s13 + $0x664] sm:$0xf] %vm6935_vm0, %v8701_v8  ;;  %v2964_v15 = vadd.f32 %v10968_v55, %v9243_v9  ;;  %v3988_v16 = vadd.f32 %v10968_v55, %v9499_v10  ;;  %v2955_v17 = vpop.f32.mrf.mxu0  ;;  %v3979_v18 = vpop.f32.mrf.mxu1 }
 0x22b   : > { %7094 = vst.msk [vmem:[%s10079_s13 + $0x278] sm:$0xf] %vm6935_vm0, %v8450_v11  ;;  %7350 = vst.msk [vmem:[%s10079_s13 + $0x678] sm:$0xf] %vm6935_vm0, %v8706_v12  ;;  %v8448_v19 = vpack.c.bf16 %v4531_v13, %v4531_v13  ;;  %v8704_v20 = vpack.c.bf16 %v4787_v14, %v4787_v14  ;;  %v2956_v21 = vadd.f32 %v10968_v55, %v2955_v17 }
 0x22c   : > { %v3980_v22 = vadd.f32 %v10968_v55, %v3979_v18  ;;  %v4534_v23 = vmax.f32 %v2964_v15, 0.0  ;;  %v4790_v24 = vmax.f32 %v3988_v16, 0.0  ;;  %v9246_v25 = vpop.f32.mrf.mxu0  ;;  %v9502_v26 = vpop.f32.mrf.mxu1 }
 0x22d   : > { %7092 = vst.msk [vmem:[%s10079_s13 + $0x270] sm:$0xf] %vm6935_vm0, %v8448_v19  ;;  %7348 = vst.msk [vmem:[%s10079_s13 + $0x670] sm:$0xf] %vm6935_vm0, %v8704_v20  ;;  %v4532_v27 = vmax.f32 %v2956_v21, 0.0  ;;  %v2977_v29 = vadd.f32 %v10968_v55, %v9246_v25  ;;  %v4001_v30 = vadd.f32 %v10968_v55, %v9502_v26 }
 0x22e   : > { %v4788_v28 = vmax.f32 %v3980_v22, 0.0  ;;  %v8451_v31 = vpack.c.bf16 %v4534_v23, %v4534_v23  ;;  %v8707_v32 = vpack.c.bf16 %v4790_v24, %v4790_v24  ;;  %v2968_v33 = vpop.f32.mrf.mxu0  ;;  %v3992_v34 = vpop.f32.mrf.mxu1 }
 0x22f   : > { %v8449_v35 = vpack.c.bf16 %v4532_v27, %v4532_v27  ;;  %v4537_v37 = vmax.f32 %v2977_v29, 0.0  ;;  %v4793_v38 = vmax.f32 %v4001_v30, 0.0  ;;  %v2969_v39 = vadd.f32 %v10968_v55, %v2968_v33 }
 0x230   : > { %v8705_v36 = vpack.c.bf16 %v4788_v28, %v4788_v28  ;;  %7095 = vst.msk [vmem:[%s10079_s13 + $0x27c] sm:$0xf] %vm6935_vm0, %v8451_v31  ;;  %7351 = vst.msk [vmem:[%s10079_s13 + $0x67c] sm:$0xf] %vm6935_vm0, %v8707_v32  ;;  %v3993_v40 = vadd.f32 %v10968_v55, %v3992_v34  ;;  %v9247_v41 = vpop.f32.mrf.mxu0  ;;  %v9503_v42 = vpop.f32.mrf.mxu1 }
 0x231   : > { %7093 = vst.msk [vmem:[%s10079_s13 + $0x274] sm:$0xf] %vm6935_vm0, %v8449_v35  ;;  %v8454_v43 = vpack.c.bf16 %v4537_v37, %v4537_v37  ;;  %v8710_v45 = vpack.c.bf16 %v4793_v38, %v4793_v38  ;;  %v2980_v46 = vadd.f32 %v10968_v55, %v9247_v41  ;;  %v4004_v47 = vadd.f32 %v10968_v55, %v9503_v42 }
 0x232   : > { %7349 = vst.msk [vmem:[%s10079_s13 + $0x674] sm:$0xf] %vm6935_vm0, %v8705_v36  ;;  %v4535_v48 = vmax.f32 %v2969_v39, 0.0  ;;  %v4791_v49 = vmax.f32 %v3993_v40, 0.0  ;;  %v2971_v50 = vpop.f32.mrf.mxu0  ;;  %v3995_v51 = vpop.f32.mrf.mxu1 }
 0x233   : > { %7098 = vst.msk [vmem:[%s10079_s13 + $0x288] sm:$0xf] %vm6935_vm0, %v8454_v43  ;;  %7354 = vst.msk [vmem:[%s10079_s13 + $0x688] sm:$0xf] %vm6935_vm0, %v8710_v45  ;;  %v4538_v52 = vmax.f32 %v2980_v46, 0.0  ;;  %v4794_v53 = vmax.f32 %v4004_v47, 0.0  ;;  %v2972_v54 = vadd.f32 %v10968_v55, %v2971_v50  ;;  %v3996_v44 = vadd.f32 %v10968_v55, %v3995_v51 }
 0x234   : > { %v8452_v56 = vpack.c.bf16 %v4535_v48, %v4535_v48  ;;  %v8708_v57 = vpack.c.bf16 %v4791_v49, %v4791_v49  ;;  %v9250_v58 = vpop.f32.mrf.mxu0  ;;  %v9506_v59 = vpop.f32.mrf.mxu1 }
 0x235   : > { %v8455_v60 = vpack.c.bf16 %v4538_v52, %v4538_v52  ;;  %v8711_v61 = vpack.c.bf16 %v4794_v53, %v4794_v53  ;;  %v4536_v62 = vmax.f32 %v2972_v54, 0.0  ;;  %v4792_v63 = vmax.f32 %v3996_v44, 0.0 }
 0x236   : > { %7096 = vst.msk [vmem:[%s10079_s13 + $0x280] sm:$0xf] %vm6935_vm0, %v8452_v56  ;;  %7352 = vst.msk [vmem:[%s10079_s13 + $0x680] sm:$0xf] %vm6935_vm0, %v8708_v57  ;;  %v2993_v0 = vadd.f32 %v10968_v55, %v9250_v58  ;;  %v4017_v1 = vadd.f32 %v10968_v55, %v9506_v59  ;;  %v2984_v2 = vpop.f32.mrf.mxu0  ;;  %v4008_v3 = vpop.f32.mrf.mxu1 }
 0x237   : > { %7099 = vst.msk [vmem:[%s10079_s13 + $0x28c] sm:$0xf] %vm6935_vm0, %v8455_v60  ;;  %7355 = vst.msk [vmem:[%s10079_s13 + $0x68c] sm:$0xf] %vm6935_vm0, %v8711_v61  ;;  %v8453_v4 = vpack.c.bf16 %v4536_v62, %v4536_v62  ;;  %v8709_v5 = vpack.c.bf16 %v4792_v63, %v4792_v63  ;;  %v2985_v6 = vadd.f32 %v10968_v55, %v2984_v2 }
 0x238   : > { %v4009_v7 = vadd.f32 %v10968_v55, %v4008_v3  ;;  %v4541_v8 = vmax.f32 %v2993_v0, 0.0  ;;  %v4797_v9 = vmax.f32 %v4017_v1, 0.0  ;;  %v9251_v10 = vpop.f32.mrf.mxu0  ;;  %v9507_v11 = vpop.f32.mrf.mxu1 }
 0x239   : > { %7097 = vst.msk [vmem:[%s10079_s13 + $0x284] sm:$0xf] %vm6935_vm0, %v8453_v4  ;;  %7353 = vst.msk [vmem:[%s10079_s13 + $0x684] sm:$0xf] %vm6935_vm0, %v8709_v5  ;;  %v4539_v12 = vmax.f32 %v2985_v6, 0.0  ;;  %v2996_v14 = vadd.f32 %v10968_v55, %v9251_v10  ;;  %v4020_v15 = vadd.f32 %v10968_v55, %v9507_v11 }
 0x23a   : > { %v4795_v13 = vmax.f32 %v4009_v7, 0.0  ;;  %v8458_v16 = vpack.c.bf16 %v4541_v8, %v4541_v8  ;;  %v8714_v17 = vpack.c.bf16 %v4797_v9, %v4797_v9  ;;  %v2987_v18 = vpop.f32.mrf.mxu0  ;;  %v4011_v19 = vpop.f32.mrf.mxu1  ;;  %v11275_v9 = vld [vmem:[%s11793_s2] ss:$0 sm:$0xff] }
 0x23b   : > { %v8456_v20 = vpack.c.bf16 %v4539_v12, %v4539_v12  ;;  %v4542_v22 = vmax.f32 %v2996_v14, 0.0  ;;  %v4798_v23 = vmax.f32 %v4020_v15, 0.0  ;;  %v2988_v24 = vadd.f32 %v10968_v55, %v2987_v18 }
 0x23c   : > { %v8712_v21 = vpack.c.bf16 %v4795_v13, %v4795_v13  ;;  %7102 = vst.msk [vmem:[%s10079_s13 + $0x298] sm:$0xf] %vm6935_vm0, %v8458_v16  ;;  %7358 = vst.msk [vmem:[%s10079_s13 + $0x698] sm:$0xf] %vm6935_vm0, %v8714_v17  ;;  %v4012_v25 = vadd.f32 %v10968_v55, %v4011_v19  ;;  %v9254_v26 = vpop.f32.mrf.mxu0  ;;  %v9510_v27 = vpop.f32.mrf.mxu1 }
 0x23d   : > { %7100 = vst.msk [vmem:[%s10079_s13 + $0x290] sm:$0xf] %vm6935_vm0, %v8456_v20  ;;  %v8459_v28 = vpack.c.bf16 %v4542_v22, %v4542_v22  ;;  %v8715_v29 = vpack.c.bf16 %v4798_v23, %v4798_v23  ;;  %v3009_v30 = vadd.f32 %v10968_v55, %v9254_v26  ;;  %v4033_v31 = vadd.f32 %v10968_v55, %v9510_v27 }
 0x23e   : > { %7356 = vst.msk [vmem:[%s10079_s13 + $0x690] sm:$0xf] %vm6935_vm0, %v8712_v21  ;;  %v4540_v32 = vmax.f32 %v2988_v24, 0.0  ;;  %v4796_v33 = vmax.f32 %v4012_v25, 0.0  ;;  %v3000_v34 = vpop.f32.mrf.mxu0  ;;  %v4024_v35 = vpop.f32.mrf.mxu1 }
 0x23f   : > { %7103 = vst.msk [vmem:[%s10079_s13 + $0x29c] sm:$0xf] %vm6935_vm0, %v8459_v28  ;;  %7359 = vst.msk [vmem:[%s10079_s13 + $0x69c] sm:$0xf] %vm6935_vm0, %v8715_v29  ;;  %v4545_v36 = vmax.f32 %v3009_v30, 0.0  ;;  %v4801_v37 = vmax.f32 %v4033_v31, 0.0  ;;  %v3001_v38 = vadd.f32 %v10968_v55, %v3000_v34  ;;  %v4025_v39 = vadd.f32 %v10968_v55, %v4024_v35 }
 0x240   : > { %v8457_v40 = vpack.c.bf16 %v4540_v32, %v4540_v32  ;;  %v8713_v41 = vpack.c.bf16 %v4796_v33, %v4796_v33  ;;  %v9255_v42 = vpop.f32.mrf.mxu0  ;;  %v9511_v43 = vpop.f32.mrf.mxu1 }
 0x241   : > { %v8462_v45 = vpack.c.bf16 %v4545_v36, %v4545_v36  ;;  %v8718_v46 = vpack.c.bf16 %v4801_v37, %v4801_v37  ;;  %v4543_v47 = vmax.f32 %v3001_v38, 0.0  ;;  %v4799_v48 = vmax.f32 %v4025_v39, 0.0 }
 0x242   : > { %7101 = vst.msk [vmem:[%s10079_s13 + $0x294] sm:$0xf] %vm6935_vm0, %v8457_v40  ;;  %7357 = vst.msk [vmem:[%s10079_s13 + $0x694] sm:$0xf] %vm6935_vm0, %v8713_v41  ;;  %v3012_v49 = vadd.f32 %v10968_v55, %v9255_v42  ;;  %v4036_v50 = vadd.f32 %v10968_v55, %v9511_v43  ;;  %v3003_v51 = vpop.f32.mrf.mxu0  ;;  %v4027_v52 = vpop.f32.mrf.mxu1 }
 0x243   : > { %7106 = vst.msk [vmem:[%s10079_s13 + $0x2a8] sm:$0xf] %vm6935_vm0, %v8462_v45  ;;  %7362 = vst.msk [vmem:[%s10079_s13 + $0x6a8] sm:$0xf] %vm6935_vm0, %v8718_v46  ;;  %v8460_v53 = vpack.c.bf16 %v4543_v47, %v4543_v47  ;;  %v8716_v54 = vpack.c.bf16 %v4799_v48, %v4799_v48  ;;  %v3004_v44 = vadd.f32 %v10968_v55, %v3003_v51 }
 0x244   : > { %v4028_v56 = vadd.f32 %v10968_v55, %v4027_v52  ;;  %v4546_v57 = vmax.f32 %v3012_v49, 0.0  ;;  %v4802_v58 = vmax.f32 %v4036_v50, 0.0  ;;  %v9258_v59 = vpop.f32.mrf.mxu0  ;;  %v9514_v60 = vpop.f32.mrf.mxu1 }
 0x245   : > { %7104 = vst.msk [vmem:[%s10079_s13 + $0x2a0] sm:$0xf] %vm6935_vm0, %v8460_v53  ;;  %7360 = vst.msk [vmem:[%s10079_s13 + $0x6a0] sm:$0xf] %vm6935_vm0, %v8716_v54  ;;  %v4544_v61 = vmax.f32 %v3004_v44, 0.0  ;;  %v3025_v63 = vadd.f32 %v10968_v55, %v9258_v59  ;;  %v4049_v0 = vadd.f32 %v10968_v55, %v9514_v60 }
 0x246   : > { %v4800_v62 = vmax.f32 %v4028_v56, 0.0  ;;  %v8463_v1 = vpack.c.bf16 %v4546_v57, %v4546_v57  ;;  %v8719_v2 = vpack.c.bf16 %v4802_v58, %v4802_v58  ;;  %v3016_v3 = vpop.f32.mrf.mxu0  ;;  %v4040_v4 = vpop.f32.mrf.mxu1 }
 0x247   : > { %v8461_v5 = vpack.c.bf16 %v4544_v61, %v4544_v61  ;;  %v4549_v7 = vmax.f32 %v3025_v63, 0.0  ;;  %v4805_v8 = vmax.f32 %v4049_v0, 0.0  ;;  %v3017_v55 = vadd.f32 %v11275_v9, %v3016_v3 }
 0x248   : > { %v8717_v6 = vpack.c.bf16 %v4800_v62, %v4800_v62  ;;  %7107 = vst.msk [vmem:[%s10079_s13 + $0x2ac] sm:$0xf] %vm6935_vm0, %v8463_v1  ;;  %7363 = vst.msk [vmem:[%s10079_s13 + $0x6ac] sm:$0xf] %vm6935_vm0, %v8719_v2  ;;  %v4041_v10 = vadd.f32 %v11275_v9, %v4040_v4  ;;  %v9259_v11 = vpop.f32.mrf.mxu0  ;;  %v9515_v12 = vpop.f32.mrf.mxu1 }
 0x249   : > { %7105 = vst.msk [vmem:[%s10079_s13 + $0x2a4] sm:$0xf] %vm6935_vm0, %v8461_v5  ;;  %v8466_v13 = vpack.c.bf16 %v4549_v7, %v4549_v7  ;;  %v8722_v14 = vpack.c.bf16 %v4805_v8, %v4805_v8  ;;  %v3028_v15 = vadd.f32 %v11275_v9, %v9259_v11  ;;  %v4052_v16 = vadd.f32 %v11275_v9, %v9515_v12 }
 0x24a   : > { %7361 = vst.msk [vmem:[%s10079_s13 + $0x6a4] sm:$0xf] %vm6935_vm0, %v8717_v6  ;;  %v4547_v17 = vmax.f32 %v3017_v55, 0.0  ;;  %v4803_v18 = vmax.f32 %v4041_v10, 0.0  ;;  %v3019_v19 = vpop.f32.mrf.mxu0  ;;  %v4043_v20 = vpop.f32.mrf.mxu1 }
 0x24b   : > { %7110 = vst.msk [vmem:[%s10079_s13 + $0x2b8] sm:$0xf] %vm6935_vm0, %v8466_v13  ;;  %7366 = vst.msk [vmem:[%s10079_s13 + $0x6b8] sm:$0xf] %vm6935_vm0, %v8722_v14  ;;  %v4550_v21 = vmax.f32 %v3028_v15, 0.0  ;;  %v4806_v22 = vmax.f32 %v4052_v16, 0.0  ;;  %v3020_v23 = vadd.f32 %v11275_v9, %v3019_v19  ;;  %v4044_v24 = vadd.f32 %v11275_v9, %v4043_v20 }
 0x24c   : > { %v8464_v25 = vpack.c.bf16 %v4547_v17, %v4547_v17  ;;  %v8720_v26 = vpack.c.bf16 %v4803_v18, %v4803_v18  ;;  %v9262_v27 = vpop.f32.mrf.mxu0  ;;  %v9518_v28 = vpop.f32.mrf.mxu1 }
 0x24d   : > { %v8467_v29 = vpack.c.bf16 %v4550_v21, %v4550_v21  ;;  %v8723_v30 = vpack.c.bf16 %v4806_v22, %v4806_v22  ;;  %v4548_v31 = vmax.f32 %v3020_v23, 0.0  ;;  %v4804_v32 = vmax.f32 %v4044_v24, 0.0 }
 0x24e   : > { %7108 = vst.msk [vmem:[%s10079_s13 + $0x2b0] sm:$0xf] %vm6935_vm0, %v8464_v25  ;;  %7364 = vst.msk [vmem:[%s10079_s13 + $0x6b0] sm:$0xf] %vm6935_vm0, %v8720_v26  ;;  %v3041_v33 = vadd.f32 %v11275_v9, %v9262_v27  ;;  %v4065_v34 = vadd.f32 %v11275_v9, %v9518_v28  ;;  %v3032_v35 = vpop.f32.mrf.mxu0  ;;  %v4056_v36 = vpop.f32.mrf.mxu1 }
 0x24f   : > { %7111 = vst.msk [vmem:[%s10079_s13 + $0x2bc] sm:$0xf] %vm6935_vm0, %v8467_v29  ;;  %7367 = vst.msk [vmem:[%s10079_s13 + $0x6bc] sm:$0xf] %vm6935_vm0, %v8723_v30  ;;  %v8465_v37 = vpack.c.bf16 %v4548_v31, %v4548_v31  ;;  %v8721_v38 = vpack.c.bf16 %v4804_v32, %v4804_v32  ;;  %v3033_v39 = vadd.f32 %v11275_v9, %v3032_v35 }
 0x250   : > { %v4057_v40 = vadd.f32 %v11275_v9, %v4056_v36  ;;  %v4553_v41 = vmax.f32 %v3041_v33, 0.0  ;;  %v4809_v42 = vmax.f32 %v4065_v34, 0.0  ;;  %v9263_v43 = vpop.f32.mrf.mxu0  ;;  %v9519_v45 = vpop.f32.mrf.mxu1 }
 0x251   : > { %7109 = vst.msk [vmem:[%s10079_s13 + $0x2b4] sm:$0xf] %vm6935_vm0, %v8465_v37  ;;  %7365 = vst.msk [vmem:[%s10079_s13 + $0x6b4] sm:$0xf] %vm6935_vm0, %v8721_v38  ;;  %v4551_v46 = vmax.f32 %v3033_v39, 0.0  ;;  %v3044_v48 = vadd.f32 %v11275_v9, %v9263_v43  ;;  %v4068_v49 = vadd.f32 %v11275_v9, %v9519_v45 }
 0x252   : > { %v4807_v47 = vmax.f32 %v4057_v40, 0.0  ;;  %v8470_v50 = vpack.c.bf16 %v4553_v41, %v4553_v41  ;;  %v8726_v51 = vpack.c.bf16 %v4809_v42, %v4809_v42  ;;  %v3035_v52 = vpop.f32.mrf.mxu0  ;;  %v4059_v53 = vpop.f32.mrf.mxu1 }
 0x253   : > { %v8468_v54 = vpack.c.bf16 %v4551_v46, %v4551_v46  ;;  %v4554_v56 = vmax.f32 %v3044_v48, 0.0  ;;  %v4810_v57 = vmax.f32 %v4068_v49, 0.0  ;;  %v3036_v58 = vadd.f32 %v11275_v9, %v3035_v52 }
 0x254   : > { %v8724_v44 = vpack.c.bf16 %v4807_v47, %v4807_v47  ;;  %7114 = vst.msk [vmem:[%s10079_s13 + $0x2c8] sm:$0xf] %vm6935_vm0, %v8470_v50  ;;  %7370 = vst.msk [vmem:[%s10079_s13 + $0x6c8] sm:$0xf] %vm6935_vm0, %v8726_v51  ;;  %v4060_v59 = vadd.f32 %v11275_v9, %v4059_v53  ;;  %v9266_v60 = vpop.f32.mrf.mxu0  ;;  %v9522_v61 = vpop.f32.mrf.mxu1 }
 0x255   : > { %7112 = vst.msk [vmem:[%s10079_s13 + $0x2c0] sm:$0xf] %vm6935_vm0, %v8468_v54  ;;  %v8471_v62 = vpack.c.bf16 %v4554_v56, %v4554_v56  ;;  %v8727_v63 = vpack.c.bf16 %v4810_v57, %v4810_v57  ;;  %v3057_v0 = vadd.f32 %v11275_v9, %v9266_v60  ;;  %v4081_v1 = vadd.f32 %v11275_v9, %v9522_v61 }
 0x256   : > { %7368 = vst.msk [vmem:[%s10079_s13 + $0x6c0] sm:$0xf] %vm6935_vm0, %v8724_v44  ;;  %v4552_v2 = vmax.f32 %v3036_v58, 0.0  ;;  %v4808_v3 = vmax.f32 %v4060_v59, 0.0  ;;  %v3048_v4 = vpop.f32.mrf.mxu0  ;;  %v4072_v5 = vpop.f32.mrf.mxu1 }
 0x257   : > { %7115 = vst.msk [vmem:[%s10079_s13 + $0x2cc] sm:$0xf] %vm6935_vm0, %v8471_v62  ;;  %7371 = vst.msk [vmem:[%s10079_s13 + $0x6cc] sm:$0xf] %vm6935_vm0, %v8727_v63  ;;  %v4557_v6 = vmax.f32 %v3057_v0, 0.0  ;;  %v4813_v7 = vmax.f32 %v4081_v1, 0.0  ;;  %v3049_v8 = vadd.f32 %v11275_v9, %v3048_v4  ;;  %v4073_v55 = vadd.f32 %v11275_v9, %v4072_v5 }
 0x258   : > { %v8469_v10 = vpack.c.bf16 %v4552_v2, %v4552_v2  ;;  %v8725_v11 = vpack.c.bf16 %v4808_v3, %v4808_v3  ;;  %v9267_v12 = vpop.f32.mrf.mxu0  ;;  %v9523_v13 = vpop.f32.mrf.mxu1 }
 0x259   : > { %v8474_v14 = vpack.c.bf16 %v4557_v6, %v4557_v6  ;;  %v8730_v15 = vpack.c.bf16 %v4813_v7, %v4813_v7  ;;  %v4555_v16 = vmax.f32 %v3049_v8, 0.0  ;;  %v4811_v17 = vmax.f32 %v4073_v55, 0.0 }
 0x25a   : > { %7113 = vst.msk [vmem:[%s10079_s13 + $0x2c4] sm:$0xf] %vm6935_vm0, %v8469_v10  ;;  %7369 = vst.msk [vmem:[%s10079_s13 + $0x6c4] sm:$0xf] %vm6935_vm0, %v8725_v11  ;;  %v3060_v18 = vadd.f32 %v11275_v9, %v9267_v12  ;;  %v4084_v19 = vadd.f32 %v11275_v9, %v9523_v13  ;;  %v3051_v20 = vpop.f32.mrf.mxu0  ;;  %v4075_v21 = vpop.f32.mrf.mxu1 }
 0x25b   : > { %7118 = vst.msk [vmem:[%s10079_s13 + $0x2d8] sm:$0xf] %vm6935_vm0, %v8474_v14  ;;  %7374 = vst.msk [vmem:[%s10079_s13 + $0x6d8] sm:$0xf] %vm6935_vm0, %v8730_v15  ;;  %v8472_v22 = vpack.c.bf16 %v4555_v16, %v4555_v16  ;;  %v8728_v23 = vpack.c.bf16 %v4811_v17, %v4811_v17  ;;  %v3052_v24 = vadd.f32 %v11275_v9, %v3051_v20 }
 0x25c   : > { %v4076_v25 = vadd.f32 %v11275_v9, %v4075_v21  ;;  %v4558_v26 = vmax.f32 %v3060_v18, 0.0  ;;  %v4814_v27 = vmax.f32 %v4084_v19, 0.0  ;;  %v9270_v28 = vpop.f32.mrf.mxu0  ;;  %v9526_v29 = vpop.f32.mrf.mxu1 }
 0x25d   : > { %7116 = vst.msk [vmem:[%s10079_s13 + $0x2d0] sm:$0xf] %vm6935_vm0, %v8472_v22  ;;  %7372 = vst.msk [vmem:[%s10079_s13 + $0x6d0] sm:$0xf] %vm6935_vm0, %v8728_v23  ;;  %v4556_v30 = vmax.f32 %v3052_v24, 0.0  ;;  %v3073_v32 = vadd.f32 %v11275_v9, %v9270_v28  ;;  %v4097_v33 = vadd.f32 %v11275_v9, %v9526_v29 }
 0x25e   : > { %v4812_v31 = vmax.f32 %v4076_v25, 0.0  ;;  %v8475_v34 = vpack.c.bf16 %v4558_v26, %v4558_v26  ;;  %v8731_v35 = vpack.c.bf16 %v4814_v27, %v4814_v27  ;;  %v3064_v36 = vpop.f32.mrf.mxu0  ;;  %v4088_v37 = vpop.f32.mrf.mxu1 }
 0x25f   : > { %v8473_v38 = vpack.c.bf16 %v4556_v30, %v4556_v30  ;;  %v4561_v40 = vmax.f32 %v3073_v32, 0.0  ;;  %v4817_v41 = vmax.f32 %v4097_v33, 0.0  ;;  %v3065_v42 = vadd.f32 %v11275_v9, %v3064_v36 }
 0x260   : > { %v8729_v39 = vpack.c.bf16 %v4812_v31, %v4812_v31  ;;  %7119 = vst.msk [vmem:[%s10079_s13 + $0x2dc] sm:$0xf] %vm6935_vm0, %v8475_v34  ;;  %7375 = vst.msk [vmem:[%s10079_s13 + $0x6dc] sm:$0xf] %vm6935_vm0, %v8731_v35  ;;  %v4089_v43 = vadd.f32 %v11275_v9, %v4088_v37  ;;  %v9271_v45 = vpop.f32.mrf.mxu0  ;;  %v9527_v46 = vpop.f32.mrf.mxu1 }
 0x261   : > { %7117 = vst.msk [vmem:[%s10079_s13 + $0x2d4] sm:$0xf] %vm6935_vm0, %v8473_v38  ;;  %v8478_v47 = vpack.c.bf16 %v4561_v40, %v4561_v40  ;;  %v8734_v48 = vpack.c.bf16 %v4817_v41, %v4817_v41  ;;  %v3076_v49 = vadd.f32 %v11275_v9, %v9271_v45  ;;  %v4100_v50 = vadd.f32 %v11275_v9, %v9527_v46 }
 0x262   : > { %7373 = vst.msk [vmem:[%s10079_s13 + $0x6d4] sm:$0xf] %vm6935_vm0, %v8729_v39  ;;  %v4559_v51 = vmax.f32 %v3065_v42, 0.0  ;;  %v4815_v52 = vmax.f32 %v4089_v43, 0.0  ;;  %v3067_v53 = vpop.f32.mrf.mxu0  ;;  %v4091_v54 = vpop.f32.mrf.mxu1 }
 0x263   : > { %7122 = vst.msk [vmem:[%s10079_s13 + $0x2e8] sm:$0xf] %vm6935_vm0, %v8478_v47  ;;  %7378 = vst.msk [vmem:[%s10079_s13 + $0x6e8] sm:$0xf] %vm6935_vm0, %v8734_v48  ;;  %v4562_v44 = vmax.f32 %v3076_v49, 0.0  ;;  %v4818_v56 = vmax.f32 %v4100_v50, 0.0  ;;  %v3068_v57 = vadd.f32 %v11275_v9, %v3067_v53  ;;  %v4092_v58 = vadd.f32 %v11275_v9, %v4091_v54 }
 0x264   : > { %v8476_v59 = vpack.c.bf16 %v4559_v51, %v4559_v51  ;;  %v8732_v60 = vpack.c.bf16 %v4815_v52, %v4815_v52  ;;  %v9274_v61 = vpop.f32.mrf.mxu0  ;;  %v9530_v62 = vpop.f32.mrf.mxu1 }
 0x265   : > { %v8479_v63 = vpack.c.bf16 %v4562_v44, %v4562_v44  ;;  %v8735_v0 = vpack.c.bf16 %v4818_v56, %v4818_v56  ;;  %v4560_v1 = vmax.f32 %v3068_v57, 0.0  ;;  %v4816_v2 = vmax.f32 %v4092_v58, 0.0 }
 0x266   : > { %7120 = vst.msk [vmem:[%s10079_s13 + $0x2e0] sm:$0xf] %vm6935_vm0, %v8476_v59  ;;  %7376 = vst.msk [vmem:[%s10079_s13 + $0x6e0] sm:$0xf] %vm6935_vm0, %v8732_v60  ;;  %v3089_v3 = vadd.f32 %v11275_v9, %v9274_v61  ;;  %v4113_v4 = vadd.f32 %v11275_v9, %v9530_v62  ;;  %v3080_v5 = vpop.f32.mrf.mxu0  ;;  %v4104_v6 = vpop.f32.mrf.mxu1 }
 0x267   : > { %7123 = vst.msk [vmem:[%s10079_s13 + $0x2ec] sm:$0xf] %vm6935_vm0, %v8479_v63  ;;  %7379 = vst.msk [vmem:[%s10079_s13 + $0x6ec] sm:$0xf] %vm6935_vm0, %v8735_v0  ;;  %v8477_v7 = vpack.c.bf16 %v4560_v1, %v4560_v1  ;;  %v8733_v8 = vpack.c.bf16 %v4816_v2, %v4816_v2  ;;  %v3081_v55 = vadd.f32 %v11275_v9, %v3080_v5 }
 0x268   : > { %v4105_v10 = vadd.f32 %v11275_v9, %v4104_v6  ;;  %v4565_v11 = vmax.f32 %v3089_v3, 0.0  ;;  %v4821_v12 = vmax.f32 %v4113_v4, 0.0  ;;  %v9275_v13 = vpop.f32.mrf.mxu0  ;;  %v9531_v14 = vpop.f32.mrf.mxu1 }
 0x269   : > { %7121 = vst.msk [vmem:[%s10079_s13 + $0x2e4] sm:$0xf] %vm6935_vm0, %v8477_v7  ;;  %7377 = vst.msk [vmem:[%s10079_s13 + $0x6e4] sm:$0xf] %vm6935_vm0, %v8733_v8  ;;  %v4563_v15 = vmax.f32 %v3081_v55, 0.0  ;;  %v3092_v17 = vadd.f32 %v11275_v9, %v9275_v13  ;;  %v4116_v18 = vadd.f32 %v11275_v9, %v9531_v14 }
 0x26a   : > { %v4819_v16 = vmax.f32 %v4105_v10, 0.0  ;;  %v8482_v19 = vpack.c.bf16 %v4565_v11, %v4565_v11  ;;  %v8738_v20 = vpack.c.bf16 %v4821_v12, %v4821_v12  ;;  %v3083_v21 = vpop.f32.mrf.mxu0  ;;  %v4107_v22 = vpop.f32.mrf.mxu1 }
 0x26b   : > { %v8480_v23 = vpack.c.bf16 %v4563_v15, %v4563_v15  ;;  %v4566_v25 = vmax.f32 %v3092_v17, 0.0  ;;  %v4822_v26 = vmax.f32 %v4116_v18, 0.0  ;;  %v3084_v27 = vadd.f32 %v11275_v9, %v3083_v21 }
 0x26c   : > { %v8736_v24 = vpack.c.bf16 %v4819_v16, %v4819_v16  ;;  %7126 = vst.msk [vmem:[%s10079_s13 + $0x2f8] sm:$0xf] %vm6935_vm0, %v8482_v19  ;;  %7382 = vst.msk [vmem:[%s10079_s13 + $0x6f8] sm:$0xf] %vm6935_vm0, %v8738_v20  ;;  %v4108_v28 = vadd.f32 %v11275_v9, %v4107_v22  ;;  %v9278_v29 = vpop.f32.mrf.mxu0  ;;  %v9534_v30 = vpop.f32.mrf.mxu1 }
 0x26d   : > { %7124 = vst.msk [vmem:[%s10079_s13 + $0x2f0] sm:$0xf] %vm6935_vm0, %v8480_v23  ;;  %v8483_v31 = vpack.c.bf16 %v4566_v25, %v4566_v25  ;;  %v8739_v32 = vpack.c.bf16 %v4822_v26, %v4822_v26  ;;  %v3105_v33 = vadd.f32 %v11275_v9, %v9278_v29  ;;  %v4129_v34 = vadd.f32 %v11275_v9, %v9534_v30 }
 0x26e   : > { %7380 = vst.msk [vmem:[%s10079_s13 + $0x6f0] sm:$0xf] %vm6935_vm0, %v8736_v24  ;;  %v4564_v35 = vmax.f32 %v3084_v27, 0.0  ;;  %v4820_v36 = vmax.f32 %v4108_v28, 0.0  ;;  %v3096_v37 = vpop.f32.mrf.mxu0  ;;  %v4120_v38 = vpop.f32.mrf.mxu1 }
 0x26f   : > { %7127 = vst.msk [vmem:[%s10079_s13 + $0x2fc] sm:$0xf] %vm6935_vm0, %v8483_v31  ;;  %7383 = vst.msk [vmem:[%s10079_s13 + $0x6fc] sm:$0xf] %vm6935_vm0, %v8739_v32  ;;  %v4569_v39 = vmax.f32 %v3105_v33, 0.0  ;;  %v4825_v40 = vmax.f32 %v4129_v34, 0.0  ;;  %v3097_v41 = vadd.f32 %v11275_v9, %v3096_v37  ;;  %v4121_v42 = vadd.f32 %v11275_v9, %v4120_v38 }
 0x270   : > { %v8481_v43 = vpack.c.bf16 %v4564_v35, %v4564_v35  ;;  %v8737_v45 = vpack.c.bf16 %v4820_v36, %v4820_v36  ;;  %v9279_v46 = vpop.f32.mrf.mxu0  ;;  %v9535_v47 = vpop.f32.mrf.mxu1 }
 0x271   : > { %v8486_v48 = vpack.c.bf16 %v4569_v39, %v4569_v39  ;;  %v8742_v49 = vpack.c.bf16 %v4825_v40, %v4825_v40  ;;  %v4567_v50 = vmax.f32 %v3097_v41, 0.0  ;;  %v4823_v51 = vmax.f32 %v4121_v42, 0.0 }
 0x272   : > { %7125 = vst.msk [vmem:[%s10079_s13 + $0x2f4] sm:$0xf] %vm6935_vm0, %v8481_v43  ;;  %7381 = vst.msk [vmem:[%s10079_s13 + $0x6f4] sm:$0xf] %vm6935_vm0, %v8737_v45  ;;  %v3108_v52 = vadd.f32 %v11275_v9, %v9279_v46  ;;  %v4132_v53 = vadd.f32 %v11275_v9, %v9535_v47  ;;  %v3099_v54 = vpop.f32.mrf.mxu0  ;;  %v4123_v44 = vpop.f32.mrf.mxu1 }
 0x273   : > { %7130 = vst.msk [vmem:[%s10079_s13 + $0x308] sm:$0xf] %vm6935_vm0, %v8486_v48  ;;  %7386 = vst.msk [vmem:[%s10079_s13 + $0x708] sm:$0xf] %vm6935_vm0, %v8742_v49  ;;  %v8484_v56 = vpack.c.bf16 %v4567_v50, %v4567_v50  ;;  %v8740_v57 = vpack.c.bf16 %v4823_v51, %v4823_v51  ;;  %v3100_v58 = vadd.f32 %v11275_v9, %v3099_v54 }
 0x274   : > { %v4124_v59 = vadd.f32 %v11275_v9, %v4123_v44  ;;  %v4570_v60 = vmax.f32 %v3108_v52, 0.0  ;;  %v4826_v61 = vmax.f32 %v4132_v53, 0.0  ;;  %v9282_v62 = vpop.f32.mrf.mxu0  ;;  %v9538_v63 = vpop.f32.mrf.mxu1 }
 0x275   : > { %7128 = vst.msk [vmem:[%s10079_s13 + $0x300] sm:$0xf] %vm6935_vm0, %v8484_v56  ;;  %7384 = vst.msk [vmem:[%s10079_s13 + $0x700] sm:$0xf] %vm6935_vm0, %v8740_v57  ;;  %v4568_v0 = vmax.f32 %v3100_v58, 0.0  ;;  %v3121_v2 = vadd.f32 %v11275_v9, %v9282_v62  ;;  %v4145_v3 = vadd.f32 %v11275_v9, %v9538_v63 }
 0x276   : > { %v4824_v1 = vmax.f32 %v4124_v59, 0.0  ;;  %v8487_v4 = vpack.c.bf16 %v4570_v60, %v4570_v60  ;;  %v8743_v5 = vpack.c.bf16 %v4826_v61, %v4826_v61  ;;  %v3112_v6 = vpop.f32.mrf.mxu0  ;;  %v4136_v7 = vpop.f32.mrf.mxu1 }
 0x277   : > { %v8485_v8 = vpack.c.bf16 %v4568_v0, %v4568_v0  ;;  %v4573_v10 = vmax.f32 %v3121_v2, 0.0  ;;  %v4829_v11 = vmax.f32 %v4145_v3, 0.0  ;;  %v3113_v12 = vadd.f32 %v11275_v9, %v3112_v6 }
 0x278   : > { %v8741_v55 = vpack.c.bf16 %v4824_v1, %v4824_v1  ;;  %7131 = vst.msk [vmem:[%s10079_s13 + $0x30c] sm:$0xf] %vm6935_vm0, %v8487_v4  ;;  %7387 = vst.msk [vmem:[%s10079_s13 + $0x70c] sm:$0xf] %vm6935_vm0, %v8743_v5  ;;  %v4137_v13 = vadd.f32 %v11275_v9, %v4136_v7  ;;  %v9283_v14 = vpop.f32.mrf.mxu0  ;;  %v9539_v15 = vpop.f32.mrf.mxu1 }
 0x279   : > { %7129 = vst.msk [vmem:[%s10079_s13 + $0x304] sm:$0xf] %vm6935_vm0, %v8485_v8  ;;  %v8490_v16 = vpack.c.bf16 %v4573_v10, %v4573_v10  ;;  %v8746_v17 = vpack.c.bf16 %v4829_v11, %v4829_v11  ;;  %v3124_v18 = vadd.f32 %v11275_v9, %v9283_v14  ;;  %v4148_v19 = vadd.f32 %v11275_v9, %v9539_v15 }
 0x27a   : > { %7385 = vst.msk [vmem:[%s10079_s13 + $0x704] sm:$0xf] %vm6935_vm0, %v8741_v55  ;;  %v4571_v20 = vmax.f32 %v3113_v12, 0.0  ;;  %v4827_v21 = vmax.f32 %v4137_v13, 0.0  ;;  %v3115_v22 = vpop.f32.mrf.mxu0  ;;  %v4139_v23 = vpop.f32.mrf.mxu1 }
 0x27b   : > { %7134 = vst.msk [vmem:[%s10079_s13 + $0x318] sm:$0xf] %vm6935_vm0, %v8490_v16  ;;  %7390 = vst.msk [vmem:[%s10079_s13 + $0x718] sm:$0xf] %vm6935_vm0, %v8746_v17  ;;  %v4574_v24 = vmax.f32 %v3124_v18, 0.0  ;;  %v4830_v25 = vmax.f32 %v4148_v19, 0.0  ;;  %v3116_v26 = vadd.f32 %v11275_v9, %v3115_v22  ;;  %v4140_v27 = vadd.f32 %v11275_v9, %v4139_v23 }
 0x27c   : > { %v8488_v28 = vpack.c.bf16 %v4571_v20, %v4571_v20  ;;  %v8744_v29 = vpack.c.bf16 %v4827_v21, %v4827_v21  ;;  %v9286_v30 = vpop.f32.mrf.mxu0  ;;  %v9542_v31 = vpop.f32.mrf.mxu1 }
 0x27d   : > { %v8491_v32 = vpack.c.bf16 %v4574_v24, %v4574_v24  ;;  %v8747_v33 = vpack.c.bf16 %v4830_v25, %v4830_v25  ;;  %v4572_v34 = vmax.f32 %v3116_v26, 0.0  ;;  %v4828_v35 = vmax.f32 %v4140_v27, 0.0 }
 0x27e   : > { %7132 = vst.msk [vmem:[%s10079_s13 + $0x310] sm:$0xf] %vm6935_vm0, %v8488_v28  ;;  %7388 = vst.msk [vmem:[%s10079_s13 + $0x710] sm:$0xf] %vm6935_vm0, %v8744_v29  ;;  %v3137_v36 = vadd.f32 %v11275_v9, %v9286_v30  ;;  %v4161_v37 = vadd.f32 %v11275_v9, %v9542_v31  ;;  %v3128_v38 = vpop.f32.mrf.mxu0  ;;  %v4152_v39 = vpop.f32.mrf.mxu1 }
 0x27f   : > { %7135 = vst.msk [vmem:[%s10079_s13 + $0x31c] sm:$0xf] %vm6935_vm0, %v8491_v32  ;;  %7391 = vst.msk [vmem:[%s10079_s13 + $0x71c] sm:$0xf] %vm6935_vm0, %v8747_v33  ;;  %v8489_v40 = vpack.c.bf16 %v4572_v34, %v4572_v34  ;;  %v8745_v41 = vpack.c.bf16 %v4828_v35, %v4828_v35  ;;  %v3129_v42 = vadd.f32 %v11275_v9, %v3128_v38 }
 0x280   : > { %v4153_v43 = vadd.f32 %v11275_v9, %v4152_v39  ;;  %v4577_v45 = vmax.f32 %v3137_v36, 0.0  ;;  %v4833_v46 = vmax.f32 %v4161_v37, 0.0  ;;  %v9287_v47 = vpop.f32.mrf.mxu0  ;;  %v9543_v48 = vpop.f32.mrf.mxu1 }
 0x281   : > { %7133 = vst.msk [vmem:[%s10079_s13 + $0x314] sm:$0xf] %vm6935_vm0, %v8489_v40  ;;  %7389 = vst.msk [vmem:[%s10079_s13 + $0x714] sm:$0xf] %vm6935_vm0, %v8745_v41  ;;  %v4575_v49 = vmax.f32 %v3129_v42, 0.0  ;;  %v3140_v51 = vadd.f32 %v11275_v9, %v9287_v47  ;;  %v4164_v52 = vadd.f32 %v11275_v9, %v9543_v48 }
 0x282   : > { %v4831_v50 = vmax.f32 %v4153_v43, 0.0  ;;  %v8494_v53 = vpack.c.bf16 %v4577_v45, %v4577_v45  ;;  %v8750_v54 = vpack.c.bf16 %v4833_v46, %v4833_v46  ;;  %v3131_v44 = vpop.f32.mrf.mxu0  ;;  %v4155_v56 = vpop.f32.mrf.mxu1 }
 0x283   : > { %v8492_v57 = vpack.c.bf16 %v4575_v49, %v4575_v49  ;;  %v4578_v59 = vmax.f32 %v3140_v51, 0.0  ;;  %v4834_v60 = vmax.f32 %v4164_v52, 0.0  ;;  %v3132_v61 = vadd.f32 %v11275_v9, %v3131_v44 }
 0x284   : > { %v8748_v58 = vpack.c.bf16 %v4831_v50, %v4831_v50  ;;  %7138 = vst.msk [vmem:[%s10079_s13 + $0x328] sm:$0xf] %vm6935_vm0, %v8494_v53  ;;  %7394 = vst.msk [vmem:[%s10079_s13 + $0x728] sm:$0xf] %vm6935_vm0, %v8750_v54  ;;  %v4156_v62 = vadd.f32 %v11275_v9, %v4155_v56  ;;  %v9290_v63 = vpop.f32.mrf.mxu0  ;;  %v9546_v0 = vpop.f32.mrf.mxu1 }
 0x285   : > { %7136 = vst.msk [vmem:[%s10079_s13 + $0x320] sm:$0xf] %vm6935_vm0, %v8492_v57  ;;  %v8495_v1 = vpack.c.bf16 %v4578_v59, %v4578_v59  ;;  %v8751_v2 = vpack.c.bf16 %v4834_v60, %v4834_v60  ;;  %v3153_v3 = vadd.f32 %v11275_v9, %v9290_v63  ;;  %v4177_v4 = vadd.f32 %v11275_v9, %v9546_v0 }
 0x286   : > { %7392 = vst.msk [vmem:[%s10079_s13 + $0x720] sm:$0xf] %vm6935_vm0, %v8748_v58  ;;  %v4576_v5 = vmax.f32 %v3132_v61, 0.0  ;;  %v4832_v6 = vmax.f32 %v4156_v62, 0.0  ;;  %v3144_v7 = vpop.f32.mrf.mxu0  ;;  %v4168_v8 = vpop.f32.mrf.mxu1 }
 0x287   : > { %7139 = vst.msk [vmem:[%s10079_s13 + $0x32c] sm:$0xf] %vm6935_vm0, %v8495_v1  ;;  %7395 = vst.msk [vmem:[%s10079_s13 + $0x72c] sm:$0xf] %vm6935_vm0, %v8751_v2  ;;  %v4581_v55 = vmax.f32 %v3153_v3, 0.0  ;;  %v4837_v10 = vmax.f32 %v4177_v4, 0.0  ;;  %v3145_v11 = vadd.f32 %v11275_v9, %v3144_v7  ;;  %v4169_v12 = vadd.f32 %v11275_v9, %v4168_v8 }
 0x288   : > { %v8493_v13 = vpack.c.bf16 %v4576_v5, %v4576_v5  ;;  %v8749_v14 = vpack.c.bf16 %v4832_v6, %v4832_v6  ;;  %v9291_v15 = vpop.f32.mrf.mxu0  ;;  %v9547_v16 = vpop.f32.mrf.mxu1 }
 0x289   : > { %v8498_v17 = vpack.c.bf16 %v4581_v55, %v4581_v55  ;;  %v8754_v18 = vpack.c.bf16 %v4837_v10, %v4837_v10  ;;  %v4579_v19 = vmax.f32 %v3145_v11, 0.0  ;;  %v4835_v20 = vmax.f32 %v4169_v12, 0.0 }
 0x28a   : > { %7137 = vst.msk [vmem:[%s10079_s13 + $0x324] sm:$0xf] %vm6935_vm0, %v8493_v13  ;;  %7393 = vst.msk [vmem:[%s10079_s13 + $0x724] sm:$0xf] %vm6935_vm0, %v8749_v14  ;;  %v3156_v21 = vadd.f32 %v11275_v9, %v9291_v15  ;;  %v4180_v22 = vadd.f32 %v11275_v9, %v9547_v16  ;;  %v3147_v23 = vpop.f32.mrf.mxu0  ;;  %v4171_v24 = vpop.f32.mrf.mxu1 }
 0x28b   : > { %7142 = vst.msk [vmem:[%s10079_s13 + $0x338] sm:$0xf] %vm6935_vm0, %v8498_v17  ;;  %7398 = vst.msk [vmem:[%s10079_s13 + $0x738] sm:$0xf] %vm6935_vm0, %v8754_v18  ;;  %v8496_v25 = vpack.c.bf16 %v4579_v19, %v4579_v19  ;;  %v8752_v26 = vpack.c.bf16 %v4835_v20, %v4835_v20  ;;  %v3148_v27 = vadd.f32 %v11275_v9, %v3147_v23 }
 0x28c   : > { %v4172_v28 = vadd.f32 %v11275_v9, %v4171_v24  ;;  %v4582_v29 = vmax.f32 %v3156_v21, 0.0  ;;  %v4838_v30 = vmax.f32 %v4180_v22, 0.0  ;;  %v9294_v31 = vpop.f32.mrf.mxu0  ;;  %v9550_v32 = vpop.f32.mrf.mxu1 }
 0x28d   : > { %7140 = vst.msk [vmem:[%s10079_s13 + $0x330] sm:$0xf] %vm6935_vm0, %v8496_v25  ;;  %7396 = vst.msk [vmem:[%s10079_s13 + $0x730] sm:$0xf] %vm6935_vm0, %v8752_v26  ;;  %v4580_v33 = vmax.f32 %v3148_v27, 0.0  ;;  %v3169_v35 = vadd.f32 %v11275_v9, %v9294_v31  ;;  %v4193_v36 = vadd.f32 %v11275_v9, %v9550_v32 }
 0x28e   : > { %v4836_v34 = vmax.f32 %v4172_v28, 0.0  ;;  %v8499_v37 = vpack.c.bf16 %v4582_v29, %v4582_v29  ;;  %v8755_v38 = vpack.c.bf16 %v4838_v30, %v4838_v30  ;;  %v3160_v39 = vpop.f32.mrf.mxu0  ;;  %v4184_v40 = vpop.f32.mrf.mxu1 }
 0x28f   : > { %v8497_v41 = vpack.c.bf16 %v4580_v33, %v4580_v33  ;;  %v4585_v43 = vmax.f32 %v3169_v35, 0.0  ;;  %v4841_v45 = vmax.f32 %v4193_v36, 0.0  ;;  %v3161_v46 = vadd.f32 %v11275_v9, %v3160_v39 }
 0x290   : > { %v8753_v42 = vpack.c.bf16 %v4836_v34, %v4836_v34  ;;  %7143 = vst.msk [vmem:[%s10079_s13 + $0x33c] sm:$0xf] %vm6935_vm0, %v8499_v37  ;;  %7399 = vst.msk [vmem:[%s10079_s13 + $0x73c] sm:$0xf] %vm6935_vm0, %v8755_v38  ;;  %v4185_v47 = vadd.f32 %v11275_v9, %v4184_v40  ;;  %v9295_v48 = vpop.f32.mrf.mxu0  ;;  %v9551_v49 = vpop.f32.mrf.mxu1 }
 0x291   : > { %7141 = vst.msk [vmem:[%s10079_s13 + $0x334] sm:$0xf] %vm6935_vm0, %v8497_v41  ;;  %v8502_v50 = vpack.c.bf16 %v4585_v43, %v4585_v43  ;;  %v8758_v51 = vpack.c.bf16 %v4841_v45, %v4841_v45  ;;  %v3172_v52 = vadd.f32 %v11275_v9, %v9295_v48  ;;  %v4196_v53 = vadd.f32 %v11275_v9, %v9551_v49 }
 0x292   : > { %7397 = vst.msk [vmem:[%s10079_s13 + $0x734] sm:$0xf] %vm6935_vm0, %v8753_v42  ;;  %v4583_v54 = vmax.f32 %v3161_v46, 0.0  ;;  %v4839_v44 = vmax.f32 %v4185_v47, 0.0  ;;  %v3163_v56 = vpop.f32.mrf.mxu0  ;;  %v4187_v57 = vpop.f32.mrf.mxu1 }
 0x293   : > { %7146 = vst.msk [vmem:[%s10079_s13 + $0x348] sm:$0xf] %vm6935_vm0, %v8502_v50  ;;  %7402 = vst.msk [vmem:[%s10079_s13 + $0x748] sm:$0xf] %vm6935_vm0, %v8758_v51  ;;  %v4586_v58 = vmax.f32 %v3172_v52, 0.0  ;;  %v4842_v59 = vmax.f32 %v4196_v53, 0.0  ;;  %v3164_v60 = vadd.f32 %v11275_v9, %v3163_v56  ;;  %v4188_v61 = vadd.f32 %v11275_v9, %v4187_v57 }
 0x294   : > { %v8500_v62 = vpack.c.bf16 %v4583_v54, %v4583_v54  ;;  %v8756_v63 = vpack.c.bf16 %v4839_v44, %v4839_v44  ;;  %v9298_v0 = vpop.f32.mrf.mxu0  ;;  %v9554_v1 = vpop.f32.mrf.mxu1 }
 0x295   : > { %v8503_v2 = vpack.c.bf16 %v4586_v58, %v4586_v58  ;;  %v8759_v3 = vpack.c.bf16 %v4842_v59, %v4842_v59  ;;  %v4584_v4 = vmax.f32 %v3164_v60, 0.0  ;;  %v4840_v5 = vmax.f32 %v4188_v61, 0.0 }
 0x296   : > { %7144 = vst.msk [vmem:[%s10079_s13 + $0x340] sm:$0xf] %vm6935_vm0, %v8500_v62  ;;  %7400 = vst.msk [vmem:[%s10079_s13 + $0x740] sm:$0xf] %vm6935_vm0, %v8756_v63  ;;  %v3185_v6 = vadd.f32 %v11275_v9, %v9298_v0  ;;  %v4209_v7 = vadd.f32 %v11275_v9, %v9554_v1  ;;  %v3176_v8 = vpop.f32.mrf.mxu0  ;;  %v4200_v55 = vpop.f32.mrf.mxu1 }
 0x297   : > { %7147 = vst.msk [vmem:[%s10079_s13 + $0x34c] sm:$0xf] %vm6935_vm0, %v8503_v2  ;;  %7403 = vst.msk [vmem:[%s10079_s13 + $0x74c] sm:$0xf] %vm6935_vm0, %v8759_v3  ;;  %v8501_v10 = vpack.c.bf16 %v4584_v4, %v4584_v4  ;;  %v8757_v11 = vpack.c.bf16 %v4840_v5, %v4840_v5  ;;  %v3177_v12 = vadd.f32 %v11275_v9, %v3176_v8 }
 0x298   : > { %v4201_v13 = vadd.f32 %v11275_v9, %v4200_v55  ;;  %v4589_v14 = vmax.f32 %v3185_v6, 0.0  ;;  %v4845_v15 = vmax.f32 %v4209_v7, 0.0  ;;  %v9299_v16 = vpop.f32.mrf.mxu0  ;;  %v9555_v17 = vpop.f32.mrf.mxu1 }
 0x299   : > { %7145 = vst.msk [vmem:[%s10079_s13 + $0x344] sm:$0xf] %vm6935_vm0, %v8501_v10  ;;  %7401 = vst.msk [vmem:[%s10079_s13 + $0x744] sm:$0xf] %vm6935_vm0, %v8757_v11  ;;  %v4587_v18 = vmax.f32 %v3177_v12, 0.0  ;;  %v3188_v20 = vadd.f32 %v11275_v9, %v9299_v16  ;;  %v4212_v21 = vadd.f32 %v11275_v9, %v9555_v17 }
 0x29a   : > { %v4843_v19 = vmax.f32 %v4201_v13, 0.0  ;;  %v8506_v22 = vpack.c.bf16 %v4589_v14, %v4589_v14  ;;  %v8762_v23 = vpack.c.bf16 %v4845_v15, %v4845_v15  ;;  %v3179_v24 = vpop.f32.mrf.mxu0  ;;  %v4203_v25 = vpop.f32.mrf.mxu1 }
 0x29b   : > { %v8504_v26 = vpack.c.bf16 %v4587_v18, %v4587_v18  ;;  %v4590_v28 = vmax.f32 %v3188_v20, 0.0  ;;  %v4846_v29 = vmax.f32 %v4212_v21, 0.0  ;;  %v3180_v30 = vadd.f32 %v11275_v9, %v3179_v24 }
 0x29c   : > { %v8760_v27 = vpack.c.bf16 %v4843_v19, %v4843_v19  ;;  %7150 = vst.msk [vmem:[%s10079_s13 + $0x358] sm:$0xf] %vm6935_vm0, %v8506_v22  ;;  %7406 = vst.msk [vmem:[%s10079_s13 + $0x758] sm:$0xf] %vm6935_vm0, %v8762_v23  ;;  %v4204_v31 = vadd.f32 %v11275_v9, %v4203_v25  ;;  %v9302_v32 = vpop.f32.mrf.mxu0  ;;  %v9558_v33 = vpop.f32.mrf.mxu1 }
 0x29d   : > { %7148 = vst.msk [vmem:[%s10079_s13 + $0x350] sm:$0xf] %vm6935_vm0, %v8504_v26  ;;  %v8507_v34 = vpack.c.bf16 %v4590_v28, %v4590_v28  ;;  %v8763_v35 = vpack.c.bf16 %v4846_v29, %v4846_v29  ;;  %v3201_v36 = vadd.f32 %v11275_v9, %v9302_v32  ;;  %v4225_v37 = vadd.f32 %v11275_v9, %v9558_v33 }
 0x29e   : > { %7404 = vst.msk [vmem:[%s10079_s13 + $0x750] sm:$0xf] %vm6935_vm0, %v8760_v27  ;;  %v4588_v38 = vmax.f32 %v3180_v30, 0.0  ;;  %v4844_v39 = vmax.f32 %v4204_v31, 0.0  ;;  %v3192_v40 = vpop.f32.mrf.mxu0  ;;  %v4216_v41 = vpop.f32.mrf.mxu1 }
 0x29f   : > { %7151 = vst.msk [vmem:[%s10079_s13 + $0x35c] sm:$0xf] %vm6935_vm0, %v8507_v34  ;;  %7407 = vst.msk [vmem:[%s10079_s13 + $0x75c] sm:$0xf] %vm6935_vm0, %v8763_v35  ;;  %v4593_v42 = vmax.f32 %v3201_v36, 0.0  ;;  %v4849_v43 = vmax.f32 %v4225_v37, 0.0  ;;  %v3193_v45 = vadd.f32 %v11275_v9, %v3192_v40  ;;  %v4217_v46 = vadd.f32 %v11275_v9, %v4216_v41 }
 0x2a0   : > { %v8505_v47 = vpack.c.bf16 %v4588_v38, %v4588_v38  ;;  %v8761_v48 = vpack.c.bf16 %v4844_v39, %v4844_v39  ;;  %v9303_v49 = vpop.f32.mrf.mxu0  ;;  %v9559_v50 = vpop.f32.mrf.mxu1 }
 0x2a1   : > { %v8510_v51 = vpack.c.bf16 %v4593_v42, %v4593_v42  ;;  %v8766_v52 = vpack.c.bf16 %v4849_v43, %v4849_v43  ;;  %v4591_v53 = vmax.f32 %v3193_v45, 0.0  ;;  %v4847_v54 = vmax.f32 %v4217_v46, 0.0  ;;  %v11592_v46 = vld [vmem:[%s11793_s2] ss:$0 sm:$0xff] }
 0x2a2   : > { %7149 = vst.msk [vmem:[%s10079_s13 + $0x354] sm:$0xf] %vm6935_vm0, %v8505_v47  ;;  %7405 = vst.msk [vmem:[%s10079_s13 + $0x754] sm:$0xf] %vm6935_vm0, %v8761_v48  ;;  %v3204_v44 = vadd.f32 %v11275_v9, %v9303_v49  ;;  %v4228_v56 = vadd.f32 %v11275_v9, %v9559_v50  ;;  %v3195_v57 = vpop.f32.mrf.mxu0  ;;  %v4219_v58 = vpop.f32.mrf.mxu1 }
 0x2a3   : > { %7154 = vst.msk [vmem:[%s10079_s13 + $0x368] sm:$0xf] %vm6935_vm0, %v8510_v51  ;;  %7410 = vst.msk [vmem:[%s10079_s13 + $0x768] sm:$0xf] %vm6935_vm0, %v8766_v52  ;;  %v8508_v59 = vpack.c.bf16 %v4591_v53, %v4591_v53  ;;  %v8764_v60 = vpack.c.bf16 %v4847_v54, %v4847_v54  ;;  %v3196_v61 = vadd.f32 %v11275_v9, %v3195_v57 }
 0x2a4   : > { %v4220_v62 = vadd.f32 %v11275_v9, %v4219_v58  ;;  %v4594_v63 = vmax.f32 %v3204_v44, 0.0  ;;  %v4850_v0 = vmax.f32 %v4228_v56, 0.0  ;;  %v9306_v1 = vpop.f32.mrf.mxu0  ;;  %v9562_v2 = vpop.f32.mrf.mxu1 }
 0x2a5   : > { %7152 = vst.msk [vmem:[%s10079_s13 + $0x360] sm:$0xf] %vm6935_vm0, %v8508_v59  ;;  %7408 = vst.msk [vmem:[%s10079_s13 + $0x760] sm:$0xf] %vm6935_vm0, %v8764_v60  ;;  %v4592_v3 = vmax.f32 %v3196_v61, 0.0  ;;  %v3217_v5 = vadd.f32 %v11275_v9, %v9306_v1  ;;  %v4241_v6 = vadd.f32 %v11275_v9, %v9562_v2 }
 0x2a6   : > { %v4848_v4 = vmax.f32 %v4220_v62, 0.0  ;;  %v8511_v7 = vpack.c.bf16 %v4594_v63, %v4594_v63  ;;  %v8767_v8 = vpack.c.bf16 %v4850_v0, %v4850_v0  ;;  %v3208_v55 = vpop.f32.mrf.mxu0  ;;  %v4232_v10 = vpop.f32.mrf.mxu1 }
 0x2a7   : > { %v8509_v11 = vpack.c.bf16 %v4592_v3, %v4592_v3  ;;  %v4597_v13 = vmax.f32 %v3217_v5, 0.0  ;;  %v4853_v14 = vmax.f32 %v4241_v6, 0.0  ;;  %v3209_v15 = vadd.f32 %v11275_v9, %v3208_v55 }
 0x2a8   : > { %v8765_v12 = vpack.c.bf16 %v4848_v4, %v4848_v4  ;;  %7155 = vst.msk [vmem:[%s10079_s13 + $0x36c] sm:$0xf] %vm6935_vm0, %v8511_v7  ;;  %7411 = vst.msk [vmem:[%s10079_s13 + $0x76c] sm:$0xf] %vm6935_vm0, %v8767_v8  ;;  %v4233_v16 = vadd.f32 %v11275_v9, %v4232_v10  ;;  %v9307_v17 = vpop.f32.mrf.mxu0  ;;  %v9563_v18 = vpop.f32.mrf.mxu1 }
 0x2a9   : > { %7153 = vst.msk [vmem:[%s10079_s13 + $0x364] sm:$0xf] %vm6935_vm0, %v8509_v11  ;;  %v8514_v19 = vpack.c.bf16 %v4597_v13, %v4597_v13  ;;  %v8770_v20 = vpack.c.bf16 %v4853_v14, %v4853_v14  ;;  %v3220_v21 = vadd.f32 %v11275_v9, %v9307_v17  ;;  %v4244_v22 = vadd.f32 %v11275_v9, %v9563_v18 }
 0x2aa   : > { %7409 = vst.msk [vmem:[%s10079_s13 + $0x764] sm:$0xf] %vm6935_vm0, %v8765_v12  ;;  %v4595_v23 = vmax.f32 %v3209_v15, 0.0  ;;  %v4851_v24 = vmax.f32 %v4233_v16, 0.0  ;;  %v3211_v25 = vpop.f32.mrf.mxu0  ;;  %v4235_v26 = vpop.f32.mrf.mxu1 }
 0x2ab   : > { %7158 = vst.msk [vmem:[%s10079_s13 + $0x378] sm:$0xf] %vm6935_vm0, %v8514_v19  ;;  %7414 = vst.msk [vmem:[%s10079_s13 + $0x778] sm:$0xf] %vm6935_vm0, %v8770_v20  ;;  %v4598_v27 = vmax.f32 %v3220_v21, 0.0  ;;  %v4854_v28 = vmax.f32 %v4244_v22, 0.0  ;;  %v3212_v29 = vadd.f32 %v11275_v9, %v3211_v25  ;;  %v4236_v30 = vadd.f32 %v11275_v9, %v4235_v26 }
 0x2ac   : > { %v8512_v31 = vpack.c.bf16 %v4595_v23, %v4595_v23  ;;  %v8768_v32 = vpack.c.bf16 %v4851_v24, %v4851_v24  ;;  %v9310_v33 = vpop.f32.mrf.mxu0  ;;  %v9566_v34 = vpop.f32.mrf.mxu1 }
 0x2ad   : > { %v8515_v35 = vpack.c.bf16 %v4598_v27, %v4598_v27  ;;  %v8771_v36 = vpack.c.bf16 %v4854_v28, %v4854_v28  ;;  %v4596_v37 = vmax.f32 %v3212_v29, 0.0  ;;  %v4852_v38 = vmax.f32 %v4236_v30, 0.0 }
 0x2ae   : > { %7156 = vst.msk [vmem:[%s10079_s13 + $0x370] sm:$0xf] %vm6935_vm0, %v8512_v31  ;;  %7412 = vst.msk [vmem:[%s10079_s13 + $0x770] sm:$0xf] %vm6935_vm0, %v8768_v32  ;;  %v3233_v39 = vadd.f32 %v11275_v9, %v9310_v33  ;;  %v4257_v40 = vadd.f32 %v11275_v9, %v9566_v34  ;;  %v3224_v41 = vpop.f32.mrf.mxu0  ;;  %v4248_v42 = vpop.f32.mrf.mxu1 }
 0x2af   : > { %7159 = vst.msk [vmem:[%s10079_s13 + $0x37c] sm:$0xf] %vm6935_vm0, %v8515_v35  ;;  %7415 = vst.msk [vmem:[%s10079_s13 + $0x77c] sm:$0xf] %vm6935_vm0, %v8771_v36  ;;  %v8513_v43 = vpack.c.bf16 %v4596_v37, %v4596_v37  ;;  %v8769_v45 = vpack.c.bf16 %v4852_v38, %v4852_v38  ;;  %v3225_v47 = vadd.f32 %v11592_v46, %v3224_v41 }
 0x2b0   : > { %v4249_v48 = vadd.f32 %v11592_v46, %v4248_v42  ;;  %v4601_v49 = vmax.f32 %v3233_v39, 0.0  ;;  %v4857_v50 = vmax.f32 %v4257_v40, 0.0  ;;  %v9311_v9 = vpop.f32.mrf.mxu0  ;;  %v9567_v51 = vpop.f32.mrf.mxu1 }
 0x2b1   : > { %7157 = vst.msk [vmem:[%s10079_s13 + $0x374] sm:$0xf] %vm6935_vm0, %v8513_v43  ;;  %7413 = vst.msk [vmem:[%s10079_s13 + $0x774] sm:$0xf] %vm6935_vm0, %v8769_v45  ;;  %v4599_v52 = vmax.f32 %v3225_v47, 0.0  ;;  %v3236_v54 = vadd.f32 %v11592_v46, %v9311_v9  ;;  %v4260_v44 = vadd.f32 %v11592_v46, %v9567_v51 }
 0x2b2   : > { %v4855_v53 = vmax.f32 %v4249_v48, 0.0  ;;  %v8518_v56 = vpack.c.bf16 %v4601_v49, %v4601_v49  ;;  %v8774_v57 = vpack.c.bf16 %v4857_v50, %v4857_v50  ;;  %v3227_v58 = vpop.f32.mrf.mxu0  ;;  %v4251_v59 = vpop.f32.mrf.mxu1 }
 0x2b3   : > { %v8516_v60 = vpack.c.bf16 %v4599_v52, %v4599_v52  ;;  %v4602_v62 = vmax.f32 %v3236_v54, 0.0  ;;  %v4858_v63 = vmax.f32 %v4260_v44, 0.0  ;;  %v3228_v0 = vadd.f32 %v11592_v46, %v3227_v58 }
 0x2b4   : > { %v8772_v61 = vpack.c.bf16 %v4855_v53, %v4855_v53  ;;  %7162 = vst.msk [vmem:[%s10079_s13 + $0x388] sm:$0xf] %vm6935_vm0, %v8518_v56  ;;  %7418 = vst.msk [vmem:[%s10079_s13 + $0x788] sm:$0xf] %vm6935_vm0, %v8774_v57  ;;  %v4252_v1 = vadd.f32 %v11592_v46, %v4251_v59  ;;  %v9314_v2 = vpop.f32.mrf.mxu0  ;;  %v9570_v3 = vpop.f32.mrf.mxu1 }
 0x2b5   : > { %7160 = vst.msk [vmem:[%s10079_s13 + $0x380] sm:$0xf] %vm6935_vm0, %v8516_v60  ;;  %v8519_v4 = vpack.c.bf16 %v4602_v62, %v4602_v62  ;;  %v8775_v5 = vpack.c.bf16 %v4858_v63, %v4858_v63  ;;  %v3249_v6 = vadd.f32 %v11592_v46, %v9314_v2  ;;  %v4273_v7 = vadd.f32 %v11592_v46, %v9570_v3 }
 0x2b6   : > { %7416 = vst.msk [vmem:[%s10079_s13 + $0x780] sm:$0xf] %vm6935_vm0, %v8772_v61  ;;  %v4600_v8 = vmax.f32 %v3228_v0, 0.0  ;;  %v4856_v55 = vmax.f32 %v4252_v1, 0.0  ;;  %v3240_v10 = vpop.f32.mrf.mxu0  ;;  %v4264_v11 = vpop.f32.mrf.mxu1 }
 0x2b7   : > { %7163 = vst.msk [vmem:[%s10079_s13 + $0x38c] sm:$0xf] %vm6935_vm0, %v8519_v4  ;;  %7419 = vst.msk [vmem:[%s10079_s13 + $0x78c] sm:$0xf] %vm6935_vm0, %v8775_v5  ;;  %v4605_v12 = vmax.f32 %v3249_v6, 0.0  ;;  %v4861_v13 = vmax.f32 %v4273_v7, 0.0  ;;  %v3241_v14 = vadd.f32 %v11592_v46, %v3240_v10  ;;  %v4265_v15 = vadd.f32 %v11592_v46, %v4264_v11 }
 0x2b8   : > { %v8517_v16 = vpack.c.bf16 %v4600_v8, %v4600_v8  ;;  %v8773_v17 = vpack.c.bf16 %v4856_v55, %v4856_v55  ;;  %v9315_v18 = vpop.f32.mrf.mxu0  ;;  %v9571_v19 = vpop.f32.mrf.mxu1 }
 0x2b9   : > { %v8522_v20 = vpack.c.bf16 %v4605_v12, %v4605_v12  ;;  %v8778_v21 = vpack.c.bf16 %v4861_v13, %v4861_v13  ;;  %v4603_v22 = vmax.f32 %v3241_v14, 0.0  ;;  %v4859_v23 = vmax.f32 %v4265_v15, 0.0 }
 0x2ba   : > { %7161 = vst.msk [vmem:[%s10079_s13 + $0x384] sm:$0xf] %vm6935_vm0, %v8517_v16  ;;  %7417 = vst.msk [vmem:[%s10079_s13 + $0x784] sm:$0xf] %vm6935_vm0, %v8773_v17  ;;  %v3252_v24 = vadd.f32 %v11592_v46, %v9315_v18  ;;  %v4276_v25 = vadd.f32 %v11592_v46, %v9571_v19  ;;  %v3243_v26 = vpop.f32.mrf.mxu0  ;;  %v4267_v27 = vpop.f32.mrf.mxu1 }
 0x2bb   : > { %7166 = vst.msk [vmem:[%s10079_s13 + $0x398] sm:$0xf] %vm6935_vm0, %v8522_v20  ;;  %7422 = vst.msk [vmem:[%s10079_s13 + $0x798] sm:$0xf] %vm6935_vm0, %v8778_v21  ;;  %v8520_v28 = vpack.c.bf16 %v4603_v22, %v4603_v22  ;;  %v8776_v29 = vpack.c.bf16 %v4859_v23, %v4859_v23  ;;  %v3244_v30 = vadd.f32 %v11592_v46, %v3243_v26 }
 0x2bc   : > { %v4268_v31 = vadd.f32 %v11592_v46, %v4267_v27  ;;  %v4606_v32 = vmax.f32 %v3252_v24, 0.0  ;;  %v4862_v33 = vmax.f32 %v4276_v25, 0.0  ;;  %v9318_v34 = vpop.f32.mrf.mxu0  ;;  %v9574_v35 = vpop.f32.mrf.mxu1 }
 0x2bd   : > { %7164 = vst.msk [vmem:[%s10079_s13 + $0x390] sm:$0xf] %vm6935_vm0, %v8520_v28  ;;  %7420 = vst.msk [vmem:[%s10079_s13 + $0x790] sm:$0xf] %vm6935_vm0, %v8776_v29  ;;  %v4604_v36 = vmax.f32 %v3244_v30, 0.0  ;;  %v3265_v38 = vadd.f32 %v11592_v46, %v9318_v34  ;;  %v4289_v39 = vadd.f32 %v11592_v46, %v9574_v35 }
 0x2be   : > { %v4860_v37 = vmax.f32 %v4268_v31, 0.0  ;;  %v8523_v40 = vpack.c.bf16 %v4606_v32, %v4606_v32  ;;  %v8779_v41 = vpack.c.bf16 %v4862_v33, %v4862_v33  ;;  %v3256_v42 = vpop.f32.mrf.mxu0  ;;  %v4280_v43 = vpop.f32.mrf.mxu1 }
 0x2bf   : > { %v8521_v45 = vpack.c.bf16 %v4604_v36, %v4604_v36  ;;  %v4609_v48 = vmax.f32 %v3265_v38, 0.0  ;;  %v4865_v49 = vmax.f32 %v4289_v39, 0.0  ;;  %v3257_v50 = vadd.f32 %v11592_v46, %v3256_v42 }
 0x2c0   : > { %v8777_v47 = vpack.c.bf16 %v4860_v37, %v4860_v37  ;;  %7167 = vst.msk [vmem:[%s10079_s13 + $0x39c] sm:$0xf] %vm6935_vm0, %v8523_v40  ;;  %7423 = vst.msk [vmem:[%s10079_s13 + $0x79c] sm:$0xf] %vm6935_vm0, %v8779_v41  ;;  %v4281_v9 = vadd.f32 %v11592_v46, %v4280_v43  ;;  %v9319_v51 = vpop.f32.mrf.mxu0  ;;  %v9575_v52 = vpop.f32.mrf.mxu1 }
 0x2c1   : > { %7165 = vst.msk [vmem:[%s10079_s13 + $0x394] sm:$0xf] %vm6935_vm0, %v8521_v45  ;;  %v8526_v53 = vpack.c.bf16 %v4609_v48, %v4609_v48  ;;  %v8782_v54 = vpack.c.bf16 %v4865_v49, %v4865_v49  ;;  %v3268_v44 = vadd.f32 %v11592_v46, %v9319_v51  ;;  %v4292_v56 = vadd.f32 %v11592_v46, %v9575_v52 }
 0x2c2   : > { %7421 = vst.msk [vmem:[%s10079_s13 + $0x794] sm:$0xf] %vm6935_vm0, %v8777_v47  ;;  %v4607_v57 = vmax.f32 %v3257_v50, 0.0  ;;  %v4863_v58 = vmax.f32 %v4281_v9, 0.0  ;;  %v3259_v59 = vpop.f32.mrf.mxu0  ;;  %v4283_v60 = vpop.f32.mrf.mxu1 }
 0x2c3   : > { %7170 = vst.msk [vmem:[%s10079_s13 + $0x3a8] sm:$0xf] %vm6935_vm0, %v8526_v53  ;;  %7426 = vst.msk [vmem:[%s10079_s13 + $0x7a8] sm:$0xf] %vm6935_vm0, %v8782_v54  ;;  %v4610_v61 = vmax.f32 %v3268_v44, 0.0  ;;  %v4866_v62 = vmax.f32 %v4292_v56, 0.0  ;;  %v3260_v63 = vadd.f32 %v11592_v46, %v3259_v59  ;;  %v4284_v0 = vadd.f32 %v11592_v46, %v4283_v60 }
 0x2c4   : > { %v8524_v1 = vpack.c.bf16 %v4607_v57, %v4607_v57  ;;  %v8780_v2 = vpack.c.bf16 %v4863_v58, %v4863_v58  ;;  %v9322_v3 = vpop.f32.mrf.mxu0  ;;  %v9578_v4 = vpop.f32.mrf.mxu1 }
 0x2c5   : > { %v8527_v5 = vpack.c.bf16 %v4610_v61, %v4610_v61  ;;  %v8783_v6 = vpack.c.bf16 %v4866_v62, %v4866_v62  ;;  %v4608_v7 = vmax.f32 %v3260_v63, 0.0  ;;  %v4864_v8 = vmax.f32 %v4284_v0, 0.0 }
 0x2c6   : > { %7168 = vst.msk [vmem:[%s10079_s13 + $0x3a0] sm:$0xf] %vm6935_vm0, %v8524_v1  ;;  %7424 = vst.msk [vmem:[%s10079_s13 + $0x7a0] sm:$0xf] %vm6935_vm0, %v8780_v2  ;;  %v3281_v55 = vadd.f32 %v11592_v46, %v9322_v3  ;;  %v4305_v10 = vadd.f32 %v11592_v46, %v9578_v4  ;;  %v3272_v11 = vpop.f32.mrf.mxu0  ;;  %v4296_v12 = vpop.f32.mrf.mxu1 }
 0x2c7   : > { %7171 = vst.msk [vmem:[%s10079_s13 + $0x3ac] sm:$0xf] %vm6935_vm0, %v8527_v5  ;;  %7427 = vst.msk [vmem:[%s10079_s13 + $0x7ac] sm:$0xf] %vm6935_vm0, %v8783_v6  ;;  %v8525_v13 = vpack.c.bf16 %v4608_v7, %v4608_v7  ;;  %v8781_v14 = vpack.c.bf16 %v4864_v8, %v4864_v8  ;;  %v3273_v15 = vadd.f32 %v11592_v46, %v3272_v11 }
 0x2c8   : > { %v4297_v16 = vadd.f32 %v11592_v46, %v4296_v12  ;;  %v4613_v17 = vmax.f32 %v3281_v55, 0.0  ;;  %v4869_v18 = vmax.f32 %v4305_v10, 0.0  ;;  %v9323_v19 = vpop.f32.mrf.mxu0  ;;  %v9579_v20 = vpop.f32.mrf.mxu1 }
 0x2c9   : > { %7169 = vst.msk [vmem:[%s10079_s13 + $0x3a4] sm:$0xf] %vm6935_vm0, %v8525_v13  ;;  %7425 = vst.msk [vmem:[%s10079_s13 + $0x7a4] sm:$0xf] %vm6935_vm0, %v8781_v14  ;;  %v4611_v21 = vmax.f32 %v3273_v15, 0.0  ;;  %v3284_v23 = vadd.f32 %v11592_v46, %v9323_v19  ;;  %v4308_v24 = vadd.f32 %v11592_v46, %v9579_v20 }
 0x2ca   : > { %v4867_v22 = vmax.f32 %v4297_v16, 0.0  ;;  %v8530_v25 = vpack.c.bf16 %v4613_v17, %v4613_v17  ;;  %v8786_v26 = vpack.c.bf16 %v4869_v18, %v4869_v18  ;;  %v3275_v27 = vpop.f32.mrf.mxu0  ;;  %v4299_v28 = vpop.f32.mrf.mxu1 }
 0x2cb   : > { %v8528_v29 = vpack.c.bf16 %v4611_v21, %v4611_v21  ;;  %v4614_v31 = vmax.f32 %v3284_v23, 0.0  ;;  %v4870_v32 = vmax.f32 %v4308_v24, 0.0  ;;  %v3276_v33 = vadd.f32 %v11592_v46, %v3275_v27 }
 0x2cc   : > { %v8784_v30 = vpack.c.bf16 %v4867_v22, %v4867_v22  ;;  %7174 = vst.msk [vmem:[%s10079_s13 + $0x3b8] sm:$0xf] %vm6935_vm0, %v8530_v25  ;;  %7430 = vst.msk [vmem:[%s10079_s13 + $0x7b8] sm:$0xf] %vm6935_vm0, %v8786_v26  ;;  %v4300_v34 = vadd.f32 %v11592_v46, %v4299_v28  ;;  %v9326_v35 = vpop.f32.mrf.mxu0  ;;  %v9582_v36 = vpop.f32.mrf.mxu1 }
 0x2cd   : > { %7172 = vst.msk [vmem:[%s10079_s13 + $0x3b0] sm:$0xf] %vm6935_vm0, %v8528_v29  ;;  %v8531_v37 = vpack.c.bf16 %v4614_v31, %v4614_v31  ;;  %v8787_v38 = vpack.c.bf16 %v4870_v32, %v4870_v32  ;;  %v3297_v39 = vadd.f32 %v11592_v46, %v9326_v35  ;;  %v4321_v40 = vadd.f32 %v11592_v46, %v9582_v36 }
 0x2ce   : > { %7428 = vst.msk [vmem:[%s10079_s13 + $0x7b0] sm:$0xf] %vm6935_vm0, %v8784_v30  ;;  %v4612_v41 = vmax.f32 %v3276_v33, 0.0  ;;  %v4868_v42 = vmax.f32 %v4300_v34, 0.0  ;;  %v3288_v43 = vpop.f32.mrf.mxu0  ;;  %v4312_v45 = vpop.f32.mrf.mxu1 }
 0x2cf   : > { %7175 = vst.msk [vmem:[%s10079_s13 + $0x3bc] sm:$0xf] %vm6935_vm0, %v8531_v37  ;;  %7431 = vst.msk [vmem:[%s10079_s13 + $0x7bc] sm:$0xf] %vm6935_vm0, %v8787_v38  ;;  %v4617_v47 = vmax.f32 %v3297_v39, 0.0  ;;  %v4873_v48 = vmax.f32 %v4321_v40, 0.0  ;;  %v3289_v49 = vadd.f32 %v11592_v46, %v3288_v43  ;;  %v4313_v50 = vadd.f32 %v11592_v46, %v4312_v45 }
 0x2d0   : > { %v8529_v9 = vpack.c.bf16 %v4612_v41, %v4612_v41  ;;  %v8785_v51 = vpack.c.bf16 %v4868_v42, %v4868_v42  ;;  %v9327_v52 = vpop.f32.mrf.mxu0  ;;  %v9583_v53 = vpop.f32.mrf.mxu1 }
 0x2d1   : > { %v8534_v54 = vpack.c.bf16 %v4617_v47, %v4617_v47  ;;  %v8790_v44 = vpack.c.bf16 %v4873_v48, %v4873_v48  ;;  %v4615_v56 = vmax.f32 %v3289_v49, 0.0  ;;  %v4871_v57 = vmax.f32 %v4313_v50, 0.0 }
 0x2d2   : > { %7173 = vst.msk [vmem:[%s10079_s13 + $0x3b4] sm:$0xf] %vm6935_vm0, %v8529_v9  ;;  %7429 = vst.msk [vmem:[%s10079_s13 + $0x7b4] sm:$0xf] %vm6935_vm0, %v8785_v51  ;;  %v3300_v58 = vadd.f32 %v11592_v46, %v9327_v52  ;;  %v4324_v59 = vadd.f32 %v11592_v46, %v9583_v53  ;;  %v3291_v60 = vpop.f32.mrf.mxu0  ;;  %v4315_v61 = vpop.f32.mrf.mxu1 }
 0x2d3   : > { %7178 = vst.msk [vmem:[%s10079_s13 + $0x3c8] sm:$0xf] %vm6935_vm0, %v8534_v54  ;;  %7434 = vst.msk [vmem:[%s10079_s13 + $0x7c8] sm:$0xf] %vm6935_vm0, %v8790_v44  ;;  %v8532_v62 = vpack.c.bf16 %v4615_v56, %v4615_v56  ;;  %v8788_v63 = vpack.c.bf16 %v4871_v57, %v4871_v57  ;;  %v3292_v0 = vadd.f32 %v11592_v46, %v3291_v60 }
 0x2d4   : > { %v4316_v1 = vadd.f32 %v11592_v46, %v4315_v61  ;;  %v4618_v2 = vmax.f32 %v3300_v58, 0.0  ;;  %v4874_v3 = vmax.f32 %v4324_v59, 0.0  ;;  %v9330_v4 = vpop.f32.mrf.mxu0  ;;  %v9586_v5 = vpop.f32.mrf.mxu1 }
 0x2d5   : > { %7176 = vst.msk [vmem:[%s10079_s13 + $0x3c0] sm:$0xf] %vm6935_vm0, %v8532_v62  ;;  %7432 = vst.msk [vmem:[%s10079_s13 + $0x7c0] sm:$0xf] %vm6935_vm0, %v8788_v63  ;;  %v4616_v6 = vmax.f32 %v3292_v0, 0.0  ;;  %v3313_v8 = vadd.f32 %v11592_v46, %v9330_v4  ;;  %v4337_v55 = vadd.f32 %v11592_v46, %v9586_v5 }
 0x2d6   : > { %v4872_v7 = vmax.f32 %v4316_v1, 0.0  ;;  %v8535_v10 = vpack.c.bf16 %v4618_v2, %v4618_v2  ;;  %v8791_v11 = vpack.c.bf16 %v4874_v3, %v4874_v3  ;;  %v3304_v12 = vpop.f32.mrf.mxu0  ;;  %v4328_v13 = vpop.f32.mrf.mxu1 }
 0x2d7   : > { %v8533_v14 = vpack.c.bf16 %v4616_v6, %v4616_v6  ;;  %v4621_v16 = vmax.f32 %v3313_v8, 0.0  ;;  %v4877_v17 = vmax.f32 %v4337_v55, 0.0  ;;  %v3305_v18 = vadd.f32 %v11592_v46, %v3304_v12 }
 0x2d8   : > { %v8789_v15 = vpack.c.bf16 %v4872_v7, %v4872_v7  ;;  %7179 = vst.msk [vmem:[%s10079_s13 + $0x3cc] sm:$0xf] %vm6935_vm0, %v8535_v10  ;;  %7435 = vst.msk [vmem:[%s10079_s13 + $0x7cc] sm:$0xf] %vm6935_vm0, %v8791_v11  ;;  %v4329_v19 = vadd.f32 %v11592_v46, %v4328_v13  ;;  %v9331_v20 = vpop.f32.mrf.mxu0  ;;  %v9587_v21 = vpop.f32.mrf.mxu1 }
 0x2d9   : > { %7177 = vst.msk [vmem:[%s10079_s13 + $0x3c4] sm:$0xf] %vm6935_vm0, %v8533_v14  ;;  %v8538_v22 = vpack.c.bf16 %v4621_v16, %v4621_v16  ;;  %v8794_v23 = vpack.c.bf16 %v4877_v17, %v4877_v17  ;;  %v3316_v24 = vadd.f32 %v11592_v46, %v9331_v20  ;;  %v4340_v25 = vadd.f32 %v11592_v46, %v9587_v21 }
 0x2da   : > { %7433 = vst.msk [vmem:[%s10079_s13 + $0x7c4] sm:$0xf] %vm6935_vm0, %v8789_v15  ;;  %v4619_v26 = vmax.f32 %v3305_v18, 0.0  ;;  %v4875_v27 = vmax.f32 %v4329_v19, 0.0  ;;  %v3307_v28 = vpop.f32.mrf.mxu0  ;;  %v4331_v29 = vpop.f32.mrf.mxu1 }
 0x2db   : > { %7182 = vst.msk [vmem:[%s10079_s13 + $0x3d8] sm:$0xf] %vm6935_vm0, %v8538_v22  ;;  %7438 = vst.msk [vmem:[%s10079_s13 + $0x7d8] sm:$0xf] %vm6935_vm0, %v8794_v23  ;;  %v4622_v30 = vmax.f32 %v3316_v24, 0.0  ;;  %v4878_v31 = vmax.f32 %v4340_v25, 0.0  ;;  %v3308_v32 = vadd.f32 %v11592_v46, %v3307_v28  ;;  %v4332_v33 = vadd.f32 %v11592_v46, %v4331_v29 }
 0x2dc   : > { %v8536_v34 = vpack.c.bf16 %v4619_v26, %v4619_v26  ;;  %v8792_v35 = vpack.c.bf16 %v4875_v27, %v4875_v27  ;;  %v9334_v36 = vpop.f32.mrf.mxu0  ;;  %v9590_v37 = vpop.f32.mrf.mxu1 }
 0x2dd   : > { %v8539_v38 = vpack.c.bf16 %v4622_v30, %v4622_v30  ;;  %v8795_v39 = vpack.c.bf16 %v4878_v31, %v4878_v31  ;;  %v4620_v40 = vmax.f32 %v3308_v32, 0.0  ;;  %v4876_v41 = vmax.f32 %v4332_v33, 0.0 }
 0x2de   : > { %7180 = vst.msk [vmem:[%s10079_s13 + $0x3d0] sm:$0xf] %vm6935_vm0, %v8536_v34  ;;  %7436 = vst.msk [vmem:[%s10079_s13 + $0x7d0] sm:$0xf] %vm6935_vm0, %v8792_v35  ;;  %v3329_v42 = vadd.f32 %v11592_v46, %v9334_v36  ;;  %v4353_v43 = vadd.f32 %v11592_v46, %v9590_v37  ;;  %v3320_v45 = vpop.f32.mrf.mxu0  ;;  %v4344_v47 = vpop.f32.mrf.mxu1 }
 0x2df   : > { %7183 = vst.msk [vmem:[%s10079_s13 + $0x3dc] sm:$0xf] %vm6935_vm0, %v8539_v38  ;;  %7439 = vst.msk [vmem:[%s10079_s13 + $0x7dc] sm:$0xf] %vm6935_vm0, %v8795_v39  ;;  %v8537_v48 = vpack.c.bf16 %v4620_v40, %v4620_v40  ;;  %v8793_v49 = vpack.c.bf16 %v4876_v41, %v4876_v41  ;;  %v3321_v50 = vadd.f32 %v11592_v46, %v3320_v45 }
 0x2e0   : > { %v4345_v9 = vadd.f32 %v11592_v46, %v4344_v47  ;;  %v4625_v51 = vmax.f32 %v3329_v42, 0.0  ;;  %v4881_v52 = vmax.f32 %v4353_v43, 0.0  ;;  %v9335_v53 = vpop.f32.mrf.mxu0  ;;  %v9591_v54 = vpop.f32.mrf.mxu1 }
 0x2e1   : > { %7181 = vst.msk [vmem:[%s10079_s13 + $0x3d4] sm:$0xf] %vm6935_vm0, %v8537_v48  ;;  %7437 = vst.msk [vmem:[%s10079_s13 + $0x7d4] sm:$0xf] %vm6935_vm0, %v8793_v49  ;;  %v4623_v44 = vmax.f32 %v3321_v50, 0.0  ;;  %v3332_v57 = vadd.f32 %v11592_v46, %v9335_v53  ;;  %v4356_v58 = vadd.f32 %v11592_v46, %v9591_v54 }
 0x2e2   : > { %v4879_v56 = vmax.f32 %v4345_v9, 0.0  ;;  %v8542_v59 = vpack.c.bf16 %v4625_v51, %v4625_v51  ;;  %v8798_v60 = vpack.c.bf16 %v4881_v52, %v4881_v52  ;;  %v3323_v61 = vpop.f32.mrf.mxu0  ;;  %v4347_v62 = vpop.f32.mrf.mxu1 }
 0x2e3   : > { %v8540_v63 = vpack.c.bf16 %v4623_v44, %v4623_v44  ;;  %v4626_v1 = vmax.f32 %v3332_v57, 0.0  ;;  %v4882_v2 = vmax.f32 %v4356_v58, 0.0  ;;  %v3324_v3 = vadd.f32 %v11592_v46, %v3323_v61 }
 0x2e4   : > { %v8796_v0 = vpack.c.bf16 %v4879_v56, %v4879_v56  ;;  %7186 = vst.msk [vmem:[%s10079_s13 + $0x3e8] sm:$0xf] %vm6935_vm0, %v8542_v59  ;;  %7442 = vst.msk [vmem:[%s10079_s13 + $0x7e8] sm:$0xf] %vm6935_vm0, %v8798_v60  ;;  %v4348_v4 = vadd.f32 %v11592_v46, %v4347_v62  ;;  %v9338_v5 = vpop.f32.mrf.mxu0  ;;  %v9594_v6 = vpop.f32.mrf.mxu1 }
 0x2e5   : > { %7184 = vst.msk [vmem:[%s10079_s13 + $0x3e0] sm:$0xf] %vm6935_vm0, %v8540_v63  ;;  %v8543_v7 = vpack.c.bf16 %v4626_v1, %v4626_v1  ;;  %v8799_v8 = vpack.c.bf16 %v4882_v2, %v4882_v2  ;;  %v3345_v55 = vadd.f32 %v11592_v46, %v9338_v5  ;;  %v4369_v10 = vadd.f32 %v11592_v46, %v9594_v6 }
 0x2e6   : > { %7440 = vst.msk [vmem:[%s10079_s13 + $0x7e0] sm:$0xf] %vm6935_vm0, %v8796_v0  ;;  %v4624_v11 = vmax.f32 %v3324_v3, 0.0  ;;  %v4880_v12 = vmax.f32 %v4348_v4, 0.0  ;;  %v3336_v13 = vpop.f32.mrf.mxu0  ;;  %v4360_v14 = vpop.f32.mrf.mxu1 }
 0x2e7   : > { %7187 = vst.msk [vmem:[%s10079_s13 + $0x3ec] sm:$0xf] %vm6935_vm0, %v8543_v7  ;;  %7443 = vst.msk [vmem:[%s10079_s13 + $0x7ec] sm:$0xf] %vm6935_vm0, %v8799_v8  ;;  %v4629_v15 = vmax.f32 %v3345_v55, 0.0  ;;  %v4885_v16 = vmax.f32 %v4369_v10, 0.0  ;;  %v3337_v17 = vadd.f32 %v11592_v46, %v3336_v13  ;;  %v4361_v18 = vadd.f32 %v11592_v46, %v4360_v14 }
 0x2e8   : > { %v8541_v19 = vpack.c.bf16 %v4624_v11, %v4624_v11  ;;  %v8797_v20 = vpack.c.bf16 %v4880_v12, %v4880_v12  ;;  %v9339_v21 = vpop.f32.mrf.mxu0  ;;  %v9595_v22 = vpop.f32.mrf.mxu1 }
 0x2e9   : > { %v8546_v23 = vpack.c.bf16 %v4629_v15, %v4629_v15  ;;  %v8802_v24 = vpack.c.bf16 %v4885_v16, %v4885_v16  ;;  %v4627_v25 = vmax.f32 %v3337_v17, 0.0  ;;  %v4883_v26 = vmax.f32 %v4361_v18, 0.0 }
 0x2ea   : > { %7185 = vst.msk [vmem:[%s10079_s13 + $0x3e4] sm:$0xf] %vm6935_vm0, %v8541_v19  ;;  %7441 = vst.msk [vmem:[%s10079_s13 + $0x7e4] sm:$0xf] %vm6935_vm0, %v8797_v20  ;;  %v3348_v27 = vadd.f32 %v11592_v46, %v9339_v21  ;;  %v4372_v28 = vadd.f32 %v11592_v46, %v9595_v22  ;;  %v3339_v29 = vpop.f32.mrf.mxu0  ;;  %v4363_v30 = vpop.f32.mrf.mxu1 }
 0x2eb   : > { %7190 = vst.msk [vmem:[%s10079_s13 + $0x3f8] sm:$0xf] %vm6935_vm0, %v8546_v23  ;;  %7446 = vst.msk [vmem:[%s10079_s13 + $0x7f8] sm:$0xf] %vm6935_vm0, %v8802_v24  ;;  %v8544_v31 = vpack.c.bf16 %v4627_v25, %v4627_v25  ;;  %v8800_v32 = vpack.c.bf16 %v4883_v26, %v4883_v26  ;;  %v3340_v33 = vadd.f32 %v11592_v46, %v3339_v29 }
 0x2ec   : > { %v4364_v34 = vadd.f32 %v11592_v46, %v4363_v30  ;;  %v4630_v35 = vmax.f32 %v3348_v27, 0.0  ;;  %v4886_v36 = vmax.f32 %v4372_v28, 0.0 }
 0x2ed   : > { %7188 = vst.msk [vmem:[%s10079_s13 + $0x3f0] sm:$0xf] %vm6935_vm0, %v8544_v31  ;;  %7444 = vst.msk [vmem:[%s10079_s13 + $0x7f0] sm:$0xf] %vm6935_vm0, %v8800_v32  ;;  %v4628_v37 = vmax.f32 %v3340_v33, 0.0 }
 0x2ee   : > { %v4884_v38 = vmax.f32 %v4364_v34, 0.0  ;;  %v8547_v39 = vpack.c.bf16 %v4630_v35, %v4630_v35  ;;  %v8803_v40 = vpack.c.bf16 %v4886_v36, %v4886_v36 }
 0x2ef   : > { %v8545_v41 = vpack.c.bf16 %v4628_v37, %v4628_v37 }
 0x2f0   : > { %v8801_v42 = vpack.c.bf16 %v4884_v38, %v4884_v38  ;;  %7191 = vst.msk [vmem:[%s10079_s13 + $0x3fc] sm:$0xf] %vm6935_vm0, %v8547_v39  ;;  %7447 = vst.msk [vmem:[%s10079_s13 + $0x7fc] sm:$0xf] %vm6935_vm0, %v8803_v40 }
 0x2f1   : > { %7189 = vst.msk [vmem:[%s10079_s13 + $0x3f4] sm:$0xf] %vm6935_vm0, %v8545_v41 }
 0x2f2   : > { %7445 = vst.msk [vmem:[%s10079_s13 + $0x7f4] sm:$0xf] %vm6935_vm0, %v8801_v42 }
 0x2f3 PF: > { %s13_s12 = sadd.s32 1, %s9895_s12  }
 0x2f4   : > { %p10_p4 = scmp.ge.s32.totalorder %s13_s12, 6  }
 0x2f6   :  { %12 = sbr.rel (!%p10_p4) target bundleno = 1 (0x1), region = 62 }

</bundles_post_ra>
